<compile_context>
chip_gen: v7x
topology: tpu7x:2x2x1
jax: 0.10.0
libtpu: 0.0.40
codegen_flags: <defaults>
</compile_context>

<pallas_src>
import functools

import jax
import jax.numpy as jnp
from jax.experimental import pallas as pl
from jax.experimental.pallas import tpu as pltpu

EMBED = 300
EMBED_PAD = 384          # 300 padded up: multiple of 128 (lane) and 8 (sublane)
HIDDEN = 1024
V_TILE_MAX = 2048        # vocab-column tile of the final Linear (multiple of 128)


def _vocab_tiling(vocab):
    """Return (v_tile, v_pad): lane-aligned tile width and padded vocab size."""
    v128 = ((vocab + 127) // 128) * 128
    if v128 <= V_TILE_MAX:
        return v128, v128                      # single tile, minimal padding
    v_tile = V_TILE_MAX
    nv = (v128 + v_tile - 1) // v_tile
    if nv % 2:
        nv += 1                                # even tile count -> v7x megacore split
    return v_tile, nv * v_tile


# ----------------------------- Fused kernel ---------------------------------
def _fused_kernel(tok_ref, emb_ref, wih_ref, brnn_ref, wlin_ref, blin_ref, out_ref):
    """One vocab-column tile of the fused forward.

    tok_ref : (1,)                 int32 SMEM (drives emb index_map only)
    emb_ref : (1, 1, EMBED_PAD)    bf16  embedding row of token x[0, -1]
    wih_ref : (EMBED_PAD, HIDDEN)  bf16  W_ih^T (rows 300..383 zero-padded)
    brnn_ref: (1, HIDDEN)          f32   b_ih + b_hh
    wlin_ref: (HIDDEN, V_TILE)     bf16  column tile of W_lin^T
    blin_ref: (1, V_TILE)          f32   column tile of b_lin
    out_ref : (1, V_TILE)          f32   logits column tile
    """
    del tok_ref  # consumed by the index_maps only
    x0 = emb_ref[0]                                        # (1, EMBED_PAD) bf16
    # h1 = tanh(x0 @ W_ih^T + b); h0 = 0 so the h0 @ W_hh^T term is exactly 0.
    pre = (
        jnp.dot(x0, wih_ref[...], preferred_element_type=jnp.float32)
        + brnn_ref[...]
    )
    h = jnp.tanh(pre)                                      # (1, HIDDEN) f32 (EUP)
    out_ref[...] = (
        jnp.dot(h.astype(wlin_ref.dtype), wlin_ref[...],
                preferred_element_type=jnp.float32)
        + blin_ref[...]
    )


def fused_forward(tok, emb, wih_t, rnn_bias, lin_w_t, lin_b, *, single_buffer=True):
    """tok: (1,) int32 token id -> (1, v_pad) f32 logits (padded vocab)."""
    v_pad = lin_w_t.shape[1]
    v_tile = V_TILE_MAX if v_pad > V_TILE_MAX else v_pad
    assert v_pad % v_tile == 0
    nv = v_pad // v_tile

    # Grid-constant inputs: never re-fetched; single-buffer them if supported.
    const_mode = dict(pipeline_mode=pl.Buffered(1)) if single_buffer else {}
    in_specs = [
        pl.BlockSpec((1, 1, EMBED_PAD), lambda j, tok: (tok[0], 0, 0), **const_mode),
        pl.BlockSpec((EMBED_PAD, HIDDEN), lambda j, tok: (0, 0), **const_mode),
        pl.BlockSpec((1, HIDDEN), lambda j, tok: (0, 0), **const_mode),
        pl.BlockSpec((HIDDEN, v_tile), lambda j, tok: (0, j)),
        pl.BlockSpec((1, v_tile), lambda j, tok: (0, j)),
    ]

    return pl.pallas_call(
        _fused_kernel,
        out_shape=jax.ShapeDtypeStruct((1, v_pad), jnp.float32),
        grid_spec=pltpu.PrefetchScalarGridSpec(
            num_scalar_prefetch=1,
            grid=(nv,),
            in_specs=in_specs,
            out_specs=pl.BlockSpec((1, v_tile), lambda j, tok: (0, j)),
        ),
        compiler_params=pltpu.CompilerParams(
            dimension_semantics=("parallel",),      # vocab tiles are independent
            # Budget: 2 x 4 MB W_lin tile + ~1.5 MB W_ih + small buffers ~= 10 MB.
            vmem_limit_bytes=32 * 1024 * 1024,
        ),
    )(tok, emb, wih_t, rnn_bias, lin_w_t, lin_b)


# ------------------------------ Full module ---------------------------------
@functools.partial(jax.jit, static_argnames=("single_buffer",))
def rnn_module_forward(x_ids, params, single_buffer=True):
    """x_ids: (T, B) int32 token ids (time-major, as nn.RNN default)."""
    vocab = params["embedding"].shape[0]
    tok = x_ids[0, -1].reshape((1,)).astype(jnp.int32)     # PyTorch: x[0, -1]
    logits = fused_forward(
        tok, params["embedding"], params["wih_t"], params["rnn_bias"],
        params["lin_w_t"], params["lin_b"], single_buffer=single_buffer,
    )                                                      # (1, v_pad)
    return logits[0, :vocab]                               # (vocab,)


def _ref_forward(x_ids, params):
    """Pure-JAX reference with identical dtypes (bf16 weights, f32 accum)."""
    vocab = params["embedding"].shape[0]
    tok = x_ids[0, -1]
    x0 = params["embedding"][tok, 0].astype(jnp.float32)[None, :]   # (1, EMBED_PAD)
    h = jnp.tanh(x0 @ params["wih_t"].astype(jnp.float32) + params["rnn_bias"])
    h = h.astype(jnp.bfloat16).astype(jnp.float32)
    logits = h @ params["lin_w_t"].astype(jnp.float32) + params["lin_b"]
    return logits[0, :vocab]


def init_params(key, vocab):
    k = jax.random.split(key, 6)
    scale = 0.02
    _, v_pad = _vocab_tiling(vocab)

    emb = scale * jax.random.normal(k[0], (vocab, EMBED), jnp.float32)
    emb = jnp.pad(emb, ((0, 0), (0, EMBED_PAD - EMBED)))           # zero pad cols
    emb = emb.reshape(vocab, 1, EMBED_PAD)                         # gather-friendly

    wih_t = scale * jax.random.normal(k[1], (EMBED, HIDDEN), jnp.float32)
    wih_t = jnp.pad(wih_t, ((0, EMBED_PAD - EMBED), (0, 0)))       # zero pad rows

    # W_hh^T kept so the parameter set mirrors nn.RNN; it does not affect the
    # returned logits (only one step from h0 = 0 is consumed by the module).
    whh_t = scale * jax.random.normal(k[2], (HIDDEN, HIDDEN), jnp.float32)

    # NOTE: a real weight loader must set this to (b_ih + b_hh).
    rnn_bias = scale * jax.random.normal(k[3], (1, HIDDEN), jnp.float32)

    lin_w_t = scale * jax.random.normal(k[4], (HIDDEN, vocab), jnp.float32)
    lin_w_t = jnp.pad(lin_w_t, ((0, 0), (0, v_pad - vocab)))
    lin_b = scale * jax.random.normal(k[5], (1, vocab), jnp.float32)
    lin_b = jnp.pad(lin_b, ((0, 0), (0, v_pad - vocab)))

    return {
        "embedding": emb.astype(jnp.bfloat16),      # (vocab, 1, EMBED_PAD) bf16
        "wih_t": wih_t.astype(jnp.bfloat16),        # (EMBED_PAD, HIDDEN) bf16
        "whh_t": whh_t.astype(jnp.bfloat16),        # (HIDDEN, HIDDEN) bf16 (unused)
        "rnn_bias": rnn_bias,                       # (1, HIDDEN) f32
        "lin_w_t": lin_w_t.astype(jnp.bfloat16),    # (HIDDEN, v_pad) bf16
        "lin_b": lin_b,                             # (1, v_pad) f32
    }


if __name__ == "__main__":
    VOCAB = 512
    SEQ, BATCH = 8, 2

    key = jax.random.PRNGKey(0)
    pkey, xkey = jax.random.split(key)
    params = init_params(pkey, VOCAB)

    x_ids = jax.random.randint(xkey, (SEQ, BATCH), 0, VOCAB, dtype=jnp.int32)

    try:
        logits = jax.block_until_ready(
            rnn_module_forward(x_ids, params, single_buffer=True))
    except Exception:
        # Fallback: this jax build rejects pl.Buffered(1) single-buffering of
        # grid-constant inputs; default double-buffering is functionally identical.
        logits = jax.block_until_ready(
            rnn_module_forward(x_ids, params, single_buffer=False))

    assert logits.shape == (VOCAB,), logits.shape

    ref = _ref_forward(x_ids, params)
    assert jnp.allclose(logits, ref, atol=1e-3, rtol=1e-2), (
        float(jnp.max(jnp.abs(logits - ref)))
    )
    print("KERNEL_OK")
</pallas_src>

<mosaic_0001>
module attributes {stable_mosaic.version = 11 : i64} {
  func.func @_fused_kernel(%arg0: i32, %arg1: memref<1xi32, #tpu.memory_space<smem>>, %arg2: memref<1x1x384xbf16, #tpu.memory_space<vmem>>, %arg3: memref<384x1024xbf16, #tpu.memory_space<vmem>>, %arg4: memref<1x1024xf32, #tpu.memory_space<vmem>>, %arg5: memref<1024x512xbf16, #tpu.memory_space<vmem>>, %arg6: memref<1x512xf32, #tpu.memory_space<vmem>>, %arg7: memref<1x512xf32, #tpu.memory_space<vmem>>) attributes {dimension_semantics = [#tpu.dimension_semantics<parallel>], iteration_bounds = array<i64: 1>, scalar_prefetch = 1 : i64, scratch_operands = 0 : i64, tpu.core_type = #tpu.core_type<tc>, window_params = [{pipeline_mode = #tpu.pipeline_mode<synchronous>, transform_indices = @transform_0, window_bounds = array<i64: 1, 1, 384>}, {pipeline_mode = #tpu.pipeline_mode<synchronous>, transform_indices = @transform_1, window_bounds = array<i64: 384, 1024>}, {pipeline_mode = #tpu.pipeline_mode<synchronous>, transform_indices = @transform_2, window_bounds = array<i64: 1, 1024>}, {transform_indices = @transform_3, window_bounds = array<i64: 1024, 512>}, {transform_indices = @transform_4, window_bounds = array<i64: 1, 512>}, {transform_indices = @transform_5, window_bounds = array<i64: 1, 512>}]} {
    %c0 = arith.constant 0 : index
    %c0_0 = arith.constant 0 : index
    %c0_1 = arith.constant 0 : index
    %0 = vector.load %arg2[%c0, %c0_0, %c0_1] : memref<1x1x384xbf16, #tpu.memory_space<vmem>>, vector<1x1x384xbf16>
    %1 = vector.shape_cast %0 : vector<1x1x384xbf16> to vector<1x384xbf16>
    %c0_2 = arith.constant 0 : index
    %c0_3 = arith.constant 0 : index
    %2 = vector.load %arg3[%c0_2, %c0_3] : memref<384x1024xbf16, #tpu.memory_space<vmem>>, vector<384x1024xbf16>
    %cst = arith.constant dense<0.000000e+00> : vector<1x1024xf32>
    %3 = tpu.matmul %1, %2, %cst {dimension_numbers = #tpu.dot_dimension_numbers<[1], [0], [0], [1], [0, 0, 1, 1], [], []>} : vector<1x384xbf16>, vector<384x1024xbf16>, vector<1x1024xf32> -> vector<1x1024xf32>
    %c0_4 = arith.constant 0 : index
    %c0_5 = arith.constant 0 : index
    %4 = vector.load %arg4[%c0_4, %c0_5] : memref<1x1024xf32, #tpu.memory_space<vmem>>, vector<1x1024xf32>
    %5 = arith.addf %3, %4 : vector<1x1024xf32>
    %6 = math.tanh %5 : vector<1x1024xf32>
    %7 = arith.truncf %6 : vector<1x1024xf32> to vector<1x1024xbf16>
    %c0_6 = arith.constant 0 : index
    %c0_7 = arith.constant 0 : index
    %8 = vector.load %arg5[%c0_6, %c0_7] : memref<1024x512xbf16, #tpu.memory_space<vmem>>, vector<1024x512xbf16>
    %cst_8 = arith.constant dense<0.000000e+00> : vector<1x512xf32>
    %9 = tpu.matmul %7, %8, %cst_8 {dimension_numbers = #tpu.dot_dimension_numbers<[1], [0], [0], [1], [0, 0, 1, 1], [], []>} : vector<1x1024xbf16>, vector<1024x512xbf16>, vector<1x512xf32> -> vector<1x512xf32>
    %c0_9 = arith.constant 0 : index
    %c0_10 = arith.constant 0 : index
    %10 = vector.load %arg6[%c0_9, %c0_10] : memref<1x512xf32, #tpu.memory_space<vmem>>, vector<1x512xf32>
    %11 = arith.addf %9, %10 : vector<1x512xf32>
    %c0_11 = arith.constant 0 : index
    %c0_12 = arith.constant 0 : index
    %12 = vector.load %arg7[%c0_11, %c0_12] : memref<1x512xf32, #tpu.memory_space<vmem>>, vector<1x512xf32>
    tpu.vector_store %arg7[%c0_11, %c0_12], %11 {strides = array<i32>} : memref<1x512xf32, #tpu.memory_space<vmem>>, vector<1x512xf32>,
    return
  }
  func.func @transform_0(%arg0: i32, %arg1: memref<1xi32, #tpu.memory_space<smem>>) -> (i32, i32, i32) {
    %c0 = arith.constant 0 : index
    %0 = memref.load %arg1[%c0] : memref<1xi32, #tpu.memory_space<smem>>
    %c0_i32 = arith.constant 0 : i32
    %c0_i32_0 = arith.constant 0 : i32
    %c0_i32_1 = arith.constant 0 : i32
    return %0, %c0_i32, %c0_i32_0 : i32, i32, i32
  }
  func.func @transform_1(%arg0: i32, %arg1: memref<1xi32, #tpu.memory_space<smem>>) -> (i32, i32) {
    %c0_i32 = arith.constant 0 : i32
    %c0_i32_0 = arith.constant 0 : i32
    %c0_i32_1 = arith.constant 0 : i32
    return %c0_i32, %c0_i32_0 : i32, i32
  }
  func.func @transform_2(%arg0: i32, %arg1: memref<1xi32, #tpu.memory_space<smem>>) -> (i32, i32) {
    %c0_i32 = arith.constant 0 : i32
    %c0_i32_0 = arith.constant 0 : i32
    %c0_i32_1 = arith.constant 0 : i32
    return %c0_i32, %c0_i32_0 : i32, i32
  }
  func.func @transform_3(%arg0: i32, %arg1: memref<1xi32, #tpu.memory_space<smem>>) -> (i32, i32) {
    %c0_i32 = arith.constant 0 : i32
    %c0_i32_0 = arith.constant 0 : i32
    return %c0_i32, %arg0 : i32, i32
  }
  func.func @transform_4(%arg0: i32, %arg1: memref<1xi32, #tpu.memory_space<smem>>) -> (i32, i32) {
    %c0_i32 = arith.constant 0 : i32
    %c0_i32_0 = arith.constant 0 : i32
    return %c0_i32, %arg0 : i32, i32
  }
  func.func @transform_5(%arg0: i32, %arg1: memref<1xi32, #tpu.memory_space<smem>>) -> (i32, i32) {
    %c0_i32 = arith.constant 0 : i32
    %c0_i32_0 = arith.constant 0 : i32
    return %c0_i32, %arg0 : i32, i32
  }
}

module attributes {stable_mosaic.version = 11 : i64} {
  func.func @_fused_kernel(%arg0: i32, %arg1: memref<1xi32, #tpu.memory_space<smem>>, %arg2: memref<1x1x384xbf16, #tpu.memory_space<vmem>>, %arg3: memref<384x1024xbf16, #tpu.memory_space<vmem>>, %arg4: memref<1x1024xf32, #tpu.memory_space<vmem>>, %arg5: memref<1024x512xbf16, #tpu.memory_space<vmem>>, %arg6: memref<1x512xf32, #tpu.memory_space<vmem>>, %arg7: memref<1x512xf32, #tpu.memory_space<vmem>>) attributes {dimension_semantics = [#tpu.dimension_semantics<parallel>], iteration_bounds = array<i64: 1>, scalar_prefetch = 1 : i64, scratch_operands = 0 : i64, tpu.core_type = #tpu.core_type<tc>, window_params = [{transform_indices = @transform_0, window_bounds = array<i64: 1, 1, 384>}, {pipeline_mode = #tpu.pipeline_mode<synchronous>, transform_indices = @transform_1, window_bounds = array<i64: 384, 1024>}, {pipeline_mode = #tpu.pipeline_mode<synchronous>, transform_indices = @transform_2, window_bounds = array<i64: 1, 1024>}, {transform_indices = @transform_3, window_bounds = array<i64: 1024, 512>}, {transform_indices = @transform_4, window_bounds = array<i64: 1, 512>}, {transform_indices = @transform_5, window_bounds = array<i64: 1, 512>}]} {
    %c0 = arith.constant 0 : index
    %c0_0 = arith.constant 0 : index
    %c0_1 = arith.constant 0 : index
    %0 = vector.load %arg2[%c0, %c0_0, %c0_1] : memref<1x1x384xbf16, #tpu.memory_space<vmem>>, vector<1x1x384xbf16>
    %1 = vector.shape_cast %0 : vector<1x1x384xbf16> to vector<1x384xbf16>
    %c0_2 = arith.constant 0 : index
    %c0_3 = arith.constant 0 : index
    %2 = vector.load %arg3[%c0_2, %c0_3] : memref<384x1024xbf16, #tpu.memory_space<vmem>>, vector<384x1024xbf16>
    %cst = arith.constant dense<0.000000e+00> : vector<1x1024xf32>
    %3 = tpu.matmul %1, %2, %cst {dimension_numbers = #tpu.dot_dimension_numbers<[1], [0], [0], [1], [0, 0, 1, 1], [], []>} : vector<1x384xbf16>, vector<384x1024xbf16>, vector<1x1024xf32> -> vector<1x1024xf32>
    %c0_4 = arith.constant 0 : index
    %c0_5 = arith.constant 0 : index
    %4 = vector.load %arg4[%c0_4, %c0_5] : memref<1x1024xf32, #tpu.memory_space<vmem>>, vector<1x1024xf32>
    %5 = arith.addf %3, %4 : vector<1x1024xf32>
    %6 = math.tanh %5 : vector<1x1024xf32>
    %7 = arith.truncf %6 : vector<1x1024xf32> to vector<1x1024xbf16>
    %c0_6 = arith.constant 0 : index
    %c0_7 = arith.constant 0 : index
    %8 = vector.load %arg5[%c0_6, %c0_7] : memref<1024x512xbf16, #tpu.memory_space<vmem>>, vector<1024x512xbf16>
    %cst_8 = arith.constant dense<0.000000e+00> : vector<1x512xf32>
    %9 = tpu.matmul %7, %8, %cst_8 {dimension_numbers = #tpu.dot_dimension_numbers<[1], [0], [0], [1], [0, 0, 1, 1], [], []>} : vector<1x1024xbf16>, vector<1024x512xbf16>, vector<1x512xf32> -> vector<1x512xf32>
    %c0_9 = arith.constant 0 : index
    %c0_10 = arith.constant 0 : index
    %10 = vector.load %arg6[%c0_9, %c0_10] : memref<1x512xf32, #tpu.memory_space<vmem>>, vector<1x512xf32>
    %11 = arith.addf %9, %10 : vector<1x512xf32>
    %c0_11 = arith.constant 0 : index
    %c0_12 = arith.constant 0 : index
    %12 = vector.load %arg7[%c0_11, %c0_12] : memref<1x512xf32, #tpu.memory_space<vmem>>, vector<1x512xf32>
    tpu.vector_store %arg7[%c0_11, %c0_12], %11 {strides = array<i32>} : memref<1x512xf32, #tpu.memory_space<vmem>>, vector<1x512xf32>,
    return
  }
  func.func @transform_0(%arg0: i32, %arg1: memref<1xi32, #tpu.memory_space<smem>>) -> (i32, i32, i32) {
    %c0 = arith.constant 0 : index
    %0 = memref.load %arg1[%c0] : memref<1xi32, #tpu.memory_space<smem>>
    %c0_i32 = arith.constant 0 : i32
    %c0_i32_0 = arith.constant 0 : i32
    %c0_i32_1 = arith.constant 0 : i32
    return %0, %c0_i32, %c0_i32_0 : i32, i32, i32
  }
  func.func @transform_1(%arg0: i32, %arg1: memref<1xi32, #tpu.memory_space<smem>>) -> (i32, i32) {
    %c0_i32 = arith.constant 0 : i32
    %c0_i32_0 = arith.constant 0 : i32
    %c0_i32_1 = arith.constant 0 : i32
    return %c0_i32, %c0_i32_0 : i32, i32
  }
  func.func @transform_2(%arg0: i32, %arg1: memref<1xi32, #tpu.memory_space<smem>>) -> (i32, i32) {
    %c0_i32 = arith.constant 0 : i32
    %c0_i32_0 = arith.constant 0 : i32
    %c0_i32_1 = arith.constant 0 : i32
    return %c0_i32, %c0_i32_0 : i32, i32
  }
  func.func @transform_3(%arg0: i32, %arg1: memref<1xi32, #tpu.memory_space<smem>>) -> (i32, i32) {
    %c0_i32 = arith.constant 0 : i32
    %c0_i32_0 = arith.constant 0 : i32
    return %c0_i32, %arg0 : i32, i32
  }
  func.func @transform_4(%arg0: i32, %arg1: memref<1xi32, #tpu.memory_space<smem>>) -> (i32, i32) {
    %c0_i32 = arith.constant 0 : i32
    %c0_i32_0 = arith.constant 0 : i32
    return %c0_i32, %arg0 : i32, i32
  }
  func.func @transform_5(%arg0: i32, %arg1: memref<1xi32, #tpu.memory_space<smem>>) -> (i32, i32) {
    %c0_i32 = arith.constant 0 : i32
    %c0_i32_0 = arith.constant 0 : i32
    return %c0_i32, %arg0 : i32, i32
  }
}

</mosaic_0001>

<bundles_post_ra>
// kernel: rnn_module_forward.1
= control target key start
LH: loop header
LB: loop body
LE: loop exit
PB: predicated region body
PF: predicated region fallthrough
CT: control target
= control target key end

     0   :  { %12 = vsyncpa [#allocation5], 0  ;;  %s5456_s0 = inlined_call_operand.<no memory space> [shape: s32[1], index: 0, kind: input, shape index: {}]   ;;  %s5457_s1 = inlined_call_operand.vmem [shape: bf16[512,1,384], index: 1, kind: input, shape index: {}]   ;;  %s5458_s2 = inlined_call_operand.hbm [shape: bf16[384,1024], index: 2, kind: input, shape index: {}]   ;;  %s5459_s3 = inlined_call_operand.vmem [shape: f32[1,1024], index: 3, kind: input, shape index: {}]   ;;  %s5460_s4 = inlined_call_operand.vmem [shape: bf16[1024,512], index: 4, kind: input, shape index: {}]   ;;  %s5461_s5 = inlined_call_operand.vmem [shape: f32[1,512], index: 5, kind: input, shape index: {}]   ;;  %s5462_s6 = inlined_call_operand.hbm [shape: f32[1,512], index: 6, kind: output, shape index: {}]  }
   0x1   :  { %13 = vsyncpa [#allocation6], 0  ;;  %s4518_s21 = smov [#allocation4]   ;;  %s4470_s25 = scalar_lea.hbm %s5458_s2, 24576 }
   0x2   :  { %s27_s22 = sshll.u32 %s4518_s21, 4  ;;  %p4471_p0 = scmp.ne.s32.totalorder %s5458_s2, %s4470_s25  ;;  %s28_s22 = int_to_ptr.vmem [resolvable:$true] %s27_s22 }
   0x3   :  { %p4474_p1 = scmp.lt.u32.totalorder %s4470_s25, %s5458_s2 }
   0x5   :  { %p4476_p2 = pnand %p4474_p1, %p4471_p0 }
   0x7   :  { %4479 = shalt.err (!%p4476_p2)
}
   0x8   :  { %s4480_s30 = scalar_lea.vmem %s28_s22, 24576  ;;  %p4485_p4 = scmp.lt.s32.totalorder %s28_s22, %s28_s22 }
   0x9   :  { %p4481_p3 = scmp.ne.s32.totalorder %s28_s22, %s4480_s30  ;;  %p4486_p5 = scmp.lt.s32.totalorder %s4480_s30, %s4480_s30 }
   0xb   :  { %p4487_p6 = por %p4486_p5, %p4485_p4 }
   0xd   :  { %p4488_p7 = pnand %p4487_p6, %p4481_p3 }
   0xf   :  { %4491 = shalt.err (!%p4488_p7)
}
  0x10   :  { %s4519_s7 = smov 512   ;;  %s4520_s8 = smov 32  }
  0x11   :  { %33 = dma.hbm_to_vmem [thread:$0]  %s5458_s2, 24576, %s28_s22, [#allocation5], %s4519_s7, %s4519_s7, %s4520_s8  }
  0x12   :  { %4514 = dma.done.wait [#allocation5], 24576  }
  0x13   :  { %4515 = vsyncadd [#allocation5], 4294942720  ;;  %v56_v0 = vld [vmem:[#allocation4] sm:$0xff]  ;;  %p49_p8 = scmp.lt.s32.totalorder %s5456_s0, 511  ;;  %v57_v11 = vld [vmem:[#allocation4 + $0x8] sm:$0xff]  ;;  %v261_v21 = vlaneseq }
  0x14   :  { %v60_v1 = vld [vmem:[#allocation4 + $0x20] sm:$0xff]  ;;  %v61_v12 = vld [vmem:[#allocation4 + $0x28] sm:$0xff]  ;;  %v4521_v19 = vmov 1966171168  }
  0x15   :  { %v64_v2 = vld [vmem:[#allocation4 + $0x40] sm:$0xff]  ;;  %v3564_v3 = vcombine.high %v56_v0, %v60_v1  ;;  %v3563_v4 = vcombine.low %v56_v0, %v60_v1  ;;  %s5464_s0 = smov (!%p49_p8, %s5456_s0), 511  ;;  %v3566_v15 = vcombine.high %v57_v11, %v61_v12  ;;  %v3565_v16 = vcombine.low %v57_v11, %v61_v12  ;;  %v65_v17 = vld [vmem:[#allocation4 + $0x48] sm:$0xff] }
  0x16   :  { %v68_v5 = vld [vmem:[#allocation4 + $0x60] sm:$0xff]  ;;  %v69_v18 = vld [vmem:[#allocation4 + $0x68] sm:$0xff]  ;;  %v259_v20 = vunpack.c.l.s4 %v4521_v19  ;;  %s4063_s14 = smul.u32 3, %s5464_s0  ;;  %v4581_v34 = vshrl.u32 %v261_v21, 7  ;;  %vm3538_vm0 = vcmp.lt.s32.totalorder %v261_v21, 512 }
  0x17   :  { %v3572_v6 = vcombine.high %v64_v2, %v68_v5  ;;  %v72_v7 = vld [vmem:[#allocation4 + $0x80] sm:$0xff]  ;;  %1277 = vmatprep.subr.bf16.mxu0 %v3564_v3  ;;  %v3571_v9 = vcombine.low %v64_v2, %v68_v5  ;;  %1359 = vmatprep.subr.bf16.mxu1 %v3566_v15  ;;  %v3574_v23 = vcombine.high %v65_v17, %v69_v18  ;;  %v73_v24 = vld [vmem:[#allocation4 + $0x88] sm:$0xff] }
  0x18   :  { %v76_v8 = vld [vmem:[#allocation4 + $0xa0] sm:$0xff]  ;;  %1278 = vmatpush1.bf16.msra.mxu0 %v3563_v4  ;;  %v77_v25 = vld [vmem:[#allocation4 + $0xa8] sm:$0xff]  ;;  %1360 = vmatpush1.bf16.msra.mxu1 %v3565_v16  ;;  %v3573_v27 = vcombine.low %v65_v17, %v69_v18  ;;  %v260_v33 = vunpack.c.0.s8 %v259_v20  ;;  %s52_s0 = scalar_lea.vmem %s5457_s1, %s4063_s14 }
  0x19   :  { %1279 = vmatprep.subr.bf16.mxu0 %v3572_v6  ;;  %v3580_v10 = vcombine.high %v72_v7, %v76_v8  ;;  %v80_v13 = vld [vmem:[#allocation4 + $0xc0] sm:$0xff]  ;;  %v3579_v22 = vcombine.low %v72_v7, %v76_v8  ;;  %1361 = vmatprep.subr.bf16.mxu1 %v3574_v23  ;;  %v3582_v30 = vcombine.high %v73_v24, %v77_v25  ;;  %v81_v31 = vld [vmem:[#allocation4 + $0xc8] sm:$0xff] }
  0x1a   :  { %v84_v14 = vld [vmem:[#allocation4 + $0xe0] sm:$0xff]  ;;  %v85_v32 = vld [vmem:[#allocation4 + $0xe8] sm:$0xff]  ;;  %v3581_v37 = vcombine.low %v73_v24, %v77_v25  ;;  %v4587_v43 = vsub.s32 %v260_v33, %v4581_v34 }
  0x1b   :  { %v3588_v26 = vcombine.high %v80_v13, %v84_v14  ;;  %v88_v28 = vld [vmem:[#allocation4 + $0x100] sm:$0xff]  ;;  %v3587_v35 = vcombine.low %v80_v13, %v84_v14  ;;  %v3590_v40 = vcombine.high %v81_v31, %v85_v32  ;;  %v89_v41 = vld [vmem:[#allocation4 + $0x108] sm:$0xff]  ;;  %v3589_v47 = vcombine.low %v81_v31, %v85_v32 }
  0x1c   :  { %1280 = vmatpush1.bf16.msra.mxu0 %v3571_v9  ;;  %v92_v29 = vld [vmem:[#allocation4 + $0x120] sm:$0xff]  ;;  %1362 = vmatpush1.bf16.msra.mxu1 %v3573_v27  ;;  %v93_v42 = vld [vmem:[#allocation4 + $0x128] sm:$0xff] }
  0x1d   :  { %1281 = vmatprep.subr.bf16.mxu0 %v3580_v10  ;;  %v3596_v36 = vcombine.high %v88_v28, %v92_v29  ;;  %v96_v38 = vld [vmem:[#allocation4 + $0x140] sm:$0xff]  ;;  %1363 = vmatprep.subr.bf16.mxu1 %v3582_v30  ;;  %v3595_v44 = vcombine.low %v88_v28, %v92_v29  ;;  %v3598_v51 = vcombine.high %v89_v41, %v93_v42  ;;  %v97_v52 = vld [vmem:[#allocation4 + $0x148] sm:$0xff] }
  0x1e   :  { %v100_v39 = vld [vmem:[#allocation4 + $0x160] sm:$0xff]  ;;  %v101_v53 = vld [vmem:[#allocation4 + $0x168] sm:$0xff]  ;;  %v3597_v57 = vcombine.low %v89_v41, %v93_v42 }
  0x1f   :  { %v4589_v45 = vld.sshfl [vmem:[%s52_s0] sm:$0x13 pattern:$0x75316420]  ;;  %v3604_v46 = vcombine.high %v96_v38, %v100_v39  ;;  %v3603_v55 = vcombine.low %v96_v38, %v100_v39  ;;  %v3606_v60 = vcombine.high %v97_v52, %v101_v53  ;;  %v105_v61 = vld [vmem:[#allocation4 + $0x188] sm:$0xff]  ;;  %v3605_v1 = vcombine.low %v97_v52, %v101_v53 }
  0x20   :  { %1282 = vmatpush1.bf16.msra.mxu0 %v3579_v22  ;;  %1364 = vmatpush1.bf16.msra.mxu1 %v3581_v37  ;;  %v257_v48 = vcombine.high %v4589_v45, %v4589_v45  ;;  %v104_v49 = vld [vmem:[#allocation4 + $0x180] sm:$0xff]  ;;  %v109_v62 = vld [vmem:[#allocation4 + $0x1a8] sm:$0xff] }
  0x21   :  { %1283 = vmatprep.subr.bf16.mxu0 %v3588_v26  ;;  %v108_v50 = vld [vmem:[#allocation4 + $0x1a0] sm:$0xff]  ;;  %1365 = vmatprep.subr.bf16.mxu1 %v3590_v40  ;;  %v3614_v4 = vcombine.high %v105_v61, %v109_v62  ;;  %v113_v5 = vld [vmem:[#allocation4 + $0x1c8] sm:$0xff]  ;;  %v3613_v9 = vcombine.low %v105_v61, %v109_v62 }
  0x22   :  { %v4594_v54 = vrot.slane %v257_v48, %v4587_v43  ;;  %v3612_v56 = vcombine.high %v104_v49, %v108_v50  ;;  %v112_v58 = vld [vmem:[#allocation4 + $0x1c0] sm:$0xff]  ;;  %v3611_v63 = vcombine.low %v104_v49, %v108_v50  ;;  %v117_v6 = vld [vmem:[#allocation4 + $0x1e8] sm:$0xff] }
  0x23   :  { %v116_v59 = vld [vmem:[#allocation4 + $0x1e0] sm:$0xff]  ;;  %v3622_v12 = vcombine.high %v113_v5, %v117_v6  ;;  %v121_v13 = vld [vmem:[#allocation4 + $0x208] sm:$0xff]  ;;  %v3621_v17 = vcombine.low %v113_v5, %v117_v6 }
  0x24   :  { %1284 = vmatpush1.bf16.msra.mxu0 %v3587_v35  ;;  %1366 = vmatpush1.bf16.msra.mxu1 %v3589_v47  ;;  %v3620_v0 = vcombine.high %v112_v58, %v116_v59  ;;  %v120_v2 = vld [vmem:[#allocation4 + $0x200] sm:$0xff]  ;;  %v3619_v7 = vcombine.low %v112_v58, %v116_v59  ;;  %v125_v14 = vld [vmem:[#allocation4 + $0x228] sm:$0xff] }
  0x25   :  { %1285 = vmatprep.subr.bf16.mxu0 %v3596_v36  ;;  %1367 = vmatprep.subr.bf16.mxu1 %v3598_v51  ;;  %v124_v3 = vld [vmem:[#allocation4 + $0x220] sm:$0xff]  ;;  %v3630_v20 = vcombine.high %v121_v13, %v125_v14  ;;  %v129_v22 = vld [vmem:[#allocation4 + $0x248] sm:$0xff]  ;;  %v3629_v26 = vcombine.low %v121_v13, %v125_v14 }
  0x26   :  { %1309 = vmatprep.mubr.bf16.mxu0 %v4594_v54  ;;  %1391 = vmatprep.mubr.bf16.mxu1 %v4594_v54  ;;  %v3628_v8 = vcombine.high %v120_v2, %v124_v3  ;;  %v128_v10 = vld [vmem:[#allocation4 + $0x240] sm:$0xff]  ;;  %v3627_v15 = vcombine.low %v120_v2, %v124_v3  ;;  %v133_v23 = vld [vmem:[#allocation4 + $0x268] sm:$0xff] }
  0x27   :  { %v132_v11 = vld [vmem:[#allocation4 + $0x260] sm:$0xff]  ;;  %v3638_v29 = vcombine.high %v129_v22, %v133_v23  ;;  %v137_v30 = vld [vmem:[#allocation4 + $0x288] sm:$0xff]  ;;  %v3637_v35 = vcombine.low %v129_v22, %v133_v23 }
  0x28   :  { %1286 = vmatpush1.bf16.msra.mxu0 %v3595_v44  ;;  %1368 = vmatpush1.bf16.msra.mxu1 %v3597_v57  ;;  %v3636_v16 = vcombine.high %v128_v10, %v132_v11  ;;  %v136_v18 = vld [vmem:[#allocation4 + $0x280] sm:$0xff]  ;;  %v3635_v24 = vcombine.low %v128_v10, %v132_v11  ;;  %v141_v31 = vld [vmem:[#allocation4 + $0x2a8] sm:$0xff] }
  0x29   :  { %1287 = vmatprep.subr.bf16.mxu0 %v3604_v46  ;;  %1369 = vmatprep.subr.bf16.mxu1 %v3606_v60  ;;  %v140_v19 = vld [vmem:[#allocation4 + $0x2a0] sm:$0xff]  ;;  %v3646_v38 = vcombine.high %v137_v30, %v141_v31  ;;  %v145_v39 = vld [vmem:[#allocation4 + $0x2c8] sm:$0xff]  ;;  %v3645_v44 = vcombine.low %v137_v30, %v141_v31  ;;  %v4522_v31 = vmov 0  }
  0x2a   :  { %v3644_v25 = vcombine.high %v136_v18, %v140_v19  ;;  %v144_v27 = vld [vmem:[#allocation4 + $0x2c0] sm:$0xff]  ;;  %v3643_v32 = vcombine.low %v136_v18, %v140_v19  ;;  %v149_v40 = vld [vmem:[#allocation4 + $0x2e8] sm:$0xff] }
  0x2b   :  { %v148_v28 = vld [vmem:[#allocation4 + $0x2e0] sm:$0xff]  ;;  %v3654_v48 = vcombine.high %v145_v39, %v149_v40  ;;  %v153_v49 = vld [vmem:[#allocation4 + $0x308] sm:$0xff]  ;;  %v3653_v53 = vcombine.low %v145_v39, %v149_v40 }
  0x2c   :  { %1288 = vmatpush1.bf16.msra.mxu0 %v3603_v55  ;;  %1370 = vmatpush1.bf16.msra.mxu1 %v3605_v1  ;;  %v3652_v33 = vcombine.high %v144_v27, %v148_v28  ;;  %v152_v36 = vld [vmem:[#allocation4 + $0x300] sm:$0xff]  ;;  %v3651_v41 = vcombine.low %v144_v27, %v148_v28  ;;  %v157_v50 = vld [vmem:[#allocation4 + $0x328] sm:$0xff] }
  0x2d   :  { %1289 = vmatprep.subr.bf16.mxu0 %v3612_v56  ;;  %1371 = vmatprep.subr.bf16.mxu1 %v3614_v4  ;;  %v156_v37 = vld [vmem:[#allocation4 + $0x320] sm:$0xff]  ;;  %v3662_v57 = vcombine.high %v153_v49, %v157_v50  ;;  %v161_v58 = vld [vmem:[#allocation4 + $0x348] sm:$0xff]  ;;  %v3661_v62 = vcombine.low %v153_v49, %v157_v50 }
  0x2e   :  { %v3660_v42 = vcombine.high %v152_v36, %v156_v37  ;;  %v160_v46 = vld [vmem:[#allocation4 + $0x340] sm:$0xff]  ;;  %v3659_v51 = vcombine.low %v152_v36, %v156_v37  ;;  %v165_v59 = vld [vmem:[#allocation4 + $0x368] sm:$0xff] }
  0x2f   :  { %v164_v47 = vld [vmem:[#allocation4 + $0x360] sm:$0xff]  ;;  %v3670_v1 = vcombine.high %v161_v58, %v165_v59  ;;  %v169_v2 = vld [vmem:[#allocation4 + $0x388] sm:$0xff] }
  0x30   :  { %1290 = vmatpush1.bf16.msra.mxu0 %v3611_v63  ;;  %1372 = vmatpush1.bf16.msra.mxu1 %v3613_v9  ;;  %v3668_v52 = vcombine.high %v160_v46, %v164_v47  ;;  %v168_v55 = vld [vmem:[#allocation4 + $0x380] sm:$0xff]  ;;  %v3667_v60 = vcombine.low %v160_v46, %v164_v47  ;;  %v173_v3 = vld [vmem:[#allocation4 + $0x3a8] sm:$0xff] }
  0x31   :  { %1291 = vmatprep.subr.bf16.mxu0 %v3620_v0  ;;  %1373 = vmatprep.subr.bf16.mxu1 %v3622_v12  ;;  %v172_v56 = vld [vmem:[#allocation4 + $0x3a0] sm:$0xff]  ;;  %v3678_v9 = vcombine.high %v169_v2, %v173_v3  ;;  %v177_v10 = vld [vmem:[#allocation4 + $0x3c8] sm:$0xff] }
  0x32   :  { %v3676_v61 = vcombine.high %v168_v55, %v172_v56  ;;  %v176_v63 = vld [vmem:[#allocation4 + $0x3c0] sm:$0xff]  ;;  %v3675_v4 = vcombine.low %v168_v55, %v172_v56  ;;  %v181_v11 = vld [vmem:[#allocation4 + $0x3e8] sm:$0xff] }
  0x33   :  { %v180_v0 = vld [vmem:[#allocation4 + $0x3e0] sm:$0xff]  ;;  %v185_v18 = vld [vmem:[#allocation4 + $0x408] sm:$0xff] }
  0x34   :  { %1292 = vmatpush1.bf16.msra.mxu0 %v3619_v7  ;;  %1374 = vmatpush1.bf16.msra.mxu1 %v3621_v17  ;;  %v184_v5 = vld [vmem:[#allocation4 + $0x400] sm:$0xff]  ;;  %v3684_v7 = vcombine.high %v176_v63, %v180_v0  ;;  %v3683_v12 = vcombine.low %v176_v63, %v180_v0  ;;  %v3686_v17 = vcombine.high %v177_v10, %v181_v11  ;;  %v189_v19 = vld [vmem:[#allocation4 + $0x428] sm:$0xff] }
  0x35   :  { %1293 = vmatprep.subr.bf16.mxu0 %v3628_v8  ;;  %1375 = vmatprep.subr.bf16.mxu1 %v3630_v20  ;;  %v188_v6 = vld [vmem:[#allocation4 + $0x420] sm:$0xff]  ;;  %v3669_v8 = vcombine.low %v161_v58, %v165_v59  ;;  %v4600_v20 = vrot.slane %v4589_v45, %v4587_v43  ;;  %v3694_v27 = vcombine.high %v185_v18, %v189_v19  ;;  %v193_v28 = vld [vmem:[#allocation4 + $0x448] sm:$0xff] }
  0x36   :  { %v192_v13 = vld [vmem:[#allocation4 + $0x440] sm:$0xff]  ;;  %v3691_v22 = vcombine.low %v184_v5, %v188_v6  ;;  %v201_v37 = vld [vmem:[#allocation4 + $0x488] sm:$0xff] }
  0x37   :  { %v196_v14 = vld [vmem:[#allocation4 + $0x460] sm:$0xff]  ;;  %v209_v47 = vld [vmem:[#allocation4 + $0x4c8] sm:$0xff] }
  0x38   :  { %1294 = vmatpush1.bf16.msra.mxu0 %v3627_v15  ;;  %1376 = vmatpush1.bf16.msra.mxu1 %v3629_v26  ;;  %v3692_v15 = vcombine.high %v184_v5, %v188_v6  ;;  %v3700_v23 = vcombine.high %v192_v13, %v196_v14  ;;  %v204_v26 = vld [vmem:[#allocation4 + $0x4a0] sm:$0xff]  ;;  %v3699_v30 = vcombine.low %v192_v13, %v196_v14  ;;  %v217_v55 = vld [vmem:[#allocation4 + $0x508] sm:$0xff]  ;;  %v62_v13 = vld [vmem:[#allocation4 + $0x30] sm:$0xff] }
  0x39   :  { %1295 = vmatprep.subr.bf16.mxu0 %v3636_v16  ;;  %1377 = vmatprep.subr.bf16.mxu1 %v3638_v29  ;;  %v3677_v16 = vcombine.low %v169_v2, %v173_v3  ;;  %v197_v29 = vld [vmem:[#allocation4 + $0x468] sm:$0xff]  ;;  %v244_v5 = vld [vmem:[#allocation4 + $0x5e0] sm:$0xff] }
  0x3a   :  { %v3702_v36 = vcombine.high %v193_v28, %v197_v29  ;;  %v225_v63 = vld [vmem:[#allocation4 + $0x548] sm:$0xff] }
  0x3c   :  { %1296 = vmatpush1.bf16.msra.mxu0 %v3635_v24  ;;  %1378 = vmatpush1.bf16.msra.mxu1 %v3637_v35  ;;  %v3685_v24 = vcombine.low %v177_v10, %v181_v11  ;;  %v212_v35 = vld [vmem:[#allocation4 + $0x4e0] sm:$0xff] }
  0x3d   :  { %1297 = vmatprep.subr.bf16.mxu0 %v3644_v25  ;;  %1379 = vmatprep.subr.bf16.mxu1 %v3646_v38  ;;  %v200_v25 = vld [vmem:[#allocation4 + $0x480] sm:$0xff]  ;;  %v205_v38 = vld [vmem:[#allocation4 + $0x4a8] sm:$0xff] }
  0x3e   :  { %v3708_v45 = vcombine.high %v200_v25, %v204_v26  ;;  %v3707_v39 = vcombine.low %v200_v25, %v204_v26  ;;  %v3710_v46 = vcombine.high %v201_v37, %v205_v38  ;;  %v59_v25 = vld [vmem:[#allocation4 + $0x18] sm:$0xff] }
  0x40   :  { %1298 = vmatpush1.bf16.msra.mxu0 %v3643_v32  ;;  %1380 = vmatpush1.bf16.msra.mxu1 %v3645_v44  ;;  %v3693_v32 = vcombine.low %v185_v18, %v189_v19  ;;  %v3701_v44 = vcombine.low %v193_v28, %v197_v29  ;;  %v4608_v28 = vcombine.high %v4600_v20, %v4600_v20 }
  0x41   :  { %1299 = vmatprep.subr.bf16.mxu0 %v3652_v33  ;;  %1381 = vmatprep.subr.bf16.mxu1 %v3654_v48  ;;  %v208_v33 = vld [vmem:[#allocation4 + $0x4c0] sm:$0xff]  ;;  %v213_v48 = vld [vmem:[#allocation4 + $0x4e8] sm:$0xff] }
  0x42   :  { %v3716_v40 = vcombine.high %v208_v33, %v212_v35  ;;  %v3715_v49 = vcombine.low %v208_v33, %v212_v35  ;;  %v3718_v56 = vcombine.high %v209_v47, %v213_v48  ;;  %v67_v35 = vld [vmem:[#allocation4 + $0x58] sm:$0xff] }
  0x44   :  { %1300 = vmatpush1.bf16.msra.mxu0 %v3651_v41  ;;  %1382 = vmatpush1.bf16.msra.mxu1 %v3653_v53  ;;  %v216_v41 = vld [vmem:[#allocation4 + $0x500] sm:$0xff]  ;;  %v3709_v53 = vcombine.low %v201_v37, %v205_v38  ;;  %v71_v37 = vld [vmem:[#allocation4 + $0x78] sm:$0xff] }
  0x45   :  { %1301 = vmatprep.subr.bf16.mxu0 %v3660_v42  ;;  %1383 = vmatprep.subr.bf16.mxu1 %v3662_v57  ;;  %v220_v42 = vld [vmem:[#allocation4 + $0x520] sm:$0xff]  ;;  %v221_v57 = vld [vmem:[#allocation4 + $0x528] sm:$0xff] }
  0x46   :  { %v3724_v50 = vcombine.high %v216_v41, %v220_v42  ;;  %v3723_v58 = vcombine.low %v216_v41, %v220_v42  ;;  %v3726_v0 = vcombine.high %v217_v55, %v221_v57  ;;  %v3725_v6 = vcombine.low %v217_v55, %v221_v57  ;;  %v86_v41 = vld [vmem:[#allocation4 + $0xf0] sm:$0xff] }
  0x48   :  { %1302 = vmatpush1.bf16.msra.mxu0 %v3659_v51  ;;  %1384 = vmatpush1.bf16.msra.mxu1 %v3661_v62  ;;  %v224_v51 = vld [vmem:[#allocation4 + $0x540] sm:$0xff]  ;;  %v3717_v62 = vcombine.low %v209_v47, %v213_v48  ;;  %v79_v47 = vld [vmem:[#allocation4 + $0xb8] sm:$0xff] }
  0x49   :  { %1303 = vmatprep.subr.bf16.mxu0 %v3668_v52  ;;  %1385 = vmatprep.subr.bf16.mxu1 %v3670_v1  ;;  %v228_v52 = vld [vmem:[#allocation4 + $0x560] sm:$0xff]  ;;  %v229_v1 = vld [vmem:[#allocation4 + $0x568] sm:$0xff] }
  0x4a   :  { %v3732_v59 = vcombine.high %v224_v51, %v228_v52  ;;  %v3731_v2 = vcombine.low %v224_v51, %v228_v52  ;;  %v3733_v14 = vcombine.low %v225_v63, %v229_v1  ;;  %v94_v51 = vld [vmem:[#allocation4 + $0x130] sm:$0xff]  ;;  %v3577_v52 = vcombine.low %v67_v35, %v71_v37 }
  0x4c   :  { %1304 = vmatpush1.bf16.msra.mxu0 %v3667_v60  ;;  %1386 = vmatpush1.bf16.msra.mxu1 %v3669_v8  ;;  %v232_v60 = vld [vmem:[#allocation4 + $0x580] sm:$0xff]  ;;  %v3734_v8 = vcombine.high %v225_v63, %v229_v1 }
  0x4d   :  { %1305 = vmatprep.subr.bf16.mxu0 %v3676_v61  ;;  %1387 = vmatprep.subr.bf16.mxu1 %v3678_v9  ;;  %v236_v61 = vld [vmem:[#allocation4 + $0x5a0] sm:$0xff]  ;;  %v237_v9 = vld [vmem:[#allocation4 + $0x5a8] sm:$0xff] }
  0x4e   :  { %v3740_v3 = vcombine.high %v232_v60, %v236_v61  ;;  %v3739_v10 = vcombine.low %v232_v60, %v236_v61  ;;  %v102_v60 = vld [vmem:[#allocation4 + $0x170] sm:$0xff] }
  0x50   :  { %1306 = vmatpush1.bf16.msra.mxu0 %v3675_v4  ;;  %1388 = vmatpush1.bf16.msra.mxu1 %v3677_v16  ;;  %v240_v4 = vld [vmem:[#allocation4 + $0x5c0] sm:$0xff] }
  0x51   :  { %1307 = vmatprep.subr.bf16.mxu0 %v3684_v7  ;;  %1389 = vmatprep.subr.bf16.mxu1 %v3686_v17  ;;  %v233_v7 = vld [vmem:[#allocation4 + $0x588] sm:$0xff]  ;;  %v3748_v11 = vcombine.high %v240_v4, %v244_v5  ;;  %v3747_v18 = vcombine.low %v240_v4, %v244_v5  ;;  %v110_v4 = vld [vmem:[#allocation4 + $0x1b0] sm:$0xff]  ;;  %v99_v5 = vld [vmem:[#allocation4 + $0x158] sm:$0xff] }
  0x52   :  { %v3742_v16 = vcombine.high %v233_v7, %v237_v9  ;;  %v245_v17 = vld [vmem:[#allocation4 + $0x5e8] sm:$0xff] }
  0x54   :  { %1308 = vmatpush1.bf16.msra.mxu0 %v3683_v12  ;;  %1390 = vmatpush1.bf16.msra.mxu1 %v3685_v24  ;;  %v58_v12 = vld [vmem:[#allocation4 + $0x10] sm:$0xff]  ;;  %v3741_v24 = vcombine.low %v233_v7, %v237_v9  ;;  %v103_v7 = vld [vmem:[#allocation4 + $0x178] sm:$0xff] }
  0x55   :  { %1318 = vmatprep.subr.bf16.mxu0 %v3692_v15  ;;  %1400 = vmatprep.subr.bf16.mxu1 %v3694_v27  ;;  %v241_v15 = vld [vmem:[#allocation4 + $0x5c8] sm:$0xff]  ;;  %v3568_v19 = vcombine.high %v58_v12, %v62_v13  ;;  %v63_v27 = vld [vmem:[#allocation4 + $0x38] sm:$0xff]  ;;  %v3567_v29 = vcombine.low %v58_v12, %v62_v13  ;;  %v114_v9 = vld [vmem:[#allocation4 + $0x1d0] sm:$0xff] }
  0x56   :  { %v3750_v26 = vcombine.high %v241_v15, %v245_v17  ;;  %v3749_v33 = vcombine.low %v241_v15, %v245_v17  ;;  %v3569_v42 = vcombine.low %v59_v25, %v63_v27  ;;  %v107_v13 = vld [vmem:[#allocation4 + $0x198] sm:$0xff]  ;;  %v3610_v15 = vcombine.high %v99_v5, %v103_v7  ;;  %v122_v17 = vld [vmem:[#allocation4 + $0x210] sm:$0xff] }
  0x57   :  { %1310 = vmatmul.mubr.bf16.vlgmr.msra.gmra.mrb[0].mxu0 %v4600_v20  ;;  %1392 = vmatmul.mubr.bf16.vlgmr.msra.gmra.mrb[0].mxu1 %v4600_v20 }
  0x58   :  { %1319 = vmatpush1.bf16.msra.mxu0 %v3691_v22  ;;  %1350 = vmatprep.mubr.bf16.mxu0 %v4522_v31  ;;  %v66_v22 = vld [vmem:[#allocation4 + $0x50] sm:$0xff] }
  0x59   :  { %1320 = vmatprep.subr.bf16.mxu0 %v3700_v23  ;;  %1401 = vmatpush1.bf16.msra.mxu1 %v3693_v32  ;;  %v70_v23 = vld [vmem:[#allocation4 + $0x70] sm:$0xff] }
  0x5a   :  { %1402 = vmatprep.subr.bf16.mxu1 %v3702_v36  ;;  %1432 = vmatprep.mubr.bf16.mxu1 %v4522_v31  ;;  %v78_v32 = vld [vmem:[#allocation4 + $0xb0] sm:$0xff]  ;;  %v3570_v36 = vcombine.high %v59_v25, %v63_v27  ;;  %v3575_v38 = vcombine.low %v66_v22, %v70_v23 }
  0x5b   :  { %v130_v27 = vld [vmem:[#allocation4 + $0x250] sm:$0xff] }
  0x5c   :  { %1321 = vmatpush1.bf16.msra.mxu0 %v3699_v30  ;;  %v3576_v30 = vcombine.high %v66_v22, %v70_v23  ;;  %v3609_v22 = vcombine.low %v99_v5, %v103_v7  ;;  %v115_v23 = vld [vmem:[#allocation4 + $0x1d8] sm:$0xff]  ;;  %v170_v7 = vld [vmem:[#allocation4 + $0x390] sm:$0xff] }
  0x5d   :  { %1322 = vmatprep.subr.bf16.mxu0 %v3708_v45  ;;  %1403 = vmatpush1.bf16.msra.mxu1 %v3701_v44  ;;  %v74_v45 = vld [vmem:[#allocation4 + $0x90] sm:$0xff]  ;;  %v75_v44 = vld [vmem:[#allocation4 + $0x98] sm:$0xff] }
  0x5e   :  { %1404 = vmatprep.subr.bf16.mxu1 %v3710_v46  ;;  %v3578_v46 = vcombine.high %v67_v35, %v71_v37  ;;  %v3583_v48 = vcombine.low %v74_v45, %v78_v32  ;;  %v3586_v55 = vcombine.high %v75_v44, %v79_v47  ;;  %v3585_v61 = vcombine.low %v75_v44, %v79_v47  ;;  %v138_v37 = vld [vmem:[#allocation4 + $0x290] sm:$0xff] }
  0x5f   :  { %v146_v47 = vld [vmem:[#allocation4 + $0x2d0] sm:$0xff] }
  0x60   :  { %1323 = vmatpush1.bf16.msra.mxu0 %v3707_v39  ;;  %v3584_v39 = vcombine.high %v74_v45, %v78_v32  ;;  %v123_v32 = vld [vmem:[#allocation4 + $0x218] sm:$0xff] }
  0x61   :  { %1324 = vmatprep.subr.bf16.mxu0 %v3716_v40  ;;  %1405 = vmatpush1.bf16.msra.mxu1 %v3709_v53  ;;  %v82_v40 = vld [vmem:[#allocation4 + $0xd0] sm:$0xff]  ;;  %v83_v53 = vld [vmem:[#allocation4 + $0xd8] sm:$0xff] }
  0x62   :  { %1406 = vmatprep.subr.bf16.mxu1 %v3718_v56  ;;  %v87_v56 = vld [vmem:[#allocation4 + $0xf8] sm:$0xff]  ;;  %v3591_v57 = vcombine.low %v82_v40, %v86_v41 }
  0x63   :  { %v3594_v63 = vcombine.high %v83_v53, %v87_v56 }
  0x64   :  { %1325 = vmatpush1.bf16.msra.mxu0 %v3715_v49  ;;  %v3592_v49 = vcombine.high %v82_v40, %v86_v41  ;;  %v131_v41 = vld [vmem:[#allocation4 + $0x258] sm:$0xff] }
  0x65   :  { %1326 = vmatprep.subr.bf16.mxu0 %v3724_v50  ;;  %1407 = vmatpush1.bf16.msra.mxu1 %v3717_v62  ;;  %v90_v50 = vld [vmem:[#allocation4 + $0x110] sm:$0xff]  ;;  %v91_v62 = vld [vmem:[#allocation4 + $0x118] sm:$0xff] }
  0x66   :  { %1408 = vmatprep.subr.bf16.mxu1 %v3726_v0  ;;  %v95_v0 = vld [vmem:[#allocation4 + $0x138] sm:$0xff]  ;;  %v3599_v1 = vcombine.low %v90_v50, %v94_v51 }
  0x67   :  { %v3601_v12 = vcombine.low %v91_v62, %v95_v0 }
  0x68   :  { %1327 = vmatpush1.bf16.msra.mxu0 %v3723_v58  ;;  %v3600_v58 = vcombine.high %v90_v50, %v94_v51  ;;  %v139_v51 = vld [vmem:[#allocation4 + $0x298] sm:$0xff] }
  0x69   :  { %1328 = vmatprep.subr.bf16.mxu0 %v3732_v59  ;;  %1409 = vmatpush1.bf16.msra.mxu1 %v3725_v6  ;;  %v98_v59 = vld [vmem:[#allocation4 + $0x150] sm:$0xff]  ;;  %v3602_v6 = vcombine.high %v91_v62, %v95_v0 }
  0x6a   :  { %1410 = vmatprep.subr.bf16.mxu1 %v3734_v8  ;;  %v3607_v8 = vcombine.low %v98_v59, %v102_v60  ;;  %v162_v0 = vld [vmem:[#allocation4 + $0x350] sm:$0xff] }
  0x6c   :  { %1329 = vmatpush1.bf16.msra.mxu0 %v3731_v2  ;;  %v3608_v2 = vcombine.high %v98_v59, %v102_v60  ;;  %v147_v60 = vld [vmem:[#allocation4 + $0x2d8] sm:$0xff] }
  0x6d   :  { %1330 = vmatprep.subr.bf16.mxu0 %v3740_v3  ;;  %1411 = vmatpush1.bf16.msra.mxu1 %v3733_v14  ;;  %v106_v3 = vld [vmem:[#allocation4 + $0x190] sm:$0xff]  ;;  %v111_v14 = vld [vmem:[#allocation4 + $0x1b8] sm:$0xff] }
  0x6e   :  { %1412 = vmatprep.subr.bf16.mxu1 %v3742_v16  ;;  %v3615_v16 = vcombine.low %v106_v3, %v110_v4  ;;  %v3618_v25 = vcombine.high %v107_v13, %v111_v14  ;;  %v3617_v45 = vcombine.low %v107_v13, %v111_v14 }
  0x70   :  { %1331 = vmatpush1.bf16.msra.mxu0 %v3739_v10  ;;  %v118_v10 = vld [vmem:[#allocation4 + $0x1f0] sm:$0xff] }
  0x71   :  { %1332 = vmatprep.subr.bf16.mxu0 %v3748_v11  ;;  %1413 = vmatpush1.bf16.msra.mxu1 %v3741_v24  ;;  %v3616_v11 = vcombine.high %v106_v3, %v110_v4  ;;  %v119_v24 = vld [vmem:[#allocation4 + $0x1f8] sm:$0xff] }
  0x72   :  { %1414 = vmatprep.subr.bf16.mxu1 %v3750_v26  ;;  %v3623_v26 = vcombine.low %v114_v9, %v118_v10  ;;  %v3626_v35 = vcombine.high %v115_v23, %v119_v24  ;;  %v3625_v40 = vcombine.low %v115_v23, %v119_v24  ;;  %v155_v4 = vld [vmem:[#allocation4 + $0x318] sm:$0xff] }
  0x74   :  { %1333 = vmatpush1.bf16.msra.mxu0 %v3747_v18  ;;  %v126_v18 = vld [vmem:[#allocation4 + $0x230] sm:$0xff] }
  0x75   :  { %1441 = vmatprep.subr.bf16.mxu0 %v3568_v19  ;;  %1415 = vmatpush1.bf16.msra.mxu1 %v3749_v33  ;;  %v3624_v19 = vcombine.high %v114_v9, %v118_v10  ;;  %v127_v33 = vld [vmem:[#allocation4 + $0x238] sm:$0xff] }
  0x76   :  { %1523 = vmatprep.subr.bf16.mxu1 %v3570_v36  ;;  %v3631_v36 = vcombine.low %v122_v17, %v126_v18  ;;  %v3634_v44 = vcombine.high %v123_v32, %v127_v33  ;;  %v3633_v50 = vcombine.low %v123_v32, %v127_v33 }
  0x77   :  { %1351 = vmatmul.mubr.bf16.vlgmr.msra.gmra.mrb[0].mxu0 %v4608_v28 }
  0x78   :  { %1442 = vmatpush1.bf16.msra.mxu0 %v3567_v29  ;;  %1473 = vmatprep.mubr.bf16.mxu0 %v4594_v54  ;;  %v134_v29 = vld [vmem:[#allocation4 + $0x270] sm:$0xff] }
  0x79   :  { %1443 = vmatprep.subr.bf16.mxu0 %v3576_v30  ;;  %1433 = vmatmul.mubr.bf16.vlgmr.msra.gmra.mrb[0].mxu1 %v4608_v28  ;;  %v3632_v30 = vcombine.high %v122_v17, %v126_v18 }
  0x7a   :  { %1524 = vmatpush1.bf16.msra.mxu1 %v3569_v42  ;;  %1555 = vmatprep.mubr.bf16.mxu1 %v4594_v54  ;;  %v3593_v54 = vcombine.low %v83_v53, %v87_v56  ;;  %v135_v42 = vld [vmem:[#allocation4 + $0x278] sm:$0xff]  ;;  %v154_v56 = vld [vmem:[#allocation4 + $0x310] sm:$0xff] }
  0x7b   :  { %1525 = vmatprep.subr.bf16.mxu1 %v3578_v46  ;;  %v3639_v46 = vcombine.low %v130_v27, %v134_v29  ;;  %v3642_v53 = vcombine.high %v131_v41, %v135_v42  ;;  %v3641_v59 = vcombine.low %v131_v41, %v135_v42 }
  0x7c   :  { %1444 = vmatpush1.bf16.msra.mxu0 %v3575_v38  ;;  %v142_v38 = vld [vmem:[#allocation4 + $0x2b0] sm:$0xff] }
  0x7d   :  { %1445 = vmatprep.subr.bf16.mxu0 %v3584_v39  ;;  %v3640_v39 = vcombine.high %v130_v27, %v134_v29 }
  0x7e   :  { %1526 = vmatpush1.bf16.msra.mxu1 %v3577_v52  ;;  %v143_v52 = vld [vmem:[#allocation4 + $0x2b8] sm:$0xff] }
  0x7f   :  { %1527 = vmatprep.subr.bf16.mxu1 %v3586_v55  ;;  %v3647_v55 = vcombine.low %v138_v37, %v142_v38  ;;  %v3650_v62 = vcombine.high %v139_v51, %v143_v52  ;;  %v3649_v3 = vcombine.low %v139_v51, %v143_v52 }
  0x80   :  { %1446 = vmatpush1.bf16.msra.mxu0 %v3583_v48  ;;  %v150_v48 = vld [vmem:[#allocation4 + $0x2f0] sm:$0xff] }
  0x81   :  { %1447 = vmatprep.subr.bf16.mxu0 %v3592_v49  ;;  %v3648_v49 = vcombine.high %v138_v37, %v142_v38 }
  0x82   :  { %1528 = vmatpush1.bf16.msra.mxu1 %v3585_v61  ;;  %v151_v61 = vld [vmem:[#allocation4 + $0x2f8] sm:$0xff] }
  0x83   :  { %1529 = vmatprep.subr.bf16.mxu1 %v3594_v63  ;;  %v3655_v63 = vcombine.low %v146_v47, %v150_v48  ;;  %v3658_v5 = vcombine.high %v147_v60, %v151_v61  ;;  %v3657_v10 = vcombine.low %v147_v60, %v151_v61  ;;  %v207_v60 = vld [vmem:[#allocation4 + $0x4b8] sm:$0xff] }
  0x84   :  { %1448 = vmatpush1.bf16.msra.mxu0 %v3591_v57  ;;  %v158_v57 = vld [vmem:[#allocation4 + $0x330] sm:$0xff] }
  0x85   :  { %1449 = vmatprep.subr.bf16.mxu0 %v3600_v58  ;;  %v3656_v58 = vcombine.high %v146_v47, %v150_v48 }
  0x86   :  { %1530 = vmatpush1.bf16.msra.mxu1 %v3593_v54  ;;  %v159_v54 = vld [vmem:[#allocation4 + $0x338] sm:$0xff] }
  0x87   :  { %1531 = vmatprep.subr.bf16.mxu1 %v3602_v6  ;;  %v3663_v6 = vcombine.low %v154_v56, %v158_v57  ;;  %v3666_v13 = vcombine.high %v155_v4, %v159_v54  ;;  %v3665_v18 = vcombine.low %v155_v4, %v159_v54  ;;  %v215_v4 = vld [vmem:[#allocation4 + $0x4f8] sm:$0xff] }
  0x88   :  { %1450 = vmatpush1.bf16.msra.mxu0 %v3599_v1  ;;  %v166_v1 = vld [vmem:[#allocation4 + $0x370] sm:$0xff] }
  0x89   :  { %1451 = vmatprep.subr.bf16.mxu0 %v3608_v2  ;;  %v3664_v2 = vcombine.high %v154_v56, %v158_v57  ;;  %v3672_v9 = vcombine.high %v162_v0, %v166_v1  ;;  %v3671_v14 = vcombine.low %v162_v0, %v166_v1  ;;  %v210_v56 = vld [vmem:[#allocation4 + $0x4d0] sm:$0xff] }
  0x8a   :  { %1532 = vmatpush1.bf16.msra.mxu1 %v3601_v12  ;;  %v167_v12 = vld [vmem:[#allocation4 + $0x378] sm:$0xff]  ;;  %v214_v57 = vld [vmem:[#allocation4 + $0x4f0] sm:$0xff] }
  0x8b   :  { %1533 = vmatprep.subr.bf16.mxu1 %v3610_v15  ;;  %v178_v15 = vld [vmem:[#allocation4 + $0x3d0] sm:$0xff]  ;;  %v3719_v54 = vcombine.low %v210_v56, %v214_v57 }
  0x8c   :  { %1452 = vmatpush1.bf16.msra.mxu0 %v3607_v8  ;;  %v174_v8 = vld [vmem:[#allocation4 + $0x3b0] sm:$0xff] }
  0x8d   :  { %1453 = vmatprep.subr.bf16.mxu0 %v3616_v11  ;;  %v163_v11 = vld [vmem:[#allocation4 + $0x358] sm:$0xff]  ;;  %v3680_v17 = vcombine.high %v170_v7, %v174_v8  ;;  %v3679_v24 = vcombine.low %v170_v7, %v174_v8  ;;  %v218_v0 = vld [vmem:[#allocation4 + $0x510] sm:$0xff] }
  0x8e   :  { %1534 = vmatpush1.bf16.msra.mxu1 %v3609_v22  ;;  %v175_v22 = vld [vmem:[#allocation4 + $0x3b8] sm:$0xff]  ;;  %v3674_v23 = vcombine.high %v163_v11, %v167_v12  ;;  %v3673_v29 = vcombine.low %v163_v11, %v167_v12  ;;  %v222_v1 = vld [vmem:[#allocation4 + $0x530] sm:$0xff] }
  0x8f   :  { %1535 = vmatprep.subr.bf16.mxu1 %v3618_v25  ;;  %v186_v25 = vld [vmem:[#allocation4 + $0x410] sm:$0xff]  ;;  %v3727_v11 = vcombine.low %v218_v0, %v222_v1 }
  0x90   :  { %1454 = vmatpush1.bf16.msra.mxu0 %v3615_v16  ;;  %v182_v16 = vld [vmem:[#allocation4 + $0x3f0] sm:$0xff] }
  0x91   :  { %1455 = vmatprep.subr.bf16.mxu0 %v3624_v19  ;;  %v171_v19 = vld [vmem:[#allocation4 + $0x398] sm:$0xff]  ;;  %v3688_v27 = vcombine.high %v178_v15, %v182_v16  ;;  %v3687_v33 = vcombine.low %v178_v15, %v182_v16  ;;  %v226_v7 = vld [vmem:[#allocation4 + $0x550] sm:$0xff] }
  0x92   :  { %1536 = vmatpush1.bf16.msra.mxu1 %v3617_v45  ;;  %v183_v45 = vld [vmem:[#allocation4 + $0x3f8] sm:$0xff]  ;;  %v3682_v32 = vcombine.high %v171_v19, %v175_v22  ;;  %v3681_v38 = vcombine.low %v171_v19, %v175_v22 }
  0x93   :  { %1537 = vmatprep.subr.bf16.mxu1 %v3626_v35  ;;  %v194_v35 = vld [vmem:[#allocation4 + $0x450] sm:$0xff]  ;;  %v227_v16 = vld [vmem:[#allocation4 + $0x558] sm:$0xff] }
  0x94   :  { %1456 = vmatpush1.bf16.msra.mxu0 %v3623_v26  ;;  %v190_v26 = vld [vmem:[#allocation4 + $0x430] sm:$0xff] }
  0x95   :  { %1457 = vmatprep.subr.bf16.mxu0 %v3632_v30  ;;  %v179_v30 = vld [vmem:[#allocation4 + $0x3d8] sm:$0xff]  ;;  %v3696_v37 = vcombine.high %v186_v25, %v190_v26  ;;  %v3695_v42 = vcombine.low %v186_v25, %v190_v26 }
  0x96   :  { %1538 = vmatpush1.bf16.msra.mxu1 %v3625_v40  ;;  %v191_v40 = vld [vmem:[#allocation4 + $0x438] sm:$0xff]  ;;  %v3690_v41 = vcombine.high %v179_v30, %v183_v45  ;;  %v3689_v48 = vcombine.low %v179_v30, %v183_v45 }
  0x97   :  { %1539 = vmatprep.subr.bf16.mxu1 %v3634_v44  ;;  %v202_v44 = vld [vmem:[#allocation4 + $0x490] sm:$0xff]  ;;  %v235_v26 = vld [vmem:[#allocation4 + $0x598] sm:$0xff] }
  0x98   :  { %1458 = vmatpush1.bf16.msra.mxu0 %v3631_v36  ;;  %v198_v36 = vld [vmem:[#allocation4 + $0x470] sm:$0xff] }
  0x99   :  { %1459 = vmatprep.subr.bf16.mxu0 %v3640_v39  ;;  %v187_v39 = vld [vmem:[#allocation4 + $0x418] sm:$0xff]  ;;  %v3704_v47 = vcombine.high %v194_v35, %v198_v36  ;;  %v3703_v52 = vcombine.low %v194_v35, %v198_v36 }
  0x9a   :  { %1540 = vmatpush1.bf16.msra.mxu1 %v3633_v50  ;;  %v199_v50 = vld [vmem:[#allocation4 + $0x478] sm:$0xff]  ;;  %v3698_v51 = vcombine.high %v187_v39, %v191_v40 }
  0x9b   :  { %1541 = vmatprep.subr.bf16.mxu1 %v3642_v53  ;;  %v247_v35 = vld [vmem:[#allocation4 + $0x5f8] sm:$0xff] }
  0x9c   :  { %1460 = vmatpush1.bf16.msra.mxu0 %v3639_v46  ;;  %v206_v46 = vld [vmem:[#allocation4 + $0x4b0] sm:$0xff] }
  0x9d   :  { %1461 = vmatprep.subr.bf16.mxu0 %v3648_v49  ;;  %v195_v49 = vld [vmem:[#allocation4 + $0x458] sm:$0xff]  ;;  %v3712_v53 = vcombine.high %v202_v44, %v206_v46  ;;  %v3711_v61 = vcombine.low %v202_v44, %v206_v46  ;;  %v4076_v46 = vld [vmem:[%s5460_s4 + $0x20] ss:$16 sps:$4 sm:$0xff]  }
  0x9e   :  { %1542 = vmatpush1.bf16.msra.mxu1 %v3641_v59  ;;  %v203_v59 = vld [vmem:[#allocation4 + $0x498] sm:$0xff] }
  0x9f   :  { %1543 = vmatprep.subr.bf16.mxu1 %v3650_v62  ;;  %v3720_v62 = vcombine.high %v210_v56, %v214_v57  ;;  %v4075_v44 = vld [vmem:[%s5460_s4 + $0xc] ss:$16 sps:$4 sm:$0xff]   ;;  %v4096_v56 = vld [vmem:[%s5460_s4 + $0x84] ss:$16 sps:$4 sm:$0xff]  }
  0xa0   :  { %1462 = vmatpush1.bf16.msra.mxu0 %v3647_v55  ;;  %v3697_v55 = vcombine.low %v187_v39, %v191_v40  ;;  %v4070_v40 = vld [vmem:[%s5460_s4] ss:$16 sps:$4 sm:$0xff]   ;;  %v4093_v57 = vld [vmem:[%s5460_s4 + $0x6c] ss:$16 sps:$4 sm:$0xff]  }
  0xa1   :  { %1463 = vmatprep.subr.bf16.mxu0 %v3656_v58  ;;  %v3706_v58 = vcombine.high %v195_v49, %v199_v50 }
  0xa2   :  { %1544 = vmatpush1.bf16.msra.mxu1 %v3649_v3  ;;  %v211_v3 = vld [vmem:[#allocation4 + $0x4d8] sm:$0xff] }
  0xa3   :  { %1545 = vmatprep.subr.bf16.mxu1 %v3658_v5  ;;  %v3728_v5 = vcombine.high %v218_v0, %v222_v1  ;;  %v3722_v8 = vcombine.high %v211_v3, %v215_v4  ;;  %v4108_v0 = vld [vmem:[%s5460_s4 + $0xc4] ss:$16 sps:$4 sm:$0xff]   ;;  %v4105_v1 = vld [vmem:[%s5460_s4 + $0xac] ss:$16 sps:$4 sm:$0xff]  }
  0xa4   :  { %1464 = vmatpush1.bf16.msra.mxu0 %v3655_v63  ;;  %v3705_v63 = vcombine.low %v195_v49, %v199_v50  ;;  %v4081_v49 = vld [vmem:[%s5460_s4 + $0x2c] ss:$16 sps:$4 sm:$0xff]   ;;  %v4082_v50 = vld [vmem:[%s5460_s4 + $0x40] ss:$16 sps:$4 sm:$0xff]  }
  0xa5   :  { %1465 = vmatprep.subr.bf16.mxu0 %v3664_v2  ;;  %v3714_v2 = vcombine.high %v203_v59, %v207_v60 }
  0xa6   :  { %1546 = vmatpush1.bf16.msra.mxu1 %v3657_v10  ;;  %v223_v10 = vld [vmem:[#allocation4 + $0x538] sm:$0xff] }
  0xa7   :  { %1547 = vmatprep.subr.bf16.mxu1 %v3666_v13  ;;  %v234_v13 = vld [vmem:[#allocation4 + $0x590] sm:$0xff] }
  0xa8   :  { %1466 = vmatpush1.bf16.msra.mxu0 %v3663_v6  ;;  %v3713_v6 = vcombine.low %v203_v59, %v207_v60  ;;  %v4091_v59 = vld [vmem:[%s5460_s4 + $0x68] ss:$16 sps:$4 sm:$0xff]   ;;  %v4102_v60 = vld [vmem:[%s5460_s4 + $0xa4] ss:$16 sps:$4 sm:$0xff]  }
  0xa9   :  { %1467 = vmatprep.subr.bf16.mxu0 %v3672_v9  ;;  %v219_v9 = vld [vmem:[#allocation4 + $0x518] sm:$0xff] }
  0xaa   :  { %1548 = vmatpush1.bf16.msra.mxu1 %v3665_v18  ;;  %v3730_v15 = vcombine.high %v219_v9, %v223_v10  ;;  %v3729_v22 = vcombine.low %v219_v9, %v223_v10  ;;  %v4115_v9 = vld [vmem:[%s5460_s4 + $0xe8] ss:$16 sps:$4 sm:$0xff]   ;;  %v4126_v10 = vld [vmem:[%s5460_s4 + $0x124] ss:$16 sps:$4 sm:$0xff]  }
  0xab   :  { %1549 = vmatprep.subr.bf16.mxu1 %v3674_v23  ;;  %v242_v23 = vld [vmem:[#allocation4 + $0x5d0] sm:$0xff] }
  0xac   :  { %1468 = vmatpush1.bf16.msra.mxu0 %v3671_v14  ;;  %v238_v14 = vld [vmem:[#allocation4 + $0x5b0] sm:$0xff] }
  0xad   :  { %1469 = vmatprep.subr.bf16.mxu0 %v3680_v17  ;;  %v231_v17 = vld [vmem:[#allocation4 + $0x578] sm:$0xff]  ;;  %v3744_v19 = vcombine.high %v234_v13, %v238_v14 }
  0xae   :  { %1550 = vmatpush1.bf16.msra.mxu1 %v3673_v29  ;;  %v3738_v25 = vcombine.high %v227_v16, %v231_v17  ;;  %v3743_v29 = vcombine.low %v234_v13, %v238_v14  ;;  %v3737_v45 = vcombine.low %v227_v16, %v231_v17  ;;  %v4132_v13 = vld [vmem:[%s5460_s4 + $0x144] ss:$16 sps:$4 sm:$0xff]   ;;  %v4129_v14 = vld [vmem:[%s5460_s4 + $0x12c] ss:$16 sps:$4 sm:$0xff]   ;;  %v4127_v16 = vld [vmem:[%s5460_s4 + $0x128] ss:$16 sps:$4 sm:$0xff]  }
  0xaf   :  { %1551 = vmatprep.subr.bf16.mxu1 %v3682_v32  ;;  %v4138_v17 = vld [vmem:[%s5460_s4 + $0x164] ss:$16 sps:$4 sm:$0xff]  }
  0xb0   :  { %1470 = vmatpush1.bf16.msra.mxu0 %v3679_v24  ;;  %v246_v24 = vld [vmem:[#allocation4 + $0x5f0] sm:$0xff] }
  0xb1   :  { %1471 = vmatprep.subr.bf16.mxu0 %v3688_v27  ;;  %v239_v27 = vld [vmem:[#allocation4 + $0x5b8] sm:$0xff]  ;;  %v3752_v30 = vcombine.high %v242_v23, %v246_v24  ;;  %v3751_v36 = vcombine.low %v242_v23, %v246_v24  ;;  %v4144_v23 = vld [vmem:[%s5460_s4 + $0x184] ss:$16 sps:$4 sm:$0xff]  }
  0xb2   :  { %1552 = vmatpush1.bf16.msra.mxu1 %v3681_v38  ;;  %v3746_v32 = vcombine.high %v235_v26, %v239_v27  ;;  %v4072_v38 = vld [vmem:[%s5460_s4 + $0x4] ss:$16 sps:$4 sm:$0xff]   ;;  %v4141_v24 = vld [vmem:[%s5460_s4 + $0x16c] ss:$16 sps:$4 sm:$0xff]  }
  0xb3   :  { %1553 = vmatprep.subr.bf16.mxu1 %v3690_v41 }
  0xb4   :  { %1472 = vmatpush1.bf16.msra.mxu0 %v3687_v33  ;;  %v243_v33 = vld [vmem:[#allocation4 + $0x5d8] sm:$0xff] }
  0xb5   :  { %1482 = vmatprep.subr.bf16.mxu0 %v3696_v37  ;;  %v3745_v37 = vcombine.low %v235_v26, %v239_v27  ;;  %v3754_v39 = vcombine.high %v243_v33, %v247_v35  ;;  %v3753_v41 = vcombine.low %v243_v33, %v247_v35  ;;  %v4139_v26 = vld [vmem:[%s5460_s4 + $0x168] ss:$16 sps:$4 sm:$0xff]   ;;  %v4150_v27 = vld [vmem:[%s5460_s4 + $0x1a4] ss:$16 sps:$4 sm:$0xff]   ;;  %v4153_v33 = vld [vmem:[%s5460_s4 + $0x1ac] ss:$16 sps:$4 sm:$0xff]  }
  0xb6   :  { %1554 = vmatpush1.bf16.msra.mxu1 %v3689_v48  ;;  %v4084_v48 = vld [vmem:[%s5460_s4 + $0x44] ss:$16 sps:$4 sm:$0xff]   ;;  %v4154_v35 = vld [vmem:[%s5460_s4 + $0x1c0] ss:$16 sps:$4 sm:$0xff]  }
  0xb7   :  { %1474 = vmatmul.mubr.bf16.vlgmr.msra.gmra.mrb[4].mxu0 %v4600_v20  ;;  %1564 = vmatprep.subr.bf16.mxu1 %v3698_v51  ;;  %v4079_v51 = vld [vmem:[%s5460_s4 + $0x28] ss:$16 sps:$4 sm:$0xff]  }
  0xb8   :  { %1483 = vmatpush1.bf16.msra.mxu0 %v3695_v42  ;;  %1514 = vmatprep.mubr.bf16.mxu0 %v4522_v31  ;;  %v4078_v42 = vld [vmem:[%s5460_s4 + $0x24] ss:$16 sps:$4 sm:$0xff]  }
  0xb9   :  { %1484 = vmatprep.subr.bf16.mxu0 %v3704_v47  ;;  %1556 = vmatmul.mubr.bf16.vlgmr.msra.gmra.mrb[4].mxu1 %v4600_v20  ;;  %v230_v20 = vld [vmem:[#allocation4 + $0x570] sm:$0xff]  ;;  %v4073_v47 = vld [vmem:[%s5460_s4 + $0x8] ss:$16 sps:$4 sm:$0xff]  }
  0xba   :  { %1565 = vmatpush1.bf16.msra.mxu1 %v3697_v55  ;;  %1596 = vmatprep.mubr.bf16.mxu1 %v4522_v31  ;;  %v3736_v12 = vcombine.high %v226_v7, %v230_v20  ;;  %v3721_v31 = vcombine.low %v211_v3, %v215_v4  ;;  %v3735_v18 = vcombine.low %v226_v7, %v230_v20  ;;  %v4085_v55 = vld [vmem:[%s5460_s4 + $0x48] ss:$16 sps:$4 sm:$0xff]   ;;  %v4114_v4 = vld [vmem:[%s5460_s4 + $0xe4] ss:$16 sps:$4 sm:$0xff]   ;;  %v4117_v20 = vld [vmem:[%s5460_s4 + $0xec] ss:$16 sps:$4 sm:$0xff]  }
  0xbb   :  { %1566 = vmatprep.subr.bf16.mxu1 %v3706_v58  ;;  %v4094_v58 = vld [vmem:[%s5460_s4 + $0x80] ss:$16 sps:$4 sm:$0xff]   ;;  %v4103_v3 = vld [vmem:[%s5460_s4 + $0xa8] ss:$16 sps:$4 sm:$0xff]   ;;  %v4120_v7 = vld [vmem:[%s5460_s4 + $0x104] ss:$16 sps:$4 sm:$0xff]  }
  0xbc   :  { %1485 = vmatpush1.bf16.msra.mxu0 %v3703_v52  ;;  %v4090_v52 = vld [vmem:[%s5460_s4 + $0x64] ss:$16 sps:$4 sm:$0xff]  }
  0xbd   :  { %1486 = vmatprep.subr.bf16.mxu0 %v3712_v53  ;;  %v4088_v53 = vld [vmem:[%s5460_s4 + $0x60] ss:$16 sps:$4 sm:$0xff]  }
  0xbe   :  { %1567 = vmatpush1.bf16.msra.mxu1 %v3705_v63  ;;  %v4097_v63 = vld [vmem:[%s5460_s4 + $0x88] ss:$16 sps:$4 sm:$0xff]  }
  0xbf   :  { %1568 = vmatprep.subr.bf16.mxu1 %v3714_v2  ;;  %v4106_v2 = vld [vmem:[%s5460_s4 + $0xc0] ss:$16 sps:$4 sm:$0xff]  }
  0xc0   :  { %1487 = vmatpush1.bf16.msra.mxu0 %v3711_v61  ;;  %v4099_v61 = vld [vmem:[%s5460_s4 + $0x8c] ss:$16 sps:$4 sm:$0xff]  }
  0xc1   :  { %1488 = vmatprep.subr.bf16.mxu0 %v3720_v62  ;;  %v4100_v62 = vld [vmem:[%s5460_s4 + $0xa0] ss:$16 sps:$4 sm:$0xff]  }
  0xc2   :  { %1569 = vmatpush1.bf16.msra.mxu1 %v3713_v6  ;;  %v4109_v6 = vld [vmem:[%s5460_s4 + $0xc8] ss:$16 sps:$4 sm:$0xff]  }
  0xc3   :  { %1570 = vmatprep.subr.bf16.mxu1 %v3722_v8  ;;  %v4118_v8 = vld [vmem:[%s5460_s4 + $0x100] ss:$16 sps:$4 sm:$0xff]  }
  0xc4   :  { %1489 = vmatpush1.bf16.msra.mxu0 %v3719_v54  ;;  %v4111_v54 = vld [vmem:[%s5460_s4 + $0xcc] ss:$16 sps:$4 sm:$0xff]  }
  0xc5   :  { %1490 = vmatprep.subr.bf16.mxu0 %v3728_v5  ;;  %v4112_v5 = vld [vmem:[%s5460_s4 + $0xe0] ss:$16 sps:$4 sm:$0xff]  }
  0xc6   :  { %1571 = vmatpush1.bf16.msra.mxu1 %v3721_v31  ;;  %v4121_v31 = vld [vmem:[%s5460_s4 + $0x108] ss:$16 sps:$4 sm:$0xff]  }
  0xc7   :  { %1572 = vmatprep.subr.bf16.mxu1 %v3730_v15  ;;  %v4130_v15 = vld [vmem:[%s5460_s4 + $0x140] ss:$16 sps:$4 sm:$0xff]  }
  0xc8   :  { %1491 = vmatpush1.bf16.msra.mxu0 %v3727_v11  ;;  %v4123_v11 = vld [vmem:[%s5460_s4 + $0x10c] ss:$16 sps:$4 sm:$0xff]  }
  0xc9   :  { %1492 = vmatprep.subr.bf16.mxu0 %v3736_v12  ;;  %v4124_v12 = vld [vmem:[%s5460_s4 + $0x120] ss:$16 sps:$4 sm:$0xff]  }
  0xca   :  { %1573 = vmatpush1.bf16.msra.mxu1 %v3729_v22  ;;  %v4133_v22 = vld [vmem:[%s5460_s4 + $0x148] ss:$16 sps:$4 sm:$0xff]  }
  0xcb   :  { %1574 = vmatprep.subr.bf16.mxu1 %v3738_v25  ;;  %v4142_v25 = vld [vmem:[%s5460_s4 + $0x180] ss:$16 sps:$4 sm:$0xff]  }
  0xcc   :  { %1493 = vmatpush1.bf16.msra.mxu0 %v3735_v18  ;;  %v4135_v18 = vld [vmem:[%s5460_s4 + $0x14c] ss:$16 sps:$4 sm:$0xff]  }
  0xcd   :  { %1494 = vmatprep.subr.bf16.mxu0 %v3744_v19  ;;  %v4136_v19 = vld [vmem:[%s5460_s4 + $0x160] ss:$16 sps:$4 sm:$0xff]  }
  0xce   :  { %1575 = vmatpush1.bf16.msra.mxu1 %v3737_v45  ;;  %v4145_v45 = vld [vmem:[%s5460_s4 + $0x188] ss:$16 sps:$4 sm:$0xff]  }
  0xcf   :  { %1576 = vmatprep.subr.bf16.mxu1 %v3746_v32  ;;  %v4156_v32 = vld [vmem:[%s5460_s4 + $0x1c4] ss:$16 sps:$4 sm:$0xff]  }
  0xd0   :  { %1495 = vmatpush1.bf16.msra.mxu0 %v3743_v29  ;;  %v4147_v29 = vld [vmem:[%s5460_s4 + $0x18c] ss:$16 sps:$4 sm:$0xff]  }
  0xd1   :  { %1496 = vmatprep.subr.bf16.mxu0 %v3752_v30  ;;  %v4148_v30 = vld [vmem:[%s5460_s4 + $0x1a0] ss:$16 sps:$4 sm:$0xff]  }
  0xd2   :  { %1577 = vmatpush1.bf16.msra.mxu1 %v3745_v37  ;;  %v4162_v37 = vld [vmem:[%s5460_s4 + $0x1e4] ss:$16 sps:$4 sm:$0xff]  }
  0xd3   :  { %1578 = vmatprep.subr.bf16.mxu1 %v3754_v39  ;;  %v4160_v39 = vld [vmem:[%s5460_s4 + $0x1e0] ss:$16 sps:$4 sm:$0xff]  }
  0xd4   :  { %1497 = vmatpush1.bf16.msra.mxu0 %v3751_v36  ;;  %v4151_v36 = vld [vmem:[%s5460_s4 + $0x1a8] ss:$16 sps:$4 sm:$0xff]  }
  0xd5   :  { %3179 = vmatprep.subr.bf16.mxu0 %v4072_v38  ;;  %v4159_v38 = vld [vmem:[%s5460_s4 + $0x1cc] ss:$16 sps:$4 sm:$0xff]  }
  0xd6   :  { %1579 = vmatpush1.bf16.msra.mxu1 %v3753_v41  ;;  %v4168_v41 = vld [vmem:[%s5460_s4 + $0x204] ss:$16 sps:$4 sm:$0xff]  }
  0xd7   :  { %1515 = vmatmul.mubr.bf16.vlgmr.msra.gmra.mrb[4].mxu0 %v4608_v28  ;;  %3343 = vmatprep.subr.bf16.mxu1 %v4075_v44  ;;  %v4163_v44 = vld [vmem:[%s5460_s4 + $0x1e8] ss:$16 sps:$4 sm:$0xff]  }
  0xd8   :  { %3180 = vmatpush1.bf16.msra.mxu0 %v4070_v40  ;;  %v4157_v40 = vld [vmem:[%s5460_s4 + $0x1c8] ss:$16 sps:$4 sm:$0xff]  }
  0xd9   :  { %3181 = vmatprep.subr.bf16.mxu0 %v4078_v42  ;;  %1597 = vmatmul.mubr.bf16.vlgmr.msra.gmra.mrb[4].mxu1 %v4608_v28  ;;  %v4087_v28 = vld [vmem:[%s5460_s4 + $0x4c] ss:$16 sps:$4 sm:$0xff]  }
  0xda   :  { %3344 = vmatpush1.bf16.msra.mxu1 %v4073_v47  ;;  %v4165_v42 = vld [vmem:[%s5460_s4 + $0x1ec] ss:$16 sps:$4 sm:$0xff]   ;;  %v1239_v47 = vsub.s32 0, %v4581_v34 }
  0xdb   :  { %3345 = vmatprep.subr.bf16.mxu1 %v4081_v49  ;;  %v1243_v49 = vsub.s32 1, %v4581_v34 }
  0xdc   :  { %3182 = vmatpush1.bf16.msra.mxu0 %v4076_v46  ;;  %v4171_v46 = vld [vmem:[%s5460_s4 + $0x20c] ss:$16 sps:$4 sm:$0xff]  }
  0xdd   :  { %3183 = vmatprep.subr.bf16.mxu0 %v4084_v48  ;;  %v4822_v48 = vld [vmem:[%s5459_s3] sm:$0xff] }
  0xde   :  { %3346 = vmatpush1.bf16.msra.mxu1 %v4079_v51  ;;  %v1244_v51 = vrot.slane %v4822_v48, %v1243_v49 }
  0xdf   :  { %3347 = vmatprep.subr.bf16.mxu1 %v4087_v28 }
  0xe0   :  { %3184 = vmatpush1.bf16.msra.mxu0 %v4082_v50  ;;  %v1240_v50 = vrot.slane %v4822_v48, %v1239_v47 }
  0xe1   :  { %3185 = vmatprep.subr.bf16.mxu0 %v4090_v52  ;;  %v1251_v52 = vsub.s32 3, %v4581_v34 }
  0xe2   :  { %3348 = vmatpush1.bf16.msra.mxu1 %v4085_v55 }
  0xe3   :  { %3349 = vmatprep.subr.bf16.mxu1 %v4093_v57 }
  0xe4   :  { %3186 = vmatpush1.bf16.msra.mxu0 %v4088_v53 }
  0xe5   :  { %3187 = vmatprep.subr.bf16.mxu0 %v4096_v56 }
  0xe6   :  { %3350 = vmatpush1.bf16.msra.mxu1 %v4091_v59  ;;  %v1252_v59 = vrot.slane %v4822_v48, %v1251_v52 }
  0xe7   :  { %3351 = vmatprep.subr.bf16.mxu1 %v4099_v61 }
  0xe8   :  { %3188 = vmatpush1.bf16.msra.mxu0 %v4094_v58 }
  0xe9   :  { %3189 = vmatprep.subr.bf16.mxu0 %v4102_v60 }
  0xea   :  { %3352 = vmatpush1.bf16.msra.mxu1 %v4097_v63 }
  0xeb   :  { %3353 = vmatprep.subr.bf16.mxu1 %v4105_v1 }
  0xec   :  { %3190 = vmatpush1.bf16.msra.mxu0 %v4100_v62 }
  0xed   :  { %3191 = vmatprep.subr.bf16.mxu0 %v4108_v0 }
  0xee   :  { %3354 = vmatpush1.bf16.msra.mxu1 %v4103_v3 }
  0xef   :  { %3355 = vmatprep.subr.bf16.mxu1 %v4111_v54  ;;  %v4169_v54 = vld [vmem:[%s5460_s4 + $0x208] ss:$16 sps:$4 sm:$0xff]  }
  0xf0   :  { %3192 = vmatpush1.bf16.msra.mxu0 %v4106_v2 }
  0xf1   :  { %3193 = vmatprep.subr.bf16.mxu0 %v4114_v4  ;;  %v4166_v4 = vld [vmem:[%s5460_s4 + $0x200] ss:$16 sps:$4 sm:$0xff]  }
  0xf2   :  { %3356 = vmatpush1.bf16.msra.mxu1 %v4109_v6  ;;  %v4174_v6 = vld [vmem:[%s5460_s4 + $0x224] ss:$16 sps:$4 sm:$0xff]  }
  0xf3   :  { %3357 = vmatprep.subr.bf16.mxu1 %v4117_v20 }
  0xf4   :  { %3194 = vmatpush1.bf16.msra.mxu0 %v4112_v5 }
  0xf5   :  { %3195 = vmatprep.subr.bf16.mxu0 %v4120_v7  ;;  %v4177_v7 = vld [vmem:[%s5460_s4 + $0x22c] ss:$16 sps:$4 sm:$0xff]  }
  0xf6   :  { %3358 = vmatpush1.bf16.msra.mxu1 %v4115_v9  ;;  %v4175_v9 = vld [vmem:[%s5460_s4 + $0x228] ss:$16 sps:$4 sm:$0xff]  }
  0xf7   :  { %3359 = vmatprep.subr.bf16.mxu1 %v4123_v11  ;;  %v4183_v11 = vld [vmem:[%s5460_s4 + $0x24c] ss:$16 sps:$4 sm:$0xff]  }
  0xf8   :  { %3196 = vmatpush1.bf16.msra.mxu0 %v4118_v8  ;;  %v4172_v8 = vld [vmem:[%s5460_s4 + $0x220] ss:$16 sps:$4 sm:$0xff]  }
  0xf9   :  { %3197 = vmatprep.subr.bf16.mxu0 %v4126_v10  ;;  %v4180_v10 = vld [vmem:[%s5460_s4 + $0x244] ss:$16 sps:$4 sm:$0xff]  }
  0xfa   :  { %3360 = vmatpush1.bf16.msra.mxu1 %v4121_v31  ;;  %v4178_v31 = vld [vmem:[%s5460_s4 + $0x240] ss:$16 sps:$4 sm:$0xff]  }
  0xfb   :  { %3361 = vmatprep.subr.bf16.mxu1 %v4129_v14  ;;  %v4186_v14 = vld [vmem:[%s5460_s4 + $0x264] ss:$16 sps:$4 sm:$0xff]  }
  0xfc   :  { %3198 = vmatpush1.bf16.msra.mxu0 %v4124_v12 }
  0xfd   :  { %3199 = vmatprep.subr.bf16.mxu0 %v4132_v13  ;;  %v4181_v13 = vld [vmem:[%s5460_s4 + $0x248] ss:$16 sps:$4 sm:$0xff]  }
  0xfe   :  { %3362 = vmatpush1.bf16.msra.mxu1 %v4127_v16  ;;  %v4184_v16 = vld [vmem:[%s5460_s4 + $0x260] ss:$16 sps:$4 sm:$0xff]  }
  0xff   :  { %3363 = vmatprep.subr.bf16.mxu1 %v4135_v18  ;;  %v4192_v18 = vld [vmem:[%s5460_s4 + $0x284] ss:$16 sps:$4 sm:$0xff]  }
 0x100   :  { %3200 = vmatpush1.bf16.msra.mxu0 %v4130_v15  ;;  %v4189_v15 = vld [vmem:[%s5460_s4 + $0x26c] ss:$16 sps:$4 sm:$0xff]  }
 0x101   :  { %3201 = vmatprep.subr.bf16.mxu0 %v4138_v17  ;;  %v4187_v17 = vld [vmem:[%s5460_s4 + $0x268] ss:$16 sps:$4 sm:$0xff]  }
 0x102   :  { %3364 = vmatpush1.bf16.msra.mxu1 %v4133_v22  ;;  %v4190_v22 = vld [vmem:[%s5460_s4 + $0x280] ss:$16 sps:$4 sm:$0xff]  }
 0x103   :  { %3365 = vmatprep.subr.bf16.mxu1 %v4141_v24  ;;  %v4198_v24 = vld [vmem:[%s5460_s4 + $0x2a4] ss:$16 sps:$4 sm:$0xff]  }
 0x104   :  { %3202 = vmatpush1.bf16.msra.mxu0 %v4136_v19  ;;  %v4195_v19 = vld [vmem:[%s5460_s4 + $0x28c] ss:$16 sps:$4 sm:$0xff]  }
 0x105   :  { %3203 = vmatprep.subr.bf16.mxu0 %v4144_v23  ;;  %v4193_v23 = vld [vmem:[%s5460_s4 + $0x288] ss:$16 sps:$4 sm:$0xff]  }
 0x106   :  { %3366 = vmatpush1.bf16.msra.mxu1 %v4139_v26  ;;  %v4196_v26 = vld [vmem:[%s5460_s4 + $0x2a0] ss:$16 sps:$4 sm:$0xff]  }
 0x107   :  { %3367 = vmatprep.subr.bf16.mxu1 %v4147_v29  ;;  %v4204_v29 = vld [vmem:[%s5460_s4 + $0x2c4] ss:$16 sps:$4 sm:$0xff]  }
 0x108   :  { %3204 = vmatpush1.bf16.msra.mxu0 %v4142_v25  ;;  %v4201_v25 = vld [vmem:[%s5460_s4 + $0x2ac] ss:$16 sps:$4 sm:$0xff]  }
 0x109   :  { %3205 = vmatprep.subr.bf16.mxu0 %v4150_v27  ;;  %v4199_v27 = vld [vmem:[%s5460_s4 + $0x2a8] ss:$16 sps:$4 sm:$0xff]  }
 0x10a   :  { %3368 = vmatpush1.bf16.msra.mxu1 %v4145_v45  ;;  %v4202_v45 = vld [vmem:[%s5460_s4 + $0x2c0] ss:$16 sps:$4 sm:$0xff]  }
 0x10b   :  { %3369 = vmatprep.subr.bf16.mxu1 %v4153_v33  ;;  %v4210_v33 = vld [vmem:[%s5460_s4 + $0x2e4] ss:$16 sps:$4 sm:$0xff]  }
 0x10c   :  { %3206 = vmatpush1.bf16.msra.mxu0 %v4148_v30  ;;  %v4207_v30 = vld [vmem:[%s5460_s4 + $0x2cc] ss:$16 sps:$4 sm:$0xff]  }
 0x10d   :  { %3207 = vmatprep.subr.bf16.mxu0 %v4156_v32  ;;  %v4205_v32 = vld [vmem:[%s5460_s4 + $0x2c8] ss:$16 sps:$4 sm:$0xff]  }
 0x10e   :  { %3370 = vmatpush1.bf16.msra.mxu1 %v4151_v36  ;;  %v4208_v36 = vld [vmem:[%s5460_s4 + $0x2e0] ss:$16 sps:$4 sm:$0xff]  }
 0x10f   :  { %3371 = vmatprep.subr.bf16.mxu1 %v4159_v38  ;;  %v4216_v38 = vld [vmem:[%s5460_s4 + $0x304] ss:$16 sps:$4 sm:$0xff]  }
 0x110   :  { %3208 = vmatpush1.bf16.msra.mxu0 %v4154_v35  ;;  %v4213_v35 = vld [vmem:[%s5460_s4 + $0x2ec] ss:$16 sps:$4 sm:$0xff]  }
 0x111   :  { %3209 = vmatprep.subr.bf16.mxu0 %v4162_v37  ;;  %v4211_v37 = vld [vmem:[%s5460_s4 + $0x2e8] ss:$16 sps:$4 sm:$0xff]  }
 0x112   :  { %3372 = vmatpush1.bf16.msra.mxu1 %v4157_v40  ;;  %v4214_v40 = vld [vmem:[%s5460_s4 + $0x300] ss:$16 sps:$4 sm:$0xff]  }
 0x113   :  { %3373 = vmatprep.subr.bf16.mxu1 %v4165_v42  ;;  %v4222_v42 = vld [vmem:[%s5460_s4 + $0x324] ss:$16 sps:$4 sm:$0xff]  }
 0x114   :  { %3210 = vmatpush1.bf16.msra.mxu0 %v4160_v39  ;;  %v4219_v39 = vld [vmem:[%s5460_s4 + $0x30c] ss:$16 sps:$4 sm:$0xff]  }
 0x115   :  { %3220 = vmatprep.subr.bf16.mxu0 %v4168_v41  ;;  %v4217_v41 = vld [vmem:[%s5460_s4 + $0x308] ss:$16 sps:$4 sm:$0xff]  }
 0x116   :  { %3374 = vmatpush1.bf16.msra.mxu1 %v4163_v44  ;;  %v4225_v44 = vld [vmem:[%s5460_s4 + $0x32c] ss:$16 sps:$4 sm:$0xff]  }
 0x117   :  { %3384 = vmatprep.subr.bf16.mxu1 %v4171_v46  ;;  %v4220_v46 = vld [vmem:[%s5460_s4 + $0x320] ss:$16 sps:$4 sm:$0xff]  }
 0x14a   :  { %v1352_v28 = vpop.f32.mrb[0].mxu0 }
 0x14b   :  { %v4011_v53 = vadd.f32 %v1352_v28, %v1240_v50  ;;  %v1354_v55 = vpop.f32.mrb[1].mxu0  ;;  %v4223_v50 = vld [vmem:[%s5460_s4 + $0x328] ss:$16 sps:$4 sm:$0xff]   ;;  %v4231_v28 = vld [vmem:[%s5460_s4 + $0x34c] ss:$16 sps:$4 sm:$0xff]  }
 0x14c   :  { %v4012_v56 = vadd.f32 %v1354_v55, %v1244_v51  ;;  %v1356_v57 = vpop.f32.mrb[2].mxu0  ;;  %v4835_v60 = vpop.f32.mrb[0].mxu1  ;;  %v4228_v51 = vld [vmem:[%s5460_s4 + $0x344] ss:$16 sps:$4 sm:$0xff]   ;;  %v4226_v55 = vld [vmem:[%s5460_s4 + $0x340] ss:$16 sps:$4 sm:$0xff]  }
 0x14d   :  { %4454 = vtanh.f32 %v4011_v53  ;;  %v1357_v58 = vpop.f32.mrb[3].mxu0  ;;  %v1436_v61 = vpop.f32.mrb[1].mxu1  ;;  %v1247_v53 = vsub.s32 2, %v4581_v34  ;;  %v4234_v57 = vld [vmem:[%s5460_s4 + $0x364] ss:$16 sps:$4 sm:$0xff]  }
 0x14e   :  { %4456 = vtanh.f32 %v4012_v56  ;;  %v4014_v62 = vadd.f32 %v1436_v61, %v1252_v59  ;;  %v1438_v63 = vpop.f32.mrb[2].mxu1  ;;  %v4229_v56 = vld [vmem:[%s5460_s4 + $0x348] ss:$16 sps:$4 sm:$0xff]   ;;  %v4237_v58 = vld [vmem:[%s5460_s4 + $0x36c] ss:$16 sps:$4 sm:$0xff]  }
 0x14f   :  { %v1439_v0 = vpop.f32.mrb[3].mxu1  ;;  %v1248_v59 = vrot.slane %v4822_v48, %v1247_v53  ;;  %v4232_v61 = vld [vmem:[%s5460_s4 + $0x360] ss:$16 sps:$4 sm:$0xff]   ;;  %v4240_v63 = vld [vmem:[%s5460_s4 + $0x384] ss:$16 sps:$4 sm:$0xff]  }
 0x150   :  { %4458 = vtanh.f32 %v4014_v62  ;;  %v4235_v62 = vld [vmem:[%s5460_s4 + $0x368] ss:$16 sps:$4 sm:$0xff]   ;;  %v4243_v0 = vld [vmem:[%s5460_s4 + $0x38c] ss:$16 sps:$4 sm:$0xff]  }
 0x157   :  { %v4455_v1 = vpop.eup %4454 }
 0x158   :  { %v4457_v2 = vpop.eup %4456  ;;  %v1613_v5 = vpack.c.bf16 %v4455_v1, %v4455_v1  ;;  %v4013_v1 = vadd.f32 %v4835_v60, %v1248_v59  ;;  %v4249_v60 = vld [vmem:[%s5460_s4 + $0x3ac] ss:$16 sps:$4 sm:$0xff]  }
 0x159   :  { %v1614_v3 = vpack.c.bf16 %v4457_v2, %v4457_v2  ;;  %v4238_v2 = vld [vmem:[%s5460_s4 + $0x380] ss:$16 sps:$4 sm:$0xff]  }
 0x15a   :  { %v4459_v20 = vpop.eup %4458  ;;  %4460 = vtanh.f32 %v4013_v1  ;;  %v4309_v1 = vld [vmem:[%s5460_s4 + $0x4ec] ss:$16 sps:$4 sm:$0xff]  }
 0x15b   :  { %3211 = vmatprep.mubr.bf16.mxu0 %v1614_v3  ;;  %3375 = vmatprep.mubr.bf16.mxu1 %v1614_v3  ;;  %v1616_v12 = vpack.c.bf16 %v4459_v20, %v4459_v20  ;;  %v4241_v3 = vld [vmem:[%s5460_s4 + $0x388] ss:$16 sps:$4 sm:$0xff]   ;;  %v4250_v20 = vld [vmem:[%s5460_s4 + $0x3c0] ss:$16 sps:$4 sm:$0xff]  }
 0x15c   :  { %3212 = vmatmul.mubr.bf16.vlgmr.msra.gmra.mrb[8].mxu0 %v1613_v5  ;;  %3376 = vmatmul.mubr.bf16.vlgmr.msra.gmra.mrb[8].mxu1 %v1613_v5  ;;  %v4247_v5 = vld [vmem:[%s5460_s4 + $0x3a8] ss:$16 sps:$4 sm:$0xff]  }
 0x15d   :  { %3221 = vmatpush1.bf16.msra.mxu0 %v4166_v4  ;;  %3385 = vmatpush1.bf16.msra.mxu1 %v4169_v54  ;;  %v4246_v4 = vld [vmem:[%s5460_s4 + $0x3a4] ss:$16 sps:$4 sm:$0xff]   ;;  %v4244_v54 = vld [vmem:[%s5460_s4 + $0x3a0] ss:$16 sps:$4 sm:$0xff]  }
 0x15e   :  { %3222 = vmatprep.subr.bf16.mxu0 %v4174_v6  ;;  %3386 = vmatprep.subr.bf16.mxu1 %v4177_v7  ;;  %v4252_v6 = vld [vmem:[%s5460_s4 + $0x3c4] ss:$16 sps:$4 sm:$0xff]   ;;  %v4255_v7 = vld [vmem:[%s5460_s4 + $0x3cc] ss:$16 sps:$4 sm:$0xff]  }
 0x15f   :  { %3252 = vmatprep.mubr.bf16.mxu0 %v1616_v12  ;;  %3416 = vmatprep.mubr.bf16.mxu1 %v1616_v12  ;;  %v4259_v12 = vld [vmem:[%s5460_s4 + $0x3e8] ss:$16 sps:$4 sm:$0xff]  }
 0x161   :  { %3223 = vmatpush1.bf16.msra.mxu0 %v4172_v8  ;;  %3387 = vmatpush1.bf16.msra.mxu1 %v4175_v9  ;;  %v4253_v8 = vld [vmem:[%s5460_s4 + $0x3c8] ss:$16 sps:$4 sm:$0xff]   ;;  %v4258_v9 = vld [vmem:[%s5460_s4 + $0x3e4] ss:$16 sps:$4 sm:$0xff]  }
 0x162   :  { %3224 = vmatprep.subr.bf16.mxu0 %v4180_v10  ;;  %3388 = vmatprep.subr.bf16.mxu1 %v4183_v11  ;;  %v4261_v10 = vld [vmem:[%s5460_s4 + $0x3ec] ss:$16 sps:$4 sm:$0xff]   ;;  %v4256_v11 = vld [vmem:[%s5460_s4 + $0x3e0] ss:$16 sps:$4 sm:$0xff]  }
 0x165   :  { %3225 = vmatpush1.bf16.msra.mxu0 %v4178_v31  ;;  %3389 = vmatpush1.bf16.msra.mxu1 %v4181_v13  ;;  %v4264_v31 = vld [vmem:[%s5460_s4 + $0x404] ss:$16 sps:$4 sm:$0xff]   ;;  %v4267_v13 = vld [vmem:[%s5460_s4 + $0x40c] ss:$16 sps:$4 sm:$0xff]  }
 0x166   :  { %3226 = vmatprep.subr.bf16.mxu0 %v4186_v14  ;;  %3390 = vmatprep.subr.bf16.mxu1 %v4189_v15  ;;  %v4461_v14 = vpop.eup %4460  ;;  %v4262_v15 = vld [vmem:[%s5460_s4 + $0x400] ss:$16 sps:$4 sm:$0xff]  }
 0x169   :  { %3227 = vmatpush1.bf16.msra.mxu0 %v4184_v16  ;;  %3391 = vmatpush1.bf16.msra.mxu1 %v4187_v17  ;;  %v4265_v16 = vld [vmem:[%s5460_s4 + $0x408] ss:$16 sps:$4 sm:$0xff]   ;;  %v1615_v17 = vpack.c.bf16 %v4461_v14, %v4461_v14  ;;  %v4322_v14 = vld [vmem:[%s5460_s4 + $0x540] ss:$16 sps:$4 sm:$0xff]  }
 0x16a   :  { %3228 = vmatprep.subr.bf16.mxu0 %v4192_v18  ;;  %3392 = vmatprep.subr.bf16.mxu1 %v4195_v19  ;;  %v4270_v18 = vld [vmem:[%s5460_s4 + $0x424] ss:$16 sps:$4 sm:$0xff]   ;;  %v4273_v19 = vld [vmem:[%s5460_s4 + $0x42c] ss:$16 sps:$4 sm:$0xff]  }
 0x16d   :  { %3229 = vmatpush1.bf16.msra.mxu0 %v4190_v22  ;;  %3393 = vmatpush1.bf16.msra.mxu1 %v4193_v23  ;;  %v4268_v22 = vld [vmem:[%s5460_s4 + $0x420] ss:$16 sps:$4 sm:$0xff]   ;;  %v4271_v23 = vld [vmem:[%s5460_s4 + $0x428] ss:$16 sps:$4 sm:$0xff]  }
 0x16e   :  { %3230 = vmatprep.subr.bf16.mxu0 %v4198_v24  ;;  %3394 = vmatprep.subr.bf16.mxu1 %v4201_v25  ;;  %v4276_v24 = vld [vmem:[%s5460_s4 + $0x444] ss:$16 sps:$4 sm:$0xff]   ;;  %v4279_v25 = vld [vmem:[%s5460_s4 + $0x44c] ss:$16 sps:$4 sm:$0xff]  }
 0x171   :  { %3231 = vmatpush1.bf16.msra.mxu0 %v4196_v26  ;;  %3395 = vmatpush1.bf16.msra.mxu1 %v4199_v27  ;;  %v4274_v26 = vld [vmem:[%s5460_s4 + $0x440] ss:$16 sps:$4 sm:$0xff]   ;;  %v4277_v27 = vld [vmem:[%s5460_s4 + $0x448] ss:$16 sps:$4 sm:$0xff]  }
 0x172   :  { %3232 = vmatprep.subr.bf16.mxu0 %v4204_v29  ;;  %3396 = vmatprep.subr.bf16.mxu1 %v4207_v30  ;;  %v4282_v29 = vld [vmem:[%s5460_s4 + $0x464] ss:$16 sps:$4 sm:$0xff]   ;;  %v4285_v30 = vld [vmem:[%s5460_s4 + $0x46c] ss:$16 sps:$4 sm:$0xff]  }
 0x175   :  { %3233 = vmatpush1.bf16.msra.mxu0 %v4202_v45  ;;  %3397 = vmatpush1.bf16.msra.mxu1 %v4205_v32  ;;  %v1259_v45 = vsub.s32 5, %v4581_v34  ;;  %v4280_v32 = vld [vmem:[%s5460_s4 + $0x460] ss:$16 sps:$4 sm:$0xff]  }
 0x176   :  { %3234 = vmatprep.subr.bf16.mxu0 %v4210_v33  ;;  %3398 = vmatprep.subr.bf16.mxu1 %v4213_v35  ;;  %v4283_v33 = vld [vmem:[%s5460_s4 + $0x468] ss:$16 sps:$4 sm:$0xff]   ;;  %v4288_v35 = vld [vmem:[%s5460_s4 + $0x484] ss:$16 sps:$4 sm:$0xff]  }
 0x179   :  { %3235 = vmatpush1.bf16.msra.mxu0 %v4208_v36  ;;  %3399 = vmatpush1.bf16.msra.mxu1 %v4211_v37  ;;  %v4291_v36 = vld [vmem:[%s5460_s4 + $0x48c] ss:$16 sps:$4 sm:$0xff]   ;;  %v1260_v37 = vrot.slane %v4822_v48, %v1259_v45 }
 0x17a   :  { %3236 = vmatprep.subr.bf16.mxu0 %v4216_v38  ;;  %3400 = vmatprep.subr.bf16.mxu1 %v4219_v39  ;;  %v4286_v38 = vld [vmem:[%s5460_s4 + $0x480] ss:$16 sps:$4 sm:$0xff]   ;;  %v4289_v39 = vld [vmem:[%s5460_s4 + $0x488] ss:$16 sps:$4 sm:$0xff]  }
 0x17d   :  { %3237 = vmatpush1.bf16.msra.mxu0 %v4214_v40  ;;  %3401 = vmatpush1.bf16.msra.mxu1 %v4217_v41  ;;  %v4294_v41 = vld [vmem:[%s5460_s4 + $0x4a4] ss:$16 sps:$4 sm:$0xff]  }
 0x17e   :  { %3238 = vmatprep.subr.bf16.mxu0 %v4222_v42  ;;  %3402 = vmatprep.subr.bf16.mxu1 %v4225_v44  ;;  %v4297_v42 = vld [vmem:[%s5460_s4 + $0x4ac] ss:$16 sps:$4 sm:$0xff]  }
 0x181   :  { %3239 = vmatpush1.bf16.msra.mxu0 %v4220_v46  ;;  %3403 = vmatpush1.bf16.msra.mxu1 %v4223_v50 }
 0x182   :  { %3240 = vmatprep.subr.bf16.mxu0 %v4228_v51  ;;  %3404 = vmatprep.subr.bf16.mxu1 %v4231_v28  ;;  %v4292_v28 = vld [vmem:[%s5460_s4 + $0x4a0] ss:$16 sps:$4 sm:$0xff]  }
 0x185   :  { %3241 = vmatpush1.bf16.msra.mxu0 %v4226_v55  ;;  %3405 = vmatpush1.bf16.msra.mxu1 %v4229_v56  ;;  %v4295_v55 = vld [vmem:[%s5460_s4 + $0x4a8] ss:$16 sps:$4 sm:$0xff]   ;;  %v4300_v56 = vld [vmem:[%s5460_s4 + $0x4c4] ss:$16 sps:$4 sm:$0xff]  }
 0x186   :  { %3242 = vmatprep.subr.bf16.mxu0 %v4234_v57  ;;  %3406 = vmatprep.subr.bf16.mxu1 %v4237_v58  ;;  %v4303_v57 = vld [vmem:[%s5460_s4 + $0x4cc] ss:$16 sps:$4 sm:$0xff]  }
 0x189   :  { %3243 = vmatpush1.bf16.msra.mxu0 %v4232_v61  ;;  %3407 = vmatpush1.bf16.msra.mxu1 %v4235_v62  ;;  %v4298_v61 = vld [vmem:[%s5460_s4 + $0x4c0] ss:$16 sps:$4 sm:$0xff]   ;;  %v4301_v62 = vld [vmem:[%s5460_s4 + $0x4c8] ss:$16 sps:$4 sm:$0xff]  }
 0x18a   :  { %3244 = vmatprep.subr.bf16.mxu0 %v4240_v63  ;;  %3408 = vmatprep.subr.bf16.mxu1 %v4243_v0  ;;  %v4306_v0 = vld [vmem:[%s5460_s4 + $0x4e4] ss:$16 sps:$4 sm:$0xff]  }
 0x18d   :  { %3245 = vmatpush1.bf16.msra.mxu0 %v4238_v2  ;;  %3409 = vmatpush1.bf16.msra.mxu1 %v4241_v3  ;;  %v4304_v3 = vld [vmem:[%s5460_s4 + $0x4e0] ss:$16 sps:$4 sm:$0xff]  }
 0x18e   :  { %3246 = vmatprep.subr.bf16.mxu0 %v4246_v4  ;;  %3410 = vmatprep.subr.bf16.mxu1 %v4249_v60  ;;  %v4307_v4 = vld [vmem:[%s5460_s4 + $0x4e8] ss:$16 sps:$4 sm:$0xff]   ;;  %v4312_v60 = vld [vmem:[%s5460_s4 + $0x504] ss:$16 sps:$4 sm:$0xff]  }
 0x191   :  { %3247 = vmatpush1.bf16.msra.mxu0 %v4244_v54  ;;  %3411 = vmatpush1.bf16.msra.mxu1 %v4247_v5  ;;  %v4315_v54 = vld [vmem:[%s5460_s4 + $0x50c] ss:$16 sps:$4 sm:$0xff]  }
 0x192   :  { %3248 = vmatprep.subr.bf16.mxu0 %v4252_v6  ;;  %3412 = vmatprep.subr.bf16.mxu1 %v4255_v7  ;;  %v4310_v7 = vld [vmem:[%s5460_s4 + $0x500] ss:$16 sps:$4 sm:$0xff]  }
 0x195   :  { %3249 = vmatpush1.bf16.msra.mxu0 %v4250_v20  ;;  %3413 = vmatpush1.bf16.msra.mxu1 %v4253_v8  ;;  %v4313_v20 = vld [vmem:[%s5460_s4 + $0x508] ss:$16 sps:$4 sm:$0xff]   ;;  %v4318_v8 = vld [vmem:[%s5460_s4 + $0x524] ss:$16 sps:$4 sm:$0xff]  }
 0x196   :  { %3250 = vmatprep.subr.bf16.mxu0 %v4258_v9  ;;  %3414 = vmatprep.subr.bf16.mxu1 %v4261_v10  ;;  %v4321_v9 = vld [vmem:[%s5460_s4 + $0x52c] ss:$16 sps:$4 sm:$0xff]   ;;  %v4316_v10 = vld [vmem:[%s5460_s4 + $0x520] ss:$16 sps:$4 sm:$0xff]  }
 0x199   :  { %3251 = vmatpush1.bf16.msra.mxu0 %v4256_v11  ;;  %3415 = vmatpush1.bf16.msra.mxu1 %v4259_v12  ;;  %v4319_v11 = vld [vmem:[%s5460_s4 + $0x528] ss:$16 sps:$4 sm:$0xff]   ;;  %v4324_v12 = vld [vmem:[%s5460_s4 + $0x544] ss:$16 sps:$4 sm:$0xff]  }
 0x19a   :  { %3261 = vmatprep.subr.bf16.mxu0 %v4264_v31  ;;  %3425 = vmatprep.subr.bf16.mxu1 %v4267_v13  ;;  %v4327_v31 = vld [vmem:[%s5460_s4 + $0x54c] ss:$16 sps:$4 sm:$0xff]   ;;  %v1255_v13 = vsub.s32 4, %v4581_v34 }
 0x19c   :  { %3253 = vmatmul.mubr.bf16.vlgmr.msra.gmra.mrb[8].mxu0 %v1615_v17  ;;  %3417 = vmatmul.mubr.bf16.vlgmr.msra.gmra.mrb[8].mxu1 %v1615_v17  ;;  %v4330_v17 = vld [vmem:[%s5460_s4 + $0x564] ss:$16 sps:$4 sm:$0xff]  }
 0x19d   :  { %3262 = vmatpush1.bf16.msra.mxu0 %v4262_v15  ;;  %3426 = vmatpush1.bf16.msra.mxu1 %v4265_v16  ;;  %v4325_v15 = vld [vmem:[%s5460_s4 + $0x548] ss:$16 sps:$4 sm:$0xff]   ;;  %v1267_v16 = vsub.s32 7, %v4581_v34 }
 0x19e   :  { %3263 = vmatprep.subr.bf16.mxu0 %v4270_v18  ;;  %3427 = vmatprep.subr.bf16.mxu1 %v4273_v19  ;;  %v4333_v18 = vld [vmem:[%s5460_s4 + $0x56c] ss:$16 sps:$4 sm:$0xff]   ;;  %v1256_v19 = vrot.slane %v4822_v48, %v1255_v13  ;;  %v4391_v13 = vld [vmem:[%s5460_s4 + $0x6a8] ss:$16 sps:$4 sm:$0xff]  }
 0x1a1   :  { %3264 = vmatpush1.bf16.msra.mxu0 %v4268_v22  ;;  %3428 = vmatpush1.bf16.msra.mxu1 %v4271_v23  ;;  %v4328_v22 = vld [vmem:[%s5460_s4 + $0x560] ss:$16 sps:$4 sm:$0xff]   ;;  %v4331_v23 = vld [vmem:[%s5460_s4 + $0x568] ss:$16 sps:$4 sm:$0xff]  }
 0x1a2   :  { %3265 = vmatprep.subr.bf16.mxu0 %v4276_v24  ;;  %3429 = vmatprep.subr.bf16.mxu1 %v4279_v25  ;;  %v1268_v24 = vrot.slane %v4822_v48, %v1267_v16  ;;  %v4336_v25 = vld [vmem:[%s5460_s4 + $0x584] ss:$16 sps:$4 sm:$0xff]   ;;  %v4394_v16 = vld [vmem:[%s5460_s4 + $0x6c0] ss:$16 sps:$4 sm:$0xff]  }
 0x1a5   :  { %3266 = vmatpush1.bf16.msra.mxu0 %v4274_v26  ;;  %3430 = vmatpush1.bf16.msra.mxu1 %v4277_v27  ;;  %v4339_v26 = vld [vmem:[%s5460_s4 + $0x58c] ss:$16 sps:$4 sm:$0xff]  }
 0x1a6   :  { %3267 = vmatprep.subr.bf16.mxu0 %v4282_v29  ;;  %3431 = vmatprep.subr.bf16.mxu1 %v4285_v30  ;;  %v4334_v29 = vld [vmem:[%s5460_s4 + $0x580] ss:$16 sps:$4 sm:$0xff]   ;;  %v4337_v30 = vld [vmem:[%s5460_s4 + $0x588] ss:$16 sps:$4 sm:$0xff]  }
 0x1a9   :  { %3268 = vmatpush1.bf16.msra.mxu0 %v4280_v32  ;;  %3432 = vmatpush1.bf16.msra.mxu1 %v4283_v33  ;;  %v4342_v32 = vld [vmem:[%s5460_s4 + $0x5a4] ss:$16 sps:$4 sm:$0xff]   ;;  %v4345_v33 = vld [vmem:[%s5460_s4 + $0x5ac] ss:$16 sps:$4 sm:$0xff]  }
 0x1aa   :  { %v5090_v40 = vpop.f32.mrb[4].mxu0  ;;  %3269 = vmatprep.subr.bf16.mxu0 %v4288_v35  ;;  %3433 = vmatprep.subr.bf16.mxu1 %v4291_v36  ;;  %v4340_v35 = vld [vmem:[%s5460_s4 + $0x5a0] ss:$16 sps:$4 sm:$0xff]   ;;  %v4343_v36 = vld [vmem:[%s5460_s4 + $0x5a8] ss:$16 sps:$4 sm:$0xff]  }
 0x1ab   :  { %v1518_v44 = vpop.f32.mrb[5].mxu0  ;;  %v4015_v27 = vadd.f32 %v5090_v40, %v1256_v19  ;;  %v4349_v40 = vld [vmem:[%s5460_s4 + $0x5c8] ss:$16 sps:$4 sm:$0xff]   ;;  %v4405_v19 = vld [vmem:[%s5460_s4 + $0x6ec] ss:$16 sps:$4 sm:$0xff]  }
 0x1ac   :  { %v4016_v46 = vadd.f32 %v1518_v44, %v1260_v37  ;;  %v1520_v50 = vpop.f32.mrb[6].mxu0  ;;  %v5110_v58 = vpop.f32.mrb[4].mxu1  ;;  %v4348_v37 = vld [vmem:[%s5460_s4 + $0x5c4] ss:$16 sps:$4 sm:$0xff]   ;;  %v4352_v44 = vld [vmem:[%s5460_s4 + $0x5e0] ss:$16 sps:$4 sm:$0xff]  }
 0x1ad   :  { %3270 = vmatpush1.bf16.msra.mxu0 %v4286_v38  ;;  %3434 = vmatpush1.bf16.msra.mxu1 %v4289_v39  ;;  %v1521_v51 = vpop.f32.mrb[7].mxu0  ;;  %v5112_v59 = vpop.f32.mrb[5].mxu1  ;;  %v4351_v38 = vld [vmem:[%s5460_s4 + $0x5cc] ss:$16 sps:$4 sm:$0xff]   ;;  %v4346_v39 = vld [vmem:[%s5460_s4 + $0x5c0] ss:$16 sps:$4 sm:$0xff]  }
 0x1ae   :  { %4462 = vtanh.f32 %v4016_v46  ;;  %3271 = vmatprep.subr.bf16.mxu0 %v4294_v41  ;;  %3435 = vmatprep.subr.bf16.mxu1 %v4297_v42  ;;  %v1602_v63 = vpop.f32.mrb[6].mxu1  ;;  %v4018_v45 = vadd.f32 %v5112_v59, %v1268_v24  ;;  %v4354_v41 = vld [vmem:[%s5460_s4 + $0x5e4] ss:$16 sps:$4 sm:$0xff]   ;;  %v4357_v42 = vld [vmem:[%s5460_s4 + $0x5ec] ss:$16 sps:$4 sm:$0xff]  }
 0x1af   :  { %v1603_v2 = vpop.f32.mrb[7].mxu1  ;;  %4464 = vtanh.f32 %v4015_v27  ;;  %v4355_v46 = vld [vmem:[%s5460_s4 + $0x5e8] ss:$16 sps:$4 sm:$0xff]   ;;  %v4360_v51 = vld [vmem:[%s5460_s4 + $0x604] ss:$16 sps:$4 sm:$0xff]  }
 0x1b0   :  { %4466 = vtanh.f32 %v4018_v45  ;;  %v4369_v63 = vld [vmem:[%s5460_s4 + $0x62c] ss:$16 sps:$4 sm:$0xff]   ;;  %v4372_v2 = vld [vmem:[%s5460_s4 + $0x644] ss:$16 sps:$4 sm:$0xff]   ;;  %v4409_v27 = vld [vmem:[%s5460_s4 + $0x708] ss:$16 sps:$4 sm:$0xff]  }
 0x1b1   :  { %3272 = vmatpush1.bf16.msra.mxu0 %v4292_v28  ;;  %3436 = vmatpush1.bf16.msra.mxu1 %v4295_v55  ;;  %v4363_v28 = vld [vmem:[%s5460_s4 + $0x60c] ss:$16 sps:$4 sm:$0xff]   ;;  %v4408_v24 = vld [vmem:[%s5460_s4 + $0x704] ss:$16 sps:$4 sm:$0xff]   ;;  %v4412_v45 = vld [vmem:[%s5460_s4 + $0x720] ss:$16 sps:$4 sm:$0xff]  }
 0x1b2   :  { %3273 = vmatprep.subr.bf16.mxu0 %v4300_v56  ;;  %3437 = vmatprep.subr.bf16.mxu1 %v4303_v57  ;;  %v4358_v56 = vld [vmem:[%s5460_s4 + $0x600] ss:$16 sps:$4 sm:$0xff]   ;;  %v4361_v57 = vld [vmem:[%s5460_s4 + $0x608] ss:$16 sps:$4 sm:$0xff]  }
 0x1b5   :  { %3274 = vmatpush1.bf16.msra.mxu0 %v4298_v61  ;;  %3438 = vmatpush1.bf16.msra.mxu1 %v4301_v62  ;;  %v4366_v62 = vld [vmem:[%s5460_s4 + $0x624] ss:$16 sps:$4 sm:$0xff]  }
 0x1b6   :  { %3275 = vmatprep.subr.bf16.mxu0 %v4306_v0  ;;  %3439 = vmatprep.subr.bf16.mxu1 %v4309_v1  ;;  %v4364_v0 = vld [vmem:[%s5460_s4 + $0x620] ss:$16 sps:$4 sm:$0xff]   ;;  %v4367_v1 = vld [vmem:[%s5460_s4 + $0x628] ss:$16 sps:$4 sm:$0xff]  }
 0x1b8   :  { %v4463_v5 = vpop.eup %4462 }
 0x1b9   :  { %v1618_v6 = vpack.c.bf16 %v4463_v5, %v4463_v5  ;;  %3276 = vmatpush1.bf16.msra.mxu0 %v4304_v3  ;;  %3440 = vmatpush1.bf16.msra.mxu1 %v4307_v4  ;;  %v4465_v50 = vpop.eup %4464  ;;  %v4375_v3 = vld [vmem:[%s5460_s4 + $0x64c] ss:$16 sps:$4 sm:$0xff]   ;;  %v4370_v4 = vld [vmem:[%s5460_s4 + $0x640] ss:$16 sps:$4 sm:$0xff]  }
 0x1ba   :  { %3277 = vmatprep.subr.bf16.mxu0 %v4312_v60  ;;  %3441 = vmatprep.subr.bf16.mxu1 %v4315_v54  ;;  %v4467_v55 = vpop.eup %4466  ;;  %v1617_v59 = vpack.c.bf16 %v4465_v50, %v4465_v50  ;;  %v4373_v60 = vld [vmem:[%s5460_s4 + $0x648] ss:$16 sps:$4 sm:$0xff]   ;;  %v4378_v54 = vld [vmem:[%s5460_s4 + $0x664] ss:$16 sps:$4 sm:$0xff]   ;;  %v4381_v5 = vld [vmem:[%s5460_s4 + $0x66c] ss:$16 sps:$4 sm:$0xff]  }
 0x1bb   :  { %3293 = vmatprep.mubr.bf16.mxu0 %v1618_v6  ;;  %3457 = vmatprep.mubr.bf16.mxu1 %v1618_v6  ;;  %v1620_v61 = vpack.c.bf16 %v4467_v55, %v4467_v55  ;;  %v4376_v6 = vld [vmem:[%s5460_s4 + $0x660] ss:$16 sps:$4 sm:$0xff]   ;;  %v4438_v55 = vld [vmem:[%s5460_s4 + $0x7a4] ss:$16 sps:$4 sm:$0xff]  }
 0x1bd   :  { %3278 = vmatpush1.bf16.msra.mxu0 %v4310_v7  ;;  %3442 = vmatpush1.bf16.msra.mxu1 %v4313_v20  ;;  %v4379_v7 = vld [vmem:[%s5460_s4 + $0x668] ss:$16 sps:$4 sm:$0xff]   ;;  %v4384_v20 = vld [vmem:[%s5460_s4 + $0x684] ss:$16 sps:$4 sm:$0xff]  }
 0x1be   :  { %3279 = vmatprep.subr.bf16.mxu0 %v4318_v8  ;;  %3443 = vmatprep.subr.bf16.mxu1 %v4321_v9  ;;  %v4387_v8 = vld [vmem:[%s5460_s4 + $0x68c] ss:$16 sps:$4 sm:$0xff]   ;;  %v4382_v9 = vld [vmem:[%s5460_s4 + $0x680] ss:$16 sps:$4 sm:$0xff]  }
 0x1c1   :  { %3280 = vmatpush1.bf16.msra.mxu0 %v4316_v10  ;;  %3444 = vmatpush1.bf16.msra.mxu1 %v4319_v11  ;;  %v4385_v10 = vld [vmem:[%s5460_s4 + $0x688] ss:$16 sps:$4 sm:$0xff]   ;;  %v4390_v11 = vld [vmem:[%s5460_s4 + $0x6a4] ss:$16 sps:$4 sm:$0xff]  }
 0x1c2   :  { %3281 = vmatprep.subr.bf16.mxu0 %v4324_v12  ;;  %3445 = vmatprep.subr.bf16.mxu1 %v4327_v31  ;;  %v4393_v12 = vld [vmem:[%s5460_s4 + $0x6ac] ss:$16 sps:$4 sm:$0xff]   ;;  %v4388_v31 = vld [vmem:[%s5460_s4 + $0x6a0] ss:$16 sps:$4 sm:$0xff]  }
 0x1c5   :  { %3282 = vmatpush1.bf16.msra.mxu0 %v4322_v14  ;;  %3446 = vmatpush1.bf16.msra.mxu1 %v4325_v15  ;;  %v4396_v14 = vld [vmem:[%s5460_s4 + $0x6c4] ss:$16 sps:$4 sm:$0xff]   ;;  %v4399_v15 = vld [vmem:[%s5460_s4 + $0x6cc] ss:$16 sps:$4 sm:$0xff]  }
 0x1c6   :  { %3283 = vmatprep.subr.bf16.mxu0 %v4330_v17  ;;  %3447 = vmatprep.subr.bf16.mxu1 %v4333_v18  ;;  %v4397_v17 = vld [vmem:[%s5460_s4 + $0x6c8] ss:$16 sps:$4 sm:$0xff]   ;;  %v4402_v18 = vld [vmem:[%s5460_s4 + $0x6e4] ss:$16 sps:$4 sm:$0xff]  }
 0x1c9   :  { %3284 = vmatpush1.bf16.msra.mxu0 %v4328_v22  ;;  %3448 = vmatpush1.bf16.msra.mxu1 %v4331_v23  ;;  %v4400_v22 = vld [vmem:[%s5460_s4 + $0x6e0] ss:$16 sps:$4 sm:$0xff]   ;;  %v4403_v23 = vld [vmem:[%s5460_s4 + $0x6e8] ss:$16 sps:$4 sm:$0xff]  }
 0x1ca   :  { %3285 = vmatprep.subr.bf16.mxu0 %v4336_v25  ;;  %3449 = vmatprep.subr.bf16.mxu1 %v4339_v26  ;;  %v4411_v25 = vld [vmem:[%s5460_s4 + $0x70c] ss:$16 sps:$4 sm:$0xff]   ;;  %v4406_v26 = vld [vmem:[%s5460_s4 + $0x700] ss:$16 sps:$4 sm:$0xff]  }
 0x1cd   :  { %3286 = vmatpush1.bf16.msra.mxu0 %v4334_v29  ;;  %3450 = vmatpush1.bf16.msra.mxu1 %v4337_v30  ;;  %v4414_v29 = vld [vmem:[%s5460_s4 + $0x724] ss:$16 sps:$4 sm:$0xff]   ;;  %v4417_v30 = vld [vmem:[%s5460_s4 + $0x72c] ss:$16 sps:$4 sm:$0xff]  }
 0x1ce   :  { %3287 = vmatprep.subr.bf16.mxu0 %v4342_v32  ;;  %3451 = vmatprep.subr.bf16.mxu1 %v4345_v33  ;;  %v4415_v32 = vld [vmem:[%s5460_s4 + $0x728] ss:$16 sps:$4 sm:$0xff]   ;;  %v4420_v33 = vld [vmem:[%s5460_s4 + $0x744] ss:$16 sps:$4 sm:$0xff]  }
 0x1d1   :  { %3288 = vmatpush1.bf16.msra.mxu0 %v4340_v35  ;;  %3452 = vmatpush1.bf16.msra.mxu1 %v4343_v36  ;;  %v4423_v35 = vld [vmem:[%s5460_s4 + $0x74c] ss:$16 sps:$4 sm:$0xff]   ;;  %v1263_v36 = vsub.s32 6, %v4581_v34 }
 0x1d2   :  { %3289 = vmatprep.subr.bf16.mxu0 %v4348_v37  ;;  %3453 = vmatprep.subr.bf16.mxu1 %v4351_v38  ;;  %v4418_v37 = vld [vmem:[%s5460_s4 + $0x740] ss:$16 sps:$4 sm:$0xff]   ;;  %v4421_v38 = vld [vmem:[%s5460_s4 + $0x748] ss:$16 sps:$4 sm:$0xff]  }
 0x1d5   :  { %3290 = vmatpush1.bf16.msra.mxu0 %v4346_v39  ;;  %3454 = vmatpush1.bf16.msra.mxu1 %v4349_v40  ;;  %v4426_v39 = vld [vmem:[%s5460_s4 + $0x764] ss:$16 sps:$4 sm:$0xff]   ;;  %v4429_v40 = vld [vmem:[%s5460_s4 + $0x76c] ss:$16 sps:$4 sm:$0xff]  }
 0x1d6   :  { %3291 = vmatprep.subr.bf16.mxu0 %v4354_v41  ;;  %3455 = vmatprep.subr.bf16.mxu1 %v4357_v42  ;;  %v1264_v41 = vrot.slane %v4822_v48, %v1263_v36  ;;  %v4424_v42 = vld [vmem:[%s5460_s4 + $0x760] ss:$16 sps:$4 sm:$0xff]   ;;  %v4435_v48 = vld [vmem:[%s5460_s4 + $0x78c] ss:$16 sps:$4 sm:$0xff]  }
 0x1d8   :  { %v4017_v50 = vadd.f32 %v5110_v58, %v1264_v41  ;;  %v4441_v58 = vld [vmem:[%s5460_s4 + $0x7ac] ss:$16 sps:$4 sm:$0xff]  }
 0x1d9   :  { %3292 = vmatpush1.bf16.msra.mxu0 %v4352_v44  ;;  %3456 = vmatpush1.bf16.msra.mxu1 %v4355_v46  ;;  %v4427_v44 = vld [vmem:[%s5460_s4 + $0x768] ss:$16 sps:$4 sm:$0xff]   ;;  %v4432_v46 = vld [vmem:[%s5460_s4 + $0x784] ss:$16 sps:$4 sm:$0xff]  }
 0x1da   :  { %3302 = vmatprep.subr.bf16.mxu0 %v4360_v51  ;;  %3466 = vmatprep.subr.bf16.mxu1 %v4363_v28  ;;  %v4430_v51 = vld [vmem:[%s5460_s4 + $0x780] ss:$16 sps:$4 sm:$0xff]   ;;  %v4433_v28 = vld [vmem:[%s5460_s4 + $0x788] ss:$16 sps:$4 sm:$0xff]   ;;  %4468 = vtanh.f32 %v4017_v50 }
 0x1dc   :  { %3294 = vmatmul.mubr.bf16.vlgmr.msra.gmra.mrb[8].mxu0 %v1617_v59  ;;  %3458 = vmatmul.mubr.bf16.vlgmr.msra.gmra.mrb[8].mxu1 %v1617_v59  ;;  %v4444_v59 = vld [vmem:[%s5460_s4 + $0x7c4] ss:$16 sps:$4 sm:$0xff]  }
 0x1dd   :  { %3303 = vmatpush1.bf16.msra.mxu0 %v4358_v56  ;;  %3467 = vmatpush1.bf16.msra.mxu1 %v4361_v57  ;;  %v4436_v56 = vld [vmem:[%s5460_s4 + $0x7a0] ss:$16 sps:$4 sm:$0xff]   ;;  %v4439_v57 = vld [vmem:[%s5460_s4 + $0x7a8] ss:$16 sps:$4 sm:$0xff]  }
 0x1de   :  { %3304 = vmatprep.subr.bf16.mxu0 %v4366_v62  ;;  %3334 = vmatprep.mubr.bf16.mxu0 %v1620_v61  ;;  %v4442_v62 = vld [vmem:[%s5460_s4 + $0x7c0] ss:$16 sps:$4 sm:$0xff]  }
 0x1df   :  { %3468 = vmatprep.subr.bf16.mxu1 %v4369_v63  ;;  %3498 = vmatprep.mubr.bf16.mxu1 %v1620_v61  ;;  %v4447_v61 = vld [vmem:[%s5460_s4 + $0x7cc] ss:$16 sps:$4 sm:$0xff]   ;;  %v4445_v63 = vld [vmem:[%s5460_s4 + $0x7c8] ss:$16 sps:$4 sm:$0xff]  }
 0x1e1   :  { %3305 = vmatpush1.bf16.msra.mxu0 %v4364_v0  ;;  %3469 = vmatpush1.bf16.msra.mxu1 %v4367_v1  ;;  %v4450_v0 = vld [vmem:[%s5460_s4 + $0x7e4] ss:$16 sps:$4 sm:$0xff]   ;;  %v4453_v1 = vld [vmem:[%s5460_s4 + $0x7ec] ss:$16 sps:$4 sm:$0xff]  }
 0x1e2   :  { %3306 = vmatprep.subr.bf16.mxu0 %v4372_v2  ;;  %3470 = vmatprep.subr.bf16.mxu1 %v4375_v3  ;;  %v4448_v2 = vld [vmem:[%s5460_s4 + $0x7e0] ss:$16 sps:$4 sm:$0xff]   ;;  %v4451_v3 = vld [vmem:[%s5460_s4 + $0x7e8] ss:$16 sps:$4 sm:$0xff]   ;;  %s4523_s4 = smov [#allocation7]  }
 0x1e5   :  { %3307 = vmatpush1.bf16.msra.mxu0 %v4370_v4  ;;  %3471 = vmatpush1.bf16.msra.mxu1 %v4373_v60  ;;  %v4469_v4 = vpop.eup %4468 }
 0x1e6   :  { %3308 = vmatprep.subr.bf16.mxu0 %v4378_v54  ;;  %3472 = vmatprep.subr.bf16.mxu1 %v4381_v5  ;;  %v1619_v60 = vpack.c.bf16 %v4469_v4, %v4469_v4  ;;  %v1877_v54 = vld [vmem:[%s5461_s5] sm:$0xf]  ;;  %s3547_s5 = sshll.u32 %s4523_s4, 4  ;;  %s3548_s5 = int_to_ptr.vmem [resolvable:$true] %s3547_s5 }
 0x1e7   :  { %v3162_v5 = vrot.slane %v1877_v54, %v1239_v47  ;;  %s4492_s8 = scalar_lea.vmem %s3548_s5, 64  ;;  %p4497_p10 = scmp.lt.s32.totalorder %s3548_s5, %s3548_s5 }
 0x1e8   :  { %p4493_p9 = scmp.ne.s32.totalorder %s3548_s5, %s4492_s8  ;;  %p4498_p11 = scmp.lt.s32.totalorder %s4492_s8, %s4492_s8 }
 0x1e9   :  { %3309 = vmatpush1.bf16.msra.mxu0 %v4376_v6  ;;  %3473 = vmatpush1.bf16.msra.mxu1 %v4379_v7  ;;  %v3170_v6 = vrot.slane %v1877_v54, %v1247_v53  ;;  %v3166_v7 = vrot.slane %v1877_v54, %v1243_v49 }
 0x1ea   :  { %3310 = vmatprep.subr.bf16.mxu0 %v4384_v20  ;;  %3474 = vmatprep.subr.bf16.mxu1 %v4387_v8  ;;  %v3174_v20 = vrot.slane %v1877_v54, %v1251_v52  ;;  %p4499_p12 = por %p4498_p11, %p4497_p10 }
 0x1ec   :  { %p4500_p13 = pnand %p4499_p12, %p4493_p9 }
 0x1ed   :  { %3311 = vmatpush1.bf16.msra.mxu0 %v4382_v9  ;;  %3475 = vmatpush1.bf16.msra.mxu1 %v4385_v10 }
 0x1ee   :  { %3312 = vmatprep.subr.bf16.mxu0 %v4390_v11  ;;  %3476 = vmatprep.subr.bf16.mxu1 %v4393_v12 }
 0x1f1   :  { %3313 = vmatpush1.bf16.msra.mxu0 %v4388_v31  ;;  %3477 = vmatpush1.bf16.msra.mxu1 %v4391_v13 }
 0x1f2   :  { %3314 = vmatprep.subr.bf16.mxu0 %v4396_v14  ;;  %3478 = vmatprep.subr.bf16.mxu1 %v4399_v15 }
 0x1f5   :  { %3315 = vmatpush1.bf16.msra.mxu0 %v4394_v16  ;;  %3479 = vmatpush1.bf16.msra.mxu1 %v4397_v17 }
 0x1f6   :  { %3316 = vmatprep.subr.bf16.mxu0 %v4402_v18  ;;  %3480 = vmatprep.subr.bf16.mxu1 %v4405_v19 }
 0x1f9   :  { %3317 = vmatpush1.bf16.msra.mxu0 %v4400_v22  ;;  %3481 = vmatpush1.bf16.msra.mxu1 %v4403_v23 }
 0x1fa   :  { %3318 = vmatprep.subr.bf16.mxu0 %v4408_v24  ;;  %3482 = vmatprep.subr.bf16.mxu1 %v4411_v25 }
 0x1fd   :  { %3319 = vmatpush1.bf16.msra.mxu0 %v4406_v26  ;;  %3483 = vmatpush1.bf16.msra.mxu1 %v4409_v27 }
 0x1fe   :  { %3320 = vmatprep.subr.bf16.mxu0 %v4414_v29  ;;  %3484 = vmatprep.subr.bf16.mxu1 %v4417_v30 }
 0x201   :  { %3321 = vmatpush1.bf16.msra.mxu0 %v4412_v45  ;;  %3485 = vmatpush1.bf16.msra.mxu1 %v4415_v32 }
 0x202   :  { %3322 = vmatprep.subr.bf16.mxu0 %v4420_v33  ;;  %3486 = vmatprep.subr.bf16.mxu1 %v4423_v35 }
 0x205   :  { %3323 = vmatpush1.bf16.msra.mxu0 %v4418_v37  ;;  %3487 = vmatpush1.bf16.msra.mxu1 %v4421_v38 }
 0x206   :  { %3324 = vmatprep.subr.bf16.mxu0 %v4426_v39  ;;  %3488 = vmatprep.subr.bf16.mxu1 %v4429_v40 }
 0x209   :  { %3325 = vmatpush1.bf16.msra.mxu0 %v4424_v42  ;;  %3489 = vmatpush1.bf16.msra.mxu1 %v4427_v44 }
 0x20a   :  { %3326 = vmatprep.subr.bf16.mxu0 %v4432_v46  ;;  %3490 = vmatprep.subr.bf16.mxu1 %v4435_v48 }
 0x20d   :  { %3327 = vmatpush1.bf16.msra.mxu0 %v4430_v51  ;;  %3491 = vmatpush1.bf16.msra.mxu1 %v4433_v28 }
 0x20e   :  { %3328 = vmatprep.subr.bf16.mxu0 %v4438_v55  ;;  %3492 = vmatprep.subr.bf16.mxu1 %v4441_v58 }
 0x211   :  { %3329 = vmatpush1.bf16.msra.mxu0 %v4436_v56  ;;  %3493 = vmatpush1.bf16.msra.mxu1 %v4439_v57 }
 0x212   :  { %3330 = vmatprep.subr.bf16.mxu0 %v4444_v59  ;;  %3494 = vmatprep.subr.bf16.mxu1 %v4447_v61 }
 0x215   :  { %3331 = vmatpush1.bf16.msra.mxu0 %v4442_v62  ;;  %3495 = vmatpush1.bf16.msra.mxu1 %v4445_v63 }
 0x216   :  { %3332 = vmatprep.subr.bf16.mxu0 %v4450_v0  ;;  %3496 = vmatprep.subr.bf16.mxu1 %v4453_v1 }
 0x219   :  { %3333 = vmatpush1.bf16.msra.mxu0 %v4448_v2  ;;  %3497 = vmatpush1.bf16.msra.mxu1 %v4451_v3 }
 0x21c   :  { %3335 = vmatmul.mubr.bf16.vlgmr.msra.gmra.mrb[8].mxu0 %v1619_v60  ;;  %3499 = vmatmul.mubr.bf16.vlgmr.msra.gmra.mrb[8].mxu1 %v1619_v60 }
 0x2ef   :  { %v3336_v8 = vpop.f32.mrb[8].mxu0  ;;  %v3500_v9 = vpop.f32.mrb[8].mxu1 }
 0x2f0   :  { %v4019_v10 = vadd.f32 %v3336_v8, %v3162_v5  ;;  %v4021_v11 = vadd.f32 %v3500_v9, %v3170_v6  ;;  %v3338_v12 = vpop.f32.mrb[9].mxu0  ;;  %v3502_v31 = vpop.f32.mrb[9].mxu1 }
 0x2f1   :  { %v4020_v13 = vadd.f32 %v3338_v12, %v3166_v7  ;;  %v4022_v14 = vadd.f32 %v3502_v31, %v3174_v20  ;;  %v3340_v15 = vpop.f32.mrb[10].mxu0  ;;  %v3504_v16 = vpop.f32.mrb[10].mxu1 }
 0x2f2   :  { %v3341_v47 = vpop.f32.mrb[11].mxu0  ;;  %v3505_v17 = vpop.f32.mrb[11].mxu1 }
 0x2f3   :  { %v3511_v18 = vcombine.low %v4019_v10, %v4020_v13  ;;  %v3512_v53 = vcombine.low %v4021_v11, %v4022_v14 }
 0x2f5   :  { %v3519_v19 = vrot.slane %v3511_v18, %v4587_v43  ;;  %v3526_v49 = vrot.slane %v3512_v53, %v4587_v43 }
 0x2f7   :  { %v3527_v34 = vcombine.low %v3519_v19, %v3526_v49 }
 0x2f9   :  { %v3534_v52 = vrot.slane %v3527_v34, %v4587_v43 }
 0x2fb   :  { %3540 = vst.msk [vmem:[#allocation7] sm:$0xf] %vm3538_vm0, %v3534_v52 }
 0x2fc   :  { %4503 = shalt.err (!%p4500_p13)
}
 0x2fd   :  { %s4504_s11 = scalar_lea.hbm %s5462_s6, 64 }
 0x2fe   :  { %p4505_p0 = scmp.ne.s32.totalorder %s5462_s6, %s4504_s11  ;;  %p4508_p1 = scmp.lt.u32.totalorder %s4504_s11, %s5462_s6 }
 0x300   :  { %p4510_p2 = pnand %p4508_p1, %p4505_p0 }
 0x302   :  { %4513 = shalt.err (!%p4510_p2)
}
 0x303   :  { %3550 = dma.vmem_to_hbm [thread:$0]  %s3548_s5, 64, %s5462_s6, [#allocation6]  }
 0x304   :  { %4516 = dma.done.wait [#allocation6], 64  }
 0x305   :  { %4517 = vsyncadd [#allocation6], 4294967232 }
 0x306   :  { %3554 = vsyncpa [#allocation5], 1 }
 0x307   :  { %3555 = vsyncpa [#allocation6], 1 }

// kernel: rnn_module_forward.1
= control target key start
LH: loop header
LB: loop body
LE: loop exit
PB: predicated region body
PF: predicated region fallthrough
CT: control target
= control target key end

     0   :  { %12 = vsyncpa [#allocation5], 0  ;;  %s5456_s0 = inlined_call_operand.<no memory space> [shape: s32[1], index: 0, kind: input, shape index: {}]   ;;  %s5457_s1 = inlined_call_operand.vmem [shape: bf16[512,1,384], index: 1, kind: input, shape index: {}]   ;;  %s5458_s2 = inlined_call_operand.hbm [shape: bf16[384,1024], index: 2, kind: input, shape index: {}]   ;;  %s5459_s3 = inlined_call_operand.vmem [shape: f32[1,1024], index: 3, kind: input, shape index: {}]   ;;  %s5460_s4 = inlined_call_operand.vmem [shape: bf16[1024,512], index: 4, kind: input, shape index: {}]   ;;  %s5461_s5 = inlined_call_operand.vmem [shape: f32[1,512], index: 5, kind: input, shape index: {}]   ;;  %s5462_s6 = inlined_call_operand.hbm [shape: f32[1,512], index: 6, kind: output, shape index: {}]  }
   0x1   :  { %13 = vsyncpa [#allocation6], 0  ;;  %s4518_s21 = smov [#allocation4]   ;;  %s4470_s25 = scalar_lea.hbm %s5458_s2, 24576 }
   0x2   :  { %s27_s22 = sshll.u32 %s4518_s21, 4  ;;  %p4471_p0 = scmp.ne.s32.totalorder %s5458_s2, %s4470_s25  ;;  %s28_s22 = int_to_ptr.vmem [resolvable:$true] %s27_s22 }
   0x3   :  { %p4474_p1 = scmp.lt.u32.totalorder %s4470_s25, %s5458_s2 }
   0x5   :  { %p4476_p2 = pnand %p4474_p1, %p4471_p0 }
   0x7   :  { %4479 = shalt.err (!%p4476_p2)
}
   0x8   :  { %s4480_s30 = scalar_lea.vmem %s28_s22, 24576  ;;  %p4485_p4 = scmp.lt.s32.totalorder %s28_s22, %s28_s22 }
   0x9   :  { %p4481_p3 = scmp.ne.s32.totalorder %s28_s22, %s4480_s30  ;;  %p4486_p5 = scmp.lt.s32.totalorder %s4480_s30, %s4480_s30 }
   0xb   :  { %p4487_p6 = por %p4486_p5, %p4485_p4 }
   0xd   :  { %p4488_p7 = pnand %p4487_p6, %p4481_p3 }
   0xf   :  { %4491 = shalt.err (!%p4488_p7)
}
  0x10   :  { %s4519_s7 = smov 512   ;;  %s4520_s8 = smov 32  }
  0x11   :  { %33 = dma.hbm_to_vmem [thread:$0]  %s5458_s2, 24576, %s28_s22, [#allocation5], %s4519_s7, %s4519_s7, %s4520_s8  }
  0x12   :  { %4514 = dma.done.wait [#allocation5], 24576  }
  0x13   :  { %4515 = vsyncadd [#allocation5], 4294942720  ;;  %v56_v0 = vld [vmem:[#allocation4] sm:$0xff]  ;;  %p49_p8 = scmp.lt.s32.totalorder %s5456_s0, 511  ;;  %v57_v11 = vld [vmem:[#allocation4 + $0x8] sm:$0xff]  ;;  %v261_v21 = vlaneseq }
  0x14   :  { %v60_v1 = vld [vmem:[#allocation4 + $0x20] sm:$0xff]  ;;  %v61_v12 = vld [vmem:[#allocation4 + $0x28] sm:$0xff]  ;;  %v4521_v19 = vmov 1966171168  }
  0x15   :  { %v64_v2 = vld [vmem:[#allocation4 + $0x40] sm:$0xff]  ;;  %v3564_v3 = vcombine.high %v56_v0, %v60_v1  ;;  %v3563_v4 = vcombine.low %v56_v0, %v60_v1  ;;  %s5464_s0 = smov (!%p49_p8, %s5456_s0), 511  ;;  %v3566_v15 = vcombine.high %v57_v11, %v61_v12  ;;  %v3565_v16 = vcombine.low %v57_v11, %v61_v12  ;;  %v65_v17 = vld [vmem:[#allocation4 + $0x48] sm:$0xff] }
  0x16   :  { %v68_v5 = vld [vmem:[#allocation4 + $0x60] sm:$0xff]  ;;  %v69_v18 = vld [vmem:[#allocation4 + $0x68] sm:$0xff]  ;;  %v259_v20 = vunpack.c.l.s4 %v4521_v19  ;;  %s4063_s14 = smul.u32 3, %s5464_s0  ;;  %v4581_v34 = vshrl.u32 %v261_v21, 7  ;;  %vm3538_vm0 = vcmp.lt.s32.totalorder %v261_v21, 512 }
  0x17   :  { %v3572_v6 = vcombine.high %v64_v2, %v68_v5  ;;  %v72_v7 = vld [vmem:[#allocation4 + $0x80] sm:$0xff]  ;;  %1277 = vmatprep.subr.bf16.mxu0 %v3564_v3  ;;  %v3571_v9 = vcombine.low %v64_v2, %v68_v5  ;;  %1359 = vmatprep.subr.bf16.mxu1 %v3566_v15  ;;  %v3574_v23 = vcombine.high %v65_v17, %v69_v18  ;;  %v73_v24 = vld [vmem:[#allocation4 + $0x88] sm:$0xff] }
  0x18   :  { %v76_v8 = vld [vmem:[#allocation4 + $0xa0] sm:$0xff]  ;;  %1278 = vmatpush1.bf16.msra.mxu0 %v3563_v4  ;;  %v77_v25 = vld [vmem:[#allocation4 + $0xa8] sm:$0xff]  ;;  %1360 = vmatpush1.bf16.msra.mxu1 %v3565_v16  ;;  %v3573_v27 = vcombine.low %v65_v17, %v69_v18  ;;  %v260_v33 = vunpack.c.0.s8 %v259_v20  ;;  %s52_s0 = scalar_lea.vmem %s5457_s1, %s4063_s14 }
  0x19   :  { %1279 = vmatprep.subr.bf16.mxu0 %v3572_v6  ;;  %v3580_v10 = vcombine.high %v72_v7, %v76_v8  ;;  %v80_v13 = vld [vmem:[#allocation4 + $0xc0] sm:$0xff]  ;;  %v3579_v22 = vcombine.low %v72_v7, %v76_v8  ;;  %1361 = vmatprep.subr.bf16.mxu1 %v3574_v23  ;;  %v3582_v30 = vcombine.high %v73_v24, %v77_v25  ;;  %v81_v31 = vld [vmem:[#allocation4 + $0xc8] sm:$0xff] }
  0x1a   :  { %v84_v14 = vld [vmem:[#allocation4 + $0xe0] sm:$0xff]  ;;  %v85_v32 = vld [vmem:[#allocation4 + $0xe8] sm:$0xff]  ;;  %v3581_v37 = vcombine.low %v73_v24, %v77_v25  ;;  %v4587_v43 = vsub.s32 %v260_v33, %v4581_v34 }
  0x1b   :  { %v3588_v26 = vcombine.high %v80_v13, %v84_v14  ;;  %v88_v28 = vld [vmem:[#allocation4 + $0x100] sm:$0xff]  ;;  %v3587_v35 = vcombine.low %v80_v13, %v84_v14  ;;  %v3590_v40 = vcombine.high %v81_v31, %v85_v32  ;;  %v89_v41 = vld [vmem:[#allocation4 + $0x108] sm:$0xff]  ;;  %v3589_v47 = vcombine.low %v81_v31, %v85_v32 }
  0x1c   :  { %1280 = vmatpush1.bf16.msra.mxu0 %v3571_v9  ;;  %v92_v29 = vld [vmem:[#allocation4 + $0x120] sm:$0xff]  ;;  %1362 = vmatpush1.bf16.msra.mxu1 %v3573_v27  ;;  %v93_v42 = vld [vmem:[#allocation4 + $0x128] sm:$0xff] }
  0x1d   :  { %1281 = vmatprep.subr.bf16.mxu0 %v3580_v10  ;;  %v3596_v36 = vcombine.high %v88_v28, %v92_v29  ;;  %v96_v38 = vld [vmem:[#allocation4 + $0x140] sm:$0xff]  ;;  %1363 = vmatprep.subr.bf16.mxu1 %v3582_v30  ;;  %v3595_v44 = vcombine.low %v88_v28, %v92_v29  ;;  %v3598_v51 = vcombine.high %v89_v41, %v93_v42  ;;  %v97_v52 = vld [vmem:[#allocation4 + $0x148] sm:$0xff] }
  0x1e   :  { %v100_v39 = vld [vmem:[#allocation4 + $0x160] sm:$0xff]  ;;  %v101_v53 = vld [vmem:[#allocation4 + $0x168] sm:$0xff]  ;;  %v3597_v57 = vcombine.low %v89_v41, %v93_v42 }
  0x1f   :  { %v4589_v45 = vld.sshfl [vmem:[%s52_s0] sm:$0x13 pattern:$0x75316420]  ;;  %v3604_v46 = vcombine.high %v96_v38, %v100_v39  ;;  %v3603_v55 = vcombine.low %v96_v38, %v100_v39  ;;  %v3606_v60 = vcombine.high %v97_v52, %v101_v53  ;;  %v105_v61 = vld [vmem:[#allocation4 + $0x188] sm:$0xff]  ;;  %v3605_v1 = vcombine.low %v97_v52, %v101_v53 }
  0x20   :  { %1282 = vmatpush1.bf16.msra.mxu0 %v3579_v22  ;;  %1364 = vmatpush1.bf16.msra.mxu1 %v3581_v37  ;;  %v257_v48 = vcombine.high %v4589_v45, %v4589_v45  ;;  %v104_v49 = vld [vmem:[#allocation4 + $0x180] sm:$0xff]  ;;  %v109_v62 = vld [vmem:[#allocation4 + $0x1a8] sm:$0xff] }
  0x21   :  { %1283 = vmatprep.subr.bf16.mxu0 %v3588_v26  ;;  %v108_v50 = vld [vmem:[#allocation4 + $0x1a0] sm:$0xff]  ;;  %1365 = vmatprep.subr.bf16.mxu1 %v3590_v40  ;;  %v3614_v4 = vcombine.high %v105_v61, %v109_v62  ;;  %v113_v5 = vld [vmem:[#allocation4 + $0x1c8] sm:$0xff]  ;;  %v3613_v9 = vcombine.low %v105_v61, %v109_v62 }
  0x22   :  { %v4594_v54 = vrot.slane %v257_v48, %v4587_v43  ;;  %v3612_v56 = vcombine.high %v104_v49, %v108_v50  ;;  %v112_v58 = vld [vmem:[#allocation4 + $0x1c0] sm:$0xff]  ;;  %v3611_v63 = vcombine.low %v104_v49, %v108_v50  ;;  %v117_v6 = vld [vmem:[#allocation4 + $0x1e8] sm:$0xff] }
  0x23   :  { %v116_v59 = vld [vmem:[#allocation4 + $0x1e0] sm:$0xff]  ;;  %v3622_v12 = vcombine.high %v113_v5, %v117_v6  ;;  %v121_v13 = vld [vmem:[#allocation4 + $0x208] sm:$0xff]  ;;  %v3621_v17 = vcombine.low %v113_v5, %v117_v6 }
  0x24   :  { %1284 = vmatpush1.bf16.msra.mxu0 %v3587_v35  ;;  %1366 = vmatpush1.bf16.msra.mxu1 %v3589_v47  ;;  %v3620_v0 = vcombine.high %v112_v58, %v116_v59  ;;  %v120_v2 = vld [vmem:[#allocation4 + $0x200] sm:$0xff]  ;;  %v3619_v7 = vcombine.low %v112_v58, %v116_v59  ;;  %v125_v14 = vld [vmem:[#allocation4 + $0x228] sm:$0xff] }
  0x25   :  { %1285 = vmatprep.subr.bf16.mxu0 %v3596_v36  ;;  %1367 = vmatprep.subr.bf16.mxu1 %v3598_v51  ;;  %v124_v3 = vld [vmem:[#allocation4 + $0x220] sm:$0xff]  ;;  %v3630_v20 = vcombine.high %v121_v13, %v125_v14  ;;  %v129_v22 = vld [vmem:[#allocation4 + $0x248] sm:$0xff]  ;;  %v3629_v26 = vcombine.low %v121_v13, %v125_v14 }
  0x26   :  { %1309 = vmatprep.mubr.bf16.mxu0 %v4594_v54  ;;  %1391 = vmatprep.mubr.bf16.mxu1 %v4594_v54  ;;  %v3628_v8 = vcombine.high %v120_v2, %v124_v3  ;;  %v128_v10 = vld [vmem:[#allocation4 + $0x240] sm:$0xff]  ;;  %v3627_v15 = vcombine.low %v120_v2, %v124_v3  ;;  %v133_v23 = vld [vmem:[#allocation4 + $0x268] sm:$0xff] }
  0x27   :  { %v132_v11 = vld [vmem:[#allocation4 + $0x260] sm:$0xff]  ;;  %v3638_v29 = vcombine.high %v129_v22, %v133_v23  ;;  %v137_v30 = vld [vmem:[#allocation4 + $0x288] sm:$0xff]  ;;  %v3637_v35 = vcombine.low %v129_v22, %v133_v23 }
  0x28   :  { %1286 = vmatpush1.bf16.msra.mxu0 %v3595_v44  ;;  %1368 = vmatpush1.bf16.msra.mxu1 %v3597_v57  ;;  %v3636_v16 = vcombine.high %v128_v10, %v132_v11  ;;  %v136_v18 = vld [vmem:[#allocation4 + $0x280] sm:$0xff]  ;;  %v3635_v24 = vcombine.low %v128_v10, %v132_v11  ;;  %v141_v31 = vld [vmem:[#allocation4 + $0x2a8] sm:$0xff] }
  0x29   :  { %1287 = vmatprep.subr.bf16.mxu0 %v3604_v46  ;;  %1369 = vmatprep.subr.bf16.mxu1 %v3606_v60  ;;  %v140_v19 = vld [vmem:[#allocation4 + $0x2a0] sm:$0xff]  ;;  %v3646_v38 = vcombine.high %v137_v30, %v141_v31  ;;  %v145_v39 = vld [vmem:[#allocation4 + $0x2c8] sm:$0xff]  ;;  %v3645_v44 = vcombine.low %v137_v30, %v141_v31  ;;  %v4522_v31 = vmov 0  }
  0x2a   :  { %v3644_v25 = vcombine.high %v136_v18, %v140_v19  ;;  %v144_v27 = vld [vmem:[#allocation4 + $0x2c0] sm:$0xff]  ;;  %v3643_v32 = vcombine.low %v136_v18, %v140_v19  ;;  %v149_v40 = vld [vmem:[#allocation4 + $0x2e8] sm:$0xff] }
  0x2b   :  { %v148_v28 = vld [vmem:[#allocation4 + $0x2e0] sm:$0xff]  ;;  %v3654_v48 = vcombine.high %v145_v39, %v149_v40  ;;  %v153_v49 = vld [vmem:[#allocation4 + $0x308] sm:$0xff]  ;;  %v3653_v53 = vcombine.low %v145_v39, %v149_v40 }
  0x2c   :  { %1288 = vmatpush1.bf16.msra.mxu0 %v3603_v55  ;;  %1370 = vmatpush1.bf16.msra.mxu1 %v3605_v1  ;;  %v3652_v33 = vcombine.high %v144_v27, %v148_v28  ;;  %v152_v36 = vld [vmem:[#allocation4 + $0x300] sm:$0xff]  ;;  %v3651_v41 = vcombine.low %v144_v27, %v148_v28  ;;  %v157_v50 = vld [vmem:[#allocation4 + $0x328] sm:$0xff] }
  0x2d   :  { %1289 = vmatprep.subr.bf16.mxu0 %v3612_v56  ;;  %1371 = vmatprep.subr.bf16.mxu1 %v3614_v4  ;;  %v156_v37 = vld [vmem:[#allocation4 + $0x320] sm:$0xff]  ;;  %v3662_v57 = vcombine.high %v153_v49, %v157_v50  ;;  %v161_v58 = vld [vmem:[#allocation4 + $0x348] sm:$0xff]  ;;  %v3661_v62 = vcombine.low %v153_v49, %v157_v50 }
  0x2e   :  { %v3660_v42 = vcombine.high %v152_v36, %v156_v37  ;;  %v160_v46 = vld [vmem:[#allocation4 + $0x340] sm:$0xff]  ;;  %v3659_v51 = vcombine.low %v152_v36, %v156_v37  ;;  %v165_v59 = vld [vmem:[#allocation4 + $0x368] sm:$0xff] }
  0x2f   :  { %v164_v47 = vld [vmem:[#allocation4 + $0x360] sm:$0xff]  ;;  %v3670_v1 = vcombine.high %v161_v58, %v165_v59  ;;  %v169_v2 = vld [vmem:[#allocation4 + $0x388] sm:$0xff] }
  0x30   :  { %1290 = vmatpush1.bf16.msra.mxu0 %v3611_v63  ;;  %1372 = vmatpush1.bf16.msra.mxu1 %v3613_v9  ;;  %v3668_v52 = vcombine.high %v160_v46, %v164_v47  ;;  %v168_v55 = vld [vmem:[#allocation4 + $0x380] sm:$0xff]  ;;  %v3667_v60 = vcombine.low %v160_v46, %v164_v47  ;;  %v173_v3 = vld [vmem:[#allocation4 + $0x3a8] sm:$0xff] }
  0x31   :  { %1291 = vmatprep.subr.bf16.mxu0 %v3620_v0  ;;  %1373 = vmatprep.subr.bf16.mxu1 %v3622_v12  ;;  %v172_v56 = vld [vmem:[#allocation4 + $0x3a0] sm:$0xff]  ;;  %v3678_v9 = vcombine.high %v169_v2, %v173_v3  ;;  %v177_v10 = vld [vmem:[#allocation4 + $0x3c8] sm:$0xff] }
  0x32   :  { %v3676_v61 = vcombine.high %v168_v55, %v172_v56  ;;  %v176_v63 = vld [vmem:[#allocation4 + $0x3c0] sm:$0xff]  ;;  %v3675_v4 = vcombine.low %v168_v55, %v172_v56  ;;  %v181_v11 = vld [vmem:[#allocation4 + $0x3e8] sm:$0xff] }
  0x33   :  { %v180_v0 = vld [vmem:[#allocation4 + $0x3e0] sm:$0xff]  ;;  %v185_v18 = vld [vmem:[#allocation4 + $0x408] sm:$0xff] }
  0x34   :  { %1292 = vmatpush1.bf16.msra.mxu0 %v3619_v7  ;;  %1374 = vmatpush1.bf16.msra.mxu1 %v3621_v17  ;;  %v184_v5 = vld [vmem:[#allocation4 + $0x400] sm:$0xff]  ;;  %v3684_v7 = vcombine.high %v176_v63, %v180_v0  ;;  %v3683_v12 = vcombine.low %v176_v63, %v180_v0  ;;  %v3686_v17 = vcombine.high %v177_v10, %v181_v11  ;;  %v189_v19 = vld [vmem:[#allocation4 + $0x428] sm:$0xff] }
  0x35   :  { %1293 = vmatprep.subr.bf16.mxu0 %v3628_v8  ;;  %1375 = vmatprep.subr.bf16.mxu1 %v3630_v20  ;;  %v188_v6 = vld [vmem:[#allocation4 + $0x420] sm:$0xff]  ;;  %v3669_v8 = vcombine.low %v161_v58, %v165_v59  ;;  %v4600_v20 = vrot.slane %v4589_v45, %v4587_v43  ;;  %v3694_v27 = vcombine.high %v185_v18, %v189_v19  ;;  %v193_v28 = vld [vmem:[#allocation4 + $0x448] sm:$0xff] }
  0x36   :  { %v192_v13 = vld [vmem:[#allocation4 + $0x440] sm:$0xff]  ;;  %v3691_v22 = vcombine.low %v184_v5, %v188_v6  ;;  %v201_v37 = vld [vmem:[#allocation4 + $0x488] sm:$0xff] }
  0x37   :  { %v196_v14 = vld [vmem:[#allocation4 + $0x460] sm:$0xff]  ;;  %v209_v47 = vld [vmem:[#allocation4 + $0x4c8] sm:$0xff] }
  0x38   :  { %1294 = vmatpush1.bf16.msra.mxu0 %v3627_v15  ;;  %1376 = vmatpush1.bf16.msra.mxu1 %v3629_v26  ;;  %v3692_v15 = vcombine.high %v184_v5, %v188_v6  ;;  %v3700_v23 = vcombine.high %v192_v13, %v196_v14  ;;  %v204_v26 = vld [vmem:[#allocation4 + $0x4a0] sm:$0xff]  ;;  %v3699_v30 = vcombine.low %v192_v13, %v196_v14  ;;  %v217_v55 = vld [vmem:[#allocation4 + $0x508] sm:$0xff]  ;;  %v62_v13 = vld [vmem:[#allocation4 + $0x30] sm:$0xff] }
  0x39   :  { %1295 = vmatprep.subr.bf16.mxu0 %v3636_v16  ;;  %1377 = vmatprep.subr.bf16.mxu1 %v3638_v29  ;;  %v3677_v16 = vcombine.low %v169_v2, %v173_v3  ;;  %v197_v29 = vld [vmem:[#allocation4 + $0x468] sm:$0xff]  ;;  %v244_v5 = vld [vmem:[#allocation4 + $0x5e0] sm:$0xff] }
  0x3a   :  { %v3702_v36 = vcombine.high %v193_v28, %v197_v29  ;;  %v225_v63 = vld [vmem:[#allocation4 + $0x548] sm:$0xff] }
  0x3c   :  { %1296 = vmatpush1.bf16.msra.mxu0 %v3635_v24  ;;  %1378 = vmatpush1.bf16.msra.mxu1 %v3637_v35  ;;  %v3685_v24 = vcombine.low %v177_v10, %v181_v11  ;;  %v212_v35 = vld [vmem:[#allocation4 + $0x4e0] sm:$0xff] }
  0x3d   :  { %1297 = vmatprep.subr.bf16.mxu0 %v3644_v25  ;;  %1379 = vmatprep.subr.bf16.mxu1 %v3646_v38  ;;  %v200_v25 = vld [vmem:[#allocation4 + $0x480] sm:$0xff]  ;;  %v205_v38 = vld [vmem:[#allocation4 + $0x4a8] sm:$0xff] }
  0x3e   :  { %v3708_v45 = vcombine.high %v200_v25, %v204_v26  ;;  %v3707_v39 = vcombine.low %v200_v25, %v204_v26  ;;  %v3710_v46 = vcombine.high %v201_v37, %v205_v38  ;;  %v59_v25 = vld [vmem:[#allocation4 + $0x18] sm:$0xff] }
  0x40   :  { %1298 = vmatpush1.bf16.msra.mxu0 %v3643_v32  ;;  %1380 = vmatpush1.bf16.msra.mxu1 %v3645_v44  ;;  %v3693_v32 = vcombine.low %v185_v18, %v189_v19  ;;  %v3701_v44 = vcombine.low %v193_v28, %v197_v29  ;;  %v4608_v28 = vcombine.high %v4600_v20, %v4600_v20 }
  0x41   :  { %1299 = vmatprep.subr.bf16.mxu0 %v3652_v33  ;;  %1381 = vmatprep.subr.bf16.mxu1 %v3654_v48  ;;  %v208_v33 = vld [vmem:[#allocation4 + $0x4c0] sm:$0xff]  ;;  %v213_v48 = vld [vmem:[#allocation4 + $0x4e8] sm:$0xff] }
  0x42   :  { %v3716_v40 = vcombine.high %v208_v33, %v212_v35  ;;  %v3715_v49 = vcombine.low %v208_v33, %v212_v35  ;;  %v3718_v56 = vcombine.high %v209_v47, %v213_v48  ;;  %v67_v35 = vld [vmem:[#allocation4 + $0x58] sm:$0xff] }
  0x44   :  { %1300 = vmatpush1.bf16.msra.mxu0 %v3651_v41  ;;  %1382 = vmatpush1.bf16.msra.mxu1 %v3653_v53  ;;  %v216_v41 = vld [vmem:[#allocation4 + $0x500] sm:$0xff]  ;;  %v3709_v53 = vcombine.low %v201_v37, %v205_v38  ;;  %v71_v37 = vld [vmem:[#allocation4 + $0x78] sm:$0xff] }
  0x45   :  { %1301 = vmatprep.subr.bf16.mxu0 %v3660_v42  ;;  %1383 = vmatprep.subr.bf16.mxu1 %v3662_v57  ;;  %v220_v42 = vld [vmem:[#allocation4 + $0x520] sm:$0xff]  ;;  %v221_v57 = vld [vmem:[#allocation4 + $0x528] sm:$0xff] }
  0x46   :  { %v3724_v50 = vcombine.high %v216_v41, %v220_v42  ;;  %v3723_v58 = vcombine.low %v216_v41, %v220_v42  ;;  %v3726_v0 = vcombine.high %v217_v55, %v221_v57  ;;  %v3725_v6 = vcombine.low %v217_v55, %v221_v57  ;;  %v86_v41 = vld [vmem:[#allocation4 + $0xf0] sm:$0xff] }
  0x48   :  { %1302 = vmatpush1.bf16.msra.mxu0 %v3659_v51  ;;  %1384 = vmatpush1.bf16.msra.mxu1 %v3661_v62  ;;  %v224_v51 = vld [vmem:[#allocation4 + $0x540] sm:$0xff]  ;;  %v3717_v62 = vcombine.low %v209_v47, %v213_v48  ;;  %v79_v47 = vld [vmem:[#allocation4 + $0xb8] sm:$0xff] }
  0x49   :  { %1303 = vmatprep.subr.bf16.mxu0 %v3668_v52  ;;  %1385 = vmatprep.subr.bf16.mxu1 %v3670_v1  ;;  %v228_v52 = vld [vmem:[#allocation4 + $0x560] sm:$0xff]  ;;  %v229_v1 = vld [vmem:[#allocation4 + $0x568] sm:$0xff] }
  0x4a   :  { %v3732_v59 = vcombine.high %v224_v51, %v228_v52  ;;  %v3731_v2 = vcombine.low %v224_v51, %v228_v52  ;;  %v3733_v14 = vcombine.low %v225_v63, %v229_v1  ;;  %v94_v51 = vld [vmem:[#allocation4 + $0x130] sm:$0xff]  ;;  %v3577_v52 = vcombine.low %v67_v35, %v71_v37 }
  0x4c   :  { %1304 = vmatpush1.bf16.msra.mxu0 %v3667_v60  ;;  %1386 = vmatpush1.bf16.msra.mxu1 %v3669_v8  ;;  %v232_v60 = vld [vmem:[#allocation4 + $0x580] sm:$0xff]  ;;  %v3734_v8 = vcombine.high %v225_v63, %v229_v1 }
  0x4d   :  { %1305 = vmatprep.subr.bf16.mxu0 %v3676_v61  ;;  %1387 = vmatprep.subr.bf16.mxu1 %v3678_v9  ;;  %v236_v61 = vld [vmem:[#allocation4 + $0x5a0] sm:$0xff]  ;;  %v237_v9 = vld [vmem:[#allocation4 + $0x5a8] sm:$0xff] }
  0x4e   :  { %v3740_v3 = vcombine.high %v232_v60, %v236_v61  ;;  %v3739_v10 = vcombine.low %v232_v60, %v236_v61  ;;  %v102_v60 = vld [vmem:[#allocation4 + $0x170] sm:$0xff] }
  0x50   :  { %1306 = vmatpush1.bf16.msra.mxu0 %v3675_v4  ;;  %1388 = vmatpush1.bf16.msra.mxu1 %v3677_v16  ;;  %v240_v4 = vld [vmem:[#allocation4 + $0x5c0] sm:$0xff] }
  0x51   :  { %1307 = vmatprep.subr.bf16.mxu0 %v3684_v7  ;;  %1389 = vmatprep.subr.bf16.mxu1 %v3686_v17  ;;  %v233_v7 = vld [vmem:[#allocation4 + $0x588] sm:$0xff]  ;;  %v3748_v11 = vcombine.high %v240_v4, %v244_v5  ;;  %v3747_v18 = vcombine.low %v240_v4, %v244_v5  ;;  %v110_v4 = vld [vmem:[#allocation4 + $0x1b0] sm:$0xff]  ;;  %v99_v5 = vld [vmem:[#allocation4 + $0x158] sm:$0xff] }
  0x52   :  { %v3742_v16 = vcombine.high %v233_v7, %v237_v9  ;;  %v245_v17 = vld [vmem:[#allocation4 + $0x5e8] sm:$0xff] }
  0x54   :  { %1308 = vmatpush1.bf16.msra.mxu0 %v3683_v12  ;;  %1390 = vmatpush1.bf16.msra.mxu1 %v3685_v24  ;;  %v58_v12 = vld [vmem:[#allocation4 + $0x10] sm:$0xff]  ;;  %v3741_v24 = vcombine.low %v233_v7, %v237_v9  ;;  %v103_v7 = vld [vmem:[#allocation4 + $0x178] sm:$0xff] }
  0x55   :  { %1318 = vmatprep.subr.bf16.mxu0 %v3692_v15  ;;  %1400 = vmatprep.subr.bf16.mxu1 %v3694_v27  ;;  %v241_v15 = vld [vmem:[#allocation4 + $0x5c8] sm:$0xff]  ;;  %v3568_v19 = vcombine.high %v58_v12, %v62_v13  ;;  %v63_v27 = vld [vmem:[#allocation4 + $0x38] sm:$0xff]  ;;  %v3567_v29 = vcombine.low %v58_v12, %v62_v13  ;;  %v114_v9 = vld [vmem:[#allocation4 + $0x1d0] sm:$0xff] }
  0x56   :  { %v3750_v26 = vcombine.high %v241_v15, %v245_v17  ;;  %v3749_v33 = vcombine.low %v241_v15, %v245_v17  ;;  %v3569_v42 = vcombine.low %v59_v25, %v63_v27  ;;  %v107_v13 = vld [vmem:[#allocation4 + $0x198] sm:$0xff]  ;;  %v3610_v15 = vcombine.high %v99_v5, %v103_v7  ;;  %v122_v17 = vld [vmem:[#allocation4 + $0x210] sm:$0xff] }
  0x57   :  { %1310 = vmatmul.mubr.bf16.vlgmr.msra.gmra.mrb[0].mxu0 %v4600_v20  ;;  %1392 = vmatmul.mubr.bf16.vlgmr.msra.gmra.mrb[0].mxu1 %v4600_v20 }
  0x58   :  { %1319 = vmatpush1.bf16.msra.mxu0 %v3691_v22  ;;  %1350 = vmatprep.mubr.bf16.mxu0 %v4522_v31  ;;  %v66_v22 = vld [vmem:[#allocation4 + $0x50] sm:$0xff] }
  0x59   :  { %1320 = vmatprep.subr.bf16.mxu0 %v3700_v23  ;;  %1401 = vmatpush1.bf16.msra.mxu1 %v3693_v32  ;;  %v70_v23 = vld [vmem:[#allocation4 + $0x70] sm:$0xff] }
  0x5a   :  { %1402 = vmatprep.subr.bf16.mxu1 %v3702_v36  ;;  %1432 = vmatprep.mubr.bf16.mxu1 %v4522_v31  ;;  %v78_v32 = vld [vmem:[#allocation4 + $0xb0] sm:$0xff]  ;;  %v3570_v36 = vcombine.high %v59_v25, %v63_v27  ;;  %v3575_v38 = vcombine.low %v66_v22, %v70_v23 }
  0x5b   :  { %v130_v27 = vld [vmem:[#allocation4 + $0x250] sm:$0xff] }
  0x5c   :  { %1321 = vmatpush1.bf16.msra.mxu0 %v3699_v30  ;;  %v3576_v30 = vcombine.high %v66_v22, %v70_v23  ;;  %v3609_v22 = vcombine.low %v99_v5, %v103_v7  ;;  %v115_v23 = vld [vmem:[#allocation4 + $0x1d8] sm:$0xff]  ;;  %v170_v7 = vld [vmem:[#allocation4 + $0x390] sm:$0xff] }
  0x5d   :  { %1322 = vmatprep.subr.bf16.mxu0 %v3708_v45  ;;  %1403 = vmatpush1.bf16.msra.mxu1 %v3701_v44  ;;  %v74_v45 = vld [vmem:[#allocation4 + $0x90] sm:$0xff]  ;;  %v75_v44 = vld [vmem:[#allocation4 + $0x98] sm:$0xff] }
  0x5e   :  { %1404 = vmatprep.subr.bf16.mxu1 %v3710_v46  ;;  %v3578_v46 = vcombine.high %v67_v35, %v71_v37  ;;  %v3583_v48 = vcombine.low %v74_v45, %v78_v32  ;;  %v3586_v55 = vcombine.high %v75_v44, %v79_v47  ;;  %v3585_v61 = vcombine.low %v75_v44, %v79_v47  ;;  %v138_v37 = vld [vmem:[#allocation4 + $0x290] sm:$0xff] }
  0x5f   :  { %v146_v47 = vld [vmem:[#allocation4 + $0x2d0] sm:$0xff] }
  0x60   :  { %1323 = vmatpush1.bf16.msra.mxu0 %v3707_v39  ;;  %v3584_v39 = vcombine.high %v74_v45, %v78_v32  ;;  %v123_v32 = vld [vmem:[#allocation4 + $0x218] sm:$0xff] }
  0x61   :  { %1324 = vmatprep.subr.bf16.mxu0 %v3716_v40  ;;  %1405 = vmatpush1.bf16.msra.mxu1 %v3709_v53  ;;  %v82_v40 = vld [vmem:[#allocation4 + $0xd0] sm:$0xff]  ;;  %v83_v53 = vld [vmem:[#allocation4 + $0xd8] sm:$0xff] }
  0x62   :  { %1406 = vmatprep.subr.bf16.mxu1 %v3718_v56  ;;  %v87_v56 = vld [vmem:[#allocation4 + $0xf8] sm:$0xff]  ;;  %v3591_v57 = vcombine.low %v82_v40, %v86_v41 }
  0x63   :  { %v3594_v63 = vcombine.high %v83_v53, %v87_v56 }
  0x64   :  { %1325 = vmatpush1.bf16.msra.mxu0 %v3715_v49  ;;  %v3592_v49 = vcombine.high %v82_v40, %v86_v41  ;;  %v131_v41 = vld [vmem:[#allocation4 + $0x258] sm:$0xff] }
  0x65   :  { %1326 = vmatprep.subr.bf16.mxu0 %v3724_v50  ;;  %1407 = vmatpush1.bf16.msra.mxu1 %v3717_v62  ;;  %v90_v50 = vld [vmem:[#allocation4 + $0x110] sm:$0xff]  ;;  %v91_v62 = vld [vmem:[#allocation4 + $0x118] sm:$0xff] }
  0x66   :  { %1408 = vmatprep.subr.bf16.mxu1 %v3726_v0  ;;  %v95_v0 = vld [vmem:[#allocation4 + $0x138] sm:$0xff]  ;;  %v3599_v1 = vcombine.low %v90_v50, %v94_v51 }
  0x67   :  { %v3601_v12 = vcombine.low %v91_v62, %v95_v0 }
  0x68   :  { %1327 = vmatpush1.bf16.msra.mxu0 %v3723_v58  ;;  %v3600_v58 = vcombine.high %v90_v50, %v94_v51  ;;  %v139_v51 = vld [vmem:[#allocation4 + $0x298] sm:$0xff] }
  0x69   :  { %1328 = vmatprep.subr.bf16.mxu0 %v3732_v59  ;;  %1409 = vmatpush1.bf16.msra.mxu1 %v3725_v6  ;;  %v98_v59 = vld [vmem:[#allocation4 + $0x150] sm:$0xff]  ;;  %v3602_v6 = vcombine.high %v91_v62, %v95_v0 }
  0x6a   :  { %1410 = vmatprep.subr.bf16.mxu1 %v3734_v8  ;;  %v3607_v8 = vcombine.low %v98_v59, %v102_v60  ;;  %v162_v0 = vld [vmem:[#allocation4 + $0x350] sm:$0xff] }
  0x6c   :  { %1329 = vmatpush1.bf16.msra.mxu0 %v3731_v2  ;;  %v3608_v2 = vcombine.high %v98_v59, %v102_v60  ;;  %v147_v60 = vld [vmem:[#allocation4 + $0x2d8] sm:$0xff] }
  0x6d   :  { %1330 = vmatprep.subr.bf16.mxu0 %v3740_v3  ;;  %1411 = vmatpush1.bf16.msra.mxu1 %v3733_v14  ;;  %v106_v3 = vld [vmem:[#allocation4 + $0x190] sm:$0xff]  ;;  %v111_v14 = vld [vmem:[#allocation4 + $0x1b8] sm:$0xff] }
  0x6e   :  { %1412 = vmatprep.subr.bf16.mxu1 %v3742_v16  ;;  %v3615_v16 = vcombine.low %v106_v3, %v110_v4  ;;  %v3618_v25 = vcombine.high %v107_v13, %v111_v14  ;;  %v3617_v45 = vcombine.low %v107_v13, %v111_v14 }
  0x70   :  { %1331 = vmatpush1.bf16.msra.mxu0 %v3739_v10  ;;  %v118_v10 = vld [vmem:[#allocation4 + $0x1f0] sm:$0xff] }
  0x71   :  { %1332 = vmatprep.subr.bf16.mxu0 %v3748_v11  ;;  %1413 = vmatpush1.bf16.msra.mxu1 %v3741_v24  ;;  %v3616_v11 = vcombine.high %v106_v3, %v110_v4  ;;  %v119_v24 = vld [vmem:[#allocation4 + $0x1f8] sm:$0xff] }
  0x72   :  { %1414 = vmatprep.subr.bf16.mxu1 %v3750_v26  ;;  %v3623_v26 = vcombine.low %v114_v9, %v118_v10  ;;  %v3626_v35 = vcombine.high %v115_v23, %v119_v24  ;;  %v3625_v40 = vcombine.low %v115_v23, %v119_v24  ;;  %v155_v4 = vld [vmem:[#allocation4 + $0x318] sm:$0xff] }
  0x74   :  { %1333 = vmatpush1.bf16.msra.mxu0 %v3747_v18  ;;  %v126_v18 = vld [vmem:[#allocation4 + $0x230] sm:$0xff] }
  0x75   :  { %1441 = vmatprep.subr.bf16.mxu0 %v3568_v19  ;;  %1415 = vmatpush1.bf16.msra.mxu1 %v3749_v33  ;;  %v3624_v19 = vcombine.high %v114_v9, %v118_v10  ;;  %v127_v33 = vld [vmem:[#allocation4 + $0x238] sm:$0xff] }
  0x76   :  { %1523 = vmatprep.subr.bf16.mxu1 %v3570_v36  ;;  %v3631_v36 = vcombine.low %v122_v17, %v126_v18  ;;  %v3634_v44 = vcombine.high %v123_v32, %v127_v33  ;;  %v3633_v50 = vcombine.low %v123_v32, %v127_v33 }
  0x77   :  { %1351 = vmatmul.mubr.bf16.vlgmr.msra.gmra.mrb[0].mxu0 %v4608_v28 }
  0x78   :  { %1442 = vmatpush1.bf16.msra.mxu0 %v3567_v29  ;;  %1473 = vmatprep.mubr.bf16.mxu0 %v4594_v54  ;;  %v134_v29 = vld [vmem:[#allocation4 + $0x270] sm:$0xff] }
  0x79   :  { %1443 = vmatprep.subr.bf16.mxu0 %v3576_v30  ;;  %1433 = vmatmul.mubr.bf16.vlgmr.msra.gmra.mrb[0].mxu1 %v4608_v28  ;;  %v3632_v30 = vcombine.high %v122_v17, %v126_v18 }
  0x7a   :  { %1524 = vmatpush1.bf16.msra.mxu1 %v3569_v42  ;;  %1555 = vmatprep.mubr.bf16.mxu1 %v4594_v54  ;;  %v3593_v54 = vcombine.low %v83_v53, %v87_v56  ;;  %v135_v42 = vld [vmem:[#allocation4 + $0x278] sm:$0xff]  ;;  %v154_v56 = vld [vmem:[#allocation4 + $0x310] sm:$0xff] }
  0x7b   :  { %1525 = vmatprep.subr.bf16.mxu1 %v3578_v46  ;;  %v3639_v46 = vcombine.low %v130_v27, %v134_v29  ;;  %v3642_v53 = vcombine.high %v131_v41, %v135_v42  ;;  %v3641_v59 = vcombine.low %v131_v41, %v135_v42 }
  0x7c   :  { %1444 = vmatpush1.bf16.msra.mxu0 %v3575_v38  ;;  %v142_v38 = vld [vmem:[#allocation4 + $0x2b0] sm:$0xff] }
  0x7d   :  { %1445 = vmatprep.subr.bf16.mxu0 %v3584_v39  ;;  %v3640_v39 = vcombine.high %v130_v27, %v134_v29 }
  0x7e   :  { %1526 = vmatpush1.bf16.msra.mxu1 %v3577_v52  ;;  %v143_v52 = vld [vmem:[#allocation4 + $0x2b8] sm:$0xff] }
  0x7f   :  { %1527 = vmatprep.subr.bf16.mxu1 %v3586_v55  ;;  %v3647_v55 = vcombine.low %v138_v37, %v142_v38  ;;  %v3650_v62 = vcombine.high %v139_v51, %v143_v52  ;;  %v3649_v3 = vcombine.low %v139_v51, %v143_v52 }
  0x80   :  { %1446 = vmatpush1.bf16.msra.mxu0 %v3583_v48  ;;  %v150_v48 = vld [vmem:[#allocation4 + $0x2f0] sm:$0xff] }
  0x81   :  { %1447 = vmatprep.subr.bf16.mxu0 %v3592_v49  ;;  %v3648_v49 = vcombine.high %v138_v37, %v142_v38 }
  0x82   :  { %1528 = vmatpush1.bf16.msra.mxu1 %v3585_v61  ;;  %v151_v61 = vld [vmem:[#allocation4 + $0x2f8] sm:$0xff] }
  0x83   :  { %1529 = vmatprep.subr.bf16.mxu1 %v3594_v63  ;;  %v3655_v63 = vcombine.low %v146_v47, %v150_v48  ;;  %v3658_v5 = vcombine.high %v147_v60, %v151_v61  ;;  %v3657_v10 = vcombine.low %v147_v60, %v151_v61  ;;  %v207_v60 = vld [vmem:[#allocation4 + $0x4b8] sm:$0xff] }
  0x84   :  { %1448 = vmatpush1.bf16.msra.mxu0 %v3591_v57  ;;  %v158_v57 = vld [vmem:[#allocation4 + $0x330] sm:$0xff] }
  0x85   :  { %1449 = vmatprep.subr.bf16.mxu0 %v3600_v58  ;;  %v3656_v58 = vcombine.high %v146_v47, %v150_v48 }
  0x86   :  { %1530 = vmatpush1.bf16.msra.mxu1 %v3593_v54  ;;  %v159_v54 = vld [vmem:[#allocation4 + $0x338] sm:$0xff] }
  0x87   :  { %1531 = vmatprep.subr.bf16.mxu1 %v3602_v6  ;;  %v3663_v6 = vcombine.low %v154_v56, %v158_v57  ;;  %v3666_v13 = vcombine.high %v155_v4, %v159_v54  ;;  %v3665_v18 = vcombine.low %v155_v4, %v159_v54  ;;  %v215_v4 = vld [vmem:[#allocation4 + $0x4f8] sm:$0xff] }
  0x88   :  { %1450 = vmatpush1.bf16.msra.mxu0 %v3599_v1  ;;  %v166_v1 = vld [vmem:[#allocation4 + $0x370] sm:$0xff] }
  0x89   :  { %1451 = vmatprep.subr.bf16.mxu0 %v3608_v2  ;;  %v3664_v2 = vcombine.high %v154_v56, %v158_v57  ;;  %v3672_v9 = vcombine.high %v162_v0, %v166_v1  ;;  %v3671_v14 = vcombine.low %v162_v0, %v166_v1  ;;  %v210_v56 = vld [vmem:[#allocation4 + $0x4d0] sm:$0xff] }
  0x8a   :  { %1532 = vmatpush1.bf16.msra.mxu1 %v3601_v12  ;;  %v167_v12 = vld [vmem:[#allocation4 + $0x378] sm:$0xff]  ;;  %v214_v57 = vld [vmem:[#allocation4 + $0x4f0] sm:$0xff] }
  0x8b   :  { %1533 = vmatprep.subr.bf16.mxu1 %v3610_v15  ;;  %v178_v15 = vld [vmem:[#allocation4 + $0x3d0] sm:$0xff]  ;;  %v3719_v54 = vcombine.low %v210_v56, %v214_v57 }
  0x8c   :  { %1452 = vmatpush1.bf16.msra.mxu0 %v3607_v8  ;;  %v174_v8 = vld [vmem:[#allocation4 + $0x3b0] sm:$0xff] }
  0x8d   :  { %1453 = vmatprep.subr.bf16.mxu0 %v3616_v11  ;;  %v163_v11 = vld [vmem:[#allocation4 + $0x358] sm:$0xff]  ;;  %v3680_v17 = vcombine.high %v170_v7, %v174_v8  ;;  %v3679_v24 = vcombine.low %v170_v7, %v174_v8  ;;  %v218_v0 = vld [vmem:[#allocation4 + $0x510] sm:$0xff] }
  0x8e   :  { %1534 = vmatpush1.bf16.msra.mxu1 %v3609_v22  ;;  %v175_v22 = vld [vmem:[#allocation4 + $0x3b8] sm:$0xff]  ;;  %v3674_v23 = vcombine.high %v163_v11, %v167_v12  ;;  %v3673_v29 = vcombine.low %v163_v11, %v167_v12  ;;  %v222_v1 = vld [vmem:[#allocation4 + $0x530] sm:$0xff] }
  0x8f   :  { %1535 = vmatprep.subr.bf16.mxu1 %v3618_v25  ;;  %v186_v25 = vld [vmem:[#allocation4 + $0x410] sm:$0xff]  ;;  %v3727_v11 = vcombine.low %v218_v0, %v222_v1 }
  0x90   :  { %1454 = vmatpush1.bf16.msra.mxu0 %v3615_v16  ;;  %v182_v16 = vld [vmem:[#allocation4 + $0x3f0] sm:$0xff] }
  0x91   :  { %1455 = vmatprep.subr.bf16.mxu0 %v3624_v19  ;;  %v171_v19 = vld [vmem:[#allocation4 + $0x398] sm:$0xff]  ;;  %v3688_v27 = vcombine.high %v178_v15, %v182_v16  ;;  %v3687_v33 = vcombine.low %v178_v15, %v182_v16  ;;  %v226_v7 = vld [vmem:[#allocation4 + $0x550] sm:$0xff] }
  0x92   :  { %1536 = vmatpush1.bf16.msra.mxu1 %v3617_v45  ;;  %v183_v45 = vld [vmem:[#allocation4 + $0x3f8] sm:$0xff]  ;;  %v3682_v32 = vcombine.high %v171_v19, %v175_v22  ;;  %v3681_v38 = vcombine.low %v171_v19, %v175_v22 }
  0x93   :  { %1537 = vmatprep.subr.bf16.mxu1 %v3626_v35  ;;  %v194_v35 = vld [vmem:[#allocation4 + $0x450] sm:$0xff]  ;;  %v227_v16 = vld [vmem:[#allocation4 + $0x558] sm:$0xff] }
  0x94   :  { %1456 = vmatpush1.bf16.msra.mxu0 %v3623_v26  ;;  %v190_v26 = vld [vmem:[#allocation4 + $0x430] sm:$0xff] }
  0x95   :  { %1457 = vmatprep.subr.bf16.mxu0 %v3632_v30  ;;  %v179_v30 = vld [vmem:[#allocation4 + $0x3d8] sm:$0xff]  ;;  %v3696_v37 = vcombine.high %v186_v25, %v190_v26  ;;  %v3695_v42 = vcombine.low %v186_v25, %v190_v26 }
  0x96   :  { %1538 = vmatpush1.bf16.msra.mxu1 %v3625_v40  ;;  %v191_v40 = vld [vmem:[#allocation4 + $0x438] sm:$0xff]  ;;  %v3690_v41 = vcombine.high %v179_v30, %v183_v45  ;;  %v3689_v48 = vcombine.low %v179_v30, %v183_v45 }
  0x97   :  { %1539 = vmatprep.subr.bf16.mxu1 %v3634_v44  ;;  %v202_v44 = vld [vmem:[#allocation4 + $0x490] sm:$0xff]  ;;  %v235_v26 = vld [vmem:[#allocation4 + $0x598] sm:$0xff] }
  0x98   :  { %1458 = vmatpush1.bf16.msra.mxu0 %v3631_v36  ;;  %v198_v36 = vld [vmem:[#allocation4 + $0x470] sm:$0xff] }
  0x99   :  { %1459 = vmatprep.subr.bf16.mxu0 %v3640_v39  ;;  %v187_v39 = vld [vmem:[#allocation4 + $0x418] sm:$0xff]  ;;  %v3704_v47 = vcombine.high %v194_v35, %v198_v36  ;;  %v3703_v52 = vcombine.low %v194_v35, %v198_v36 }
  0x9a   :  { %1540 = vmatpush1.bf16.msra.mxu1 %v3633_v50  ;;  %v199_v50 = vld [vmem:[#allocation4 + $0x478] sm:$0xff]  ;;  %v3698_v51 = vcombine.high %v187_v39, %v191_v40 }
  0x9b   :  { %1541 = vmatprep.subr.bf16.mxu1 %v3642_v53  ;;  %v247_v35 = vld [vmem:[#allocation4 + $0x5f8] sm:$0xff] }
  0x9c   :  { %1460 = vmatpush1.bf16.msra.mxu0 %v3639_v46  ;;  %v206_v46 = vld [vmem:[#allocation4 + $0x4b0] sm:$0xff] }
  0x9d   :  { %1461 = vmatprep.subr.bf16.mxu0 %v3648_v49  ;;  %v195_v49 = vld [vmem:[#allocation4 + $0x458] sm:$0xff]  ;;  %v3712_v53 = vcombine.high %v202_v44, %v206_v46  ;;  %v3711_v61 = vcombine.low %v202_v44, %v206_v46  ;;  %v4076_v46 = vld [vmem:[%s5460_s4 + $0x20] ss:$16 sps:$4 sm:$0xff]  }
  0x9e   :  { %1542 = vmatpush1.bf16.msra.mxu1 %v3641_v59  ;;  %v203_v59 = vld [vmem:[#allocation4 + $0x498] sm:$0xff] }
  0x9f   :  { %1543 = vmatprep.subr.bf16.mxu1 %v3650_v62  ;;  %v3720_v62 = vcombine.high %v210_v56, %v214_v57  ;;  %v4075_v44 = vld [vmem:[%s5460_s4 + $0xc] ss:$16 sps:$4 sm:$0xff]   ;;  %v4096_v56 = vld [vmem:[%s5460_s4 + $0x84] ss:$16 sps:$4 sm:$0xff]  }
  0xa0   :  { %1462 = vmatpush1.bf16.msra.mxu0 %v3647_v55  ;;  %v3697_v55 = vcombine.low %v187_v39, %v191_v40  ;;  %v4070_v40 = vld [vmem:[%s5460_s4] ss:$16 sps:$4 sm:$0xff]   ;;  %v4093_v57 = vld [vmem:[%s5460_s4 + $0x6c] ss:$16 sps:$4 sm:$0xff]  }
  0xa1   :  { %1463 = vmatprep.subr.bf16.mxu0 %v3656_v58  ;;  %v3706_v58 = vcombine.high %v195_v49, %v199_v50 }
  0xa2   :  { %1544 = vmatpush1.bf16.msra.mxu1 %v3649_v3  ;;  %v211_v3 = vld [vmem:[#allocation4 + $0x4d8] sm:$0xff] }
  0xa3   :  { %1545 = vmatprep.subr.bf16.mxu1 %v3658_v5  ;;  %v3728_v5 = vcombine.high %v218_v0, %v222_v1  ;;  %v3722_v8 = vcombine.high %v211_v3, %v215_v4  ;;  %v4108_v0 = vld [vmem:[%s5460_s4 + $0xc4] ss:$16 sps:$4 sm:$0xff]   ;;  %v4105_v1 = vld [vmem:[%s5460_s4 + $0xac] ss:$16 sps:$4 sm:$0xff]  }
  0xa4   :  { %1464 = vmatpush1.bf16.msra.mxu0 %v3655_v63  ;;  %v3705_v63 = vcombine.low %v195_v49, %v199_v50  ;;  %v4081_v49 = vld [vmem:[%s5460_s4 + $0x2c] ss:$16 sps:$4 sm:$0xff]   ;;  %v4082_v50 = vld [vmem:[%s5460_s4 + $0x40] ss:$16 sps:$4 sm:$0xff]  }
  0xa5   :  { %1465 = vmatprep.subr.bf16.mxu0 %v3664_v2  ;;  %v3714_v2 = vcombine.high %v203_v59, %v207_v60 }
  0xa6   :  { %1546 = vmatpush1.bf16.msra.mxu1 %v3657_v10  ;;  %v223_v10 = vld [vmem:[#allocation4 + $0x538] sm:$0xff] }
  0xa7   :  { %1547 = vmatprep.subr.bf16.mxu1 %v3666_v13  ;;  %v234_v13 = vld [vmem:[#allocation4 + $0x590] sm:$0xff] }
  0xa8   :  { %1466 = vmatpush1.bf16.msra.mxu0 %v3663_v6  ;;  %v3713_v6 = vcombine.low %v203_v59, %v207_v60  ;;  %v4091_v59 = vld [vmem:[%s5460_s4 + $0x68] ss:$16 sps:$4 sm:$0xff]   ;;  %v4102_v60 = vld [vmem:[%s5460_s4 + $0xa4] ss:$16 sps:$4 sm:$0xff]  }
  0xa9   :  { %1467 = vmatprep.subr.bf16.mxu0 %v3672_v9  ;;  %v219_v9 = vld [vmem:[#allocation4 + $0x518] sm:$0xff] }
  0xaa   :  { %1548 = vmatpush1.bf16.msra.mxu1 %v3665_v18  ;;  %v3730_v15 = vcombine.high %v219_v9, %v223_v10  ;;  %v3729_v22 = vcombine.low %v219_v9, %v223_v10  ;;  %v4115_v9 = vld [vmem:[%s5460_s4 + $0xe8] ss:$16 sps:$4 sm:$0xff]   ;;  %v4126_v10 = vld [vmem:[%s5460_s4 + $0x124] ss:$16 sps:$4 sm:$0xff]  }
  0xab   :  { %1549 = vmatprep.subr.bf16.mxu1 %v3674_v23  ;;  %v242_v23 = vld [vmem:[#allocation4 + $0x5d0] sm:$0xff] }
  0xac   :  { %1468 = vmatpush1.bf16.msra.mxu0 %v3671_v14  ;;  %v238_v14 = vld [vmem:[#allocation4 + $0x5b0] sm:$0xff] }
  0xad   :  { %1469 = vmatprep.subr.bf16.mxu0 %v3680_v17  ;;  %v231_v17 = vld [vmem:[#allocation4 + $0x578] sm:$0xff]  ;;  %v3744_v19 = vcombine.high %v234_v13, %v238_v14 }
  0xae   :  { %1550 = vmatpush1.bf16.msra.mxu1 %v3673_v29  ;;  %v3738_v25 = vcombine.high %v227_v16, %v231_v17  ;;  %v3743_v29 = vcombine.low %v234_v13, %v238_v14  ;;  %v3737_v45 = vcombine.low %v227_v16, %v231_v17  ;;  %v4132_v13 = vld [vmem:[%s5460_s4 + $0x144] ss:$16 sps:$4 sm:$0xff]   ;;  %v4129_v14 = vld [vmem:[%s5460_s4 + $0x12c] ss:$16 sps:$4 sm:$0xff]   ;;  %v4127_v16 = vld [vmem:[%s5460_s4 + $0x128] ss:$16 sps:$4 sm:$0xff]  }
  0xaf   :  { %1551 = vmatprep.subr.bf16.mxu1 %v3682_v32  ;;  %v4138_v17 = vld [vmem:[%s5460_s4 + $0x164] ss:$16 sps:$4 sm:$0xff]  }
  0xb0   :  { %1470 = vmatpush1.bf16.msra.mxu0 %v3679_v24  ;;  %v246_v24 = vld [vmem:[#allocation4 + $0x5f0] sm:$0xff] }
  0xb1   :  { %1471 = vmatprep.subr.bf16.mxu0 %v3688_v27  ;;  %v239_v27 = vld [vmem:[#allocation4 + $0x5b8] sm:$0xff]  ;;  %v3752_v30 = vcombine.high %v242_v23, %v246_v24  ;;  %v3751_v36 = vcombine.low %v242_v23, %v246_v24  ;;  %v4144_v23 = vld [vmem:[%s5460_s4 + $0x184] ss:$16 sps:$4 sm:$0xff]  }
  0xb2   :  { %1552 = vmatpush1.bf16.msra.mxu1 %v3681_v38  ;;  %v3746_v32 = vcombine.high %v235_v26, %v239_v27  ;;  %v4072_v38 = vld [vmem:[%s5460_s4 + $0x4] ss:$16 sps:$4 sm:$0xff]   ;;  %v4141_v24 = vld [vmem:[%s5460_s4 + $0x16c] ss:$16 sps:$4 sm:$0xff]  }
  0xb3   :  { %1553 = vmatprep.subr.bf16.mxu1 %v3690_v41 }
  0xb4   :  { %1472 = vmatpush1.bf16.msra.mxu0 %v3687_v33  ;;  %v243_v33 = vld [vmem:[#allocation4 + $0x5d8] sm:$0xff] }
  0xb5   :  { %1482 = vmatprep.subr.bf16.mxu0 %v3696_v37  ;;  %v3745_v37 = vcombine.low %v235_v26, %v239_v27  ;;  %v3754_v39 = vcombine.high %v243_v33, %v247_v35  ;;  %v3753_v41 = vcombine.low %v243_v33, %v247_v35  ;;  %v4139_v26 = vld [vmem:[%s5460_s4 + $0x168] ss:$16 sps:$4 sm:$0xff]   ;;  %v4150_v27 = vld [vmem:[%s5460_s4 + $0x1a4] ss:$16 sps:$4 sm:$0xff]   ;;  %v4153_v33 = vld [vmem:[%s5460_s4 + $0x1ac] ss:$16 sps:$4 sm:$0xff]  }
  0xb6   :  { %1554 = vmatpush1.bf16.msra.mxu1 %v3689_v48  ;;  %v4084_v48 = vld [vmem:[%s5460_s4 + $0x44] ss:$16 sps:$4 sm:$0xff]   ;;  %v4154_v35 = vld [vmem:[%s5460_s4 + $0x1c0] ss:$16 sps:$4 sm:$0xff]  }
  0xb7   :  { %1474 = vmatmul.mubr.bf16.vlgmr.msra.gmra.mrb[4].mxu0 %v4600_v20  ;;  %1564 = vmatprep.subr.bf16.mxu1 %v3698_v51  ;;  %v4079_v51 = vld [vmem:[%s5460_s4 + $0x28] ss:$16 sps:$4 sm:$0xff]  }
  0xb8   :  { %1483 = vmatpush1.bf16.msra.mxu0 %v3695_v42  ;;  %1514 = vmatprep.mubr.bf16.mxu0 %v4522_v31  ;;  %v4078_v42 = vld [vmem:[%s5460_s4 + $0x24] ss:$16 sps:$4 sm:$0xff]  }
  0xb9   :  { %1484 = vmatprep.subr.bf16.mxu0 %v3704_v47  ;;  %1556 = vmatmul.mubr.bf16.vlgmr.msra.gmra.mrb[4].mxu1 %v4600_v20  ;;  %v230_v20 = vld [vmem:[#allocation4 + $0x570] sm:$0xff]  ;;  %v4073_v47 = vld [vmem:[%s5460_s4 + $0x8] ss:$16 sps:$4 sm:$0xff]  }
  0xba   :  { %1565 = vmatpush1.bf16.msra.mxu1 %v3697_v55  ;;  %1596 = vmatprep.mubr.bf16.mxu1 %v4522_v31  ;;  %v3736_v12 = vcombine.high %v226_v7, %v230_v20  ;;  %v3721_v31 = vcombine.low %v211_v3, %v215_v4  ;;  %v3735_v18 = vcombine.low %v226_v7, %v230_v20  ;;  %v4085_v55 = vld [vmem:[%s5460_s4 + $0x48] ss:$16 sps:$4 sm:$0xff]   ;;  %v4114_v4 = vld [vmem:[%s5460_s4 + $0xe4] ss:$16 sps:$4 sm:$0xff]   ;;  %v4117_v20 = vld [vmem:[%s5460_s4 + $0xec] ss:$16 sps:$4 sm:$0xff]  }
  0xbb   :  { %1566 = vmatprep.subr.bf16.mxu1 %v3706_v58  ;;  %v4094_v58 = vld [vmem:[%s5460_s4 + $0x80] ss:$16 sps:$4 sm:$0xff]   ;;  %v4103_v3 = vld [vmem:[%s5460_s4 + $0xa8] ss:$16 sps:$4 sm:$0xff]   ;;  %v4120_v7 = vld [vmem:[%s5460_s4 + $0x104] ss:$16 sps:$4 sm:$0xff]  }
  0xbc   :  { %1485 = vmatpush1.bf16.msra.mxu0 %v3703_v52  ;;  %v4090_v52 = vld [vmem:[%s5460_s4 + $0x64] ss:$16 sps:$4 sm:$0xff]  }
  0xbd   :  { %1486 = vmatprep.subr.bf16.mxu0 %v3712_v53  ;;  %v4088_v53 = vld [vmem:[%s5460_s4 + $0x60] ss:$16 sps:$4 sm:$0xff]  }
  0xbe   :  { %1567 = vmatpush1.bf16.msra.mxu1 %v3705_v63  ;;  %v4097_v63 = vld [vmem:[%s5460_s4 + $0x88] ss:$16 sps:$4 sm:$0xff]  }
  0xbf   :  { %1568 = vmatprep.subr.bf16.mxu1 %v3714_v2  ;;  %v4106_v2 = vld [vmem:[%s5460_s4 + $0xc0] ss:$16 sps:$4 sm:$0xff]  }
  0xc0   :  { %1487 = vmatpush1.bf16.msra.mxu0 %v3711_v61  ;;  %v4099_v61 = vld [vmem:[%s5460_s4 + $0x8c] ss:$16 sps:$4 sm:$0xff]  }
  0xc1   :  { %1488 = vmatprep.subr.bf16.mxu0 %v3720_v62  ;;  %v4100_v62 = vld [vmem:[%s5460_s4 + $0xa0] ss:$16 sps:$4 sm:$0xff]  }
  0xc2   :  { %1569 = vmatpush1.bf16.msra.mxu1 %v3713_v6  ;;  %v4109_v6 = vld [vmem:[%s5460_s4 + $0xc8] ss:$16 sps:$4 sm:$0xff]  }
  0xc3   :  { %1570 = vmatprep.subr.bf16.mxu1 %v3722_v8  ;;  %v4118_v8 = vld [vmem:[%s5460_s4 + $0x100] ss:$16 sps:$4 sm:$0xff]  }
  0xc4   :  { %1489 = vmatpush1.bf16.msra.mxu0 %v3719_v54  ;;  %v4111_v54 = vld [vmem:[%s5460_s4 + $0xcc] ss:$16 sps:$4 sm:$0xff]  }
  0xc5   :  { %1490 = vmatprep.subr.bf16.mxu0 %v3728_v5  ;;  %v4112_v5 = vld [vmem:[%s5460_s4 + $0xe0] ss:$16 sps:$4 sm:$0xff]  }
  0xc6   :  { %1571 = vmatpush1.bf16.msra.mxu1 %v3721_v31  ;;  %v4121_v31 = vld [vmem:[%s5460_s4 + $0x108] ss:$16 sps:$4 sm:$0xff]  }
  0xc7   :  { %1572 = vmatprep.subr.bf16.mxu1 %v3730_v15  ;;  %v4130_v15 = vld [vmem:[%s5460_s4 + $0x140] ss:$16 sps:$4 sm:$0xff]  }
  0xc8   :  { %1491 = vmatpush1.bf16.msra.mxu0 %v3727_v11  ;;  %v4123_v11 = vld [vmem:[%s5460_s4 + $0x10c] ss:$16 sps:$4 sm:$0xff]  }
  0xc9   :  { %1492 = vmatprep.subr.bf16.mxu0 %v3736_v12  ;;  %v4124_v12 = vld [vmem:[%s5460_s4 + $0x120] ss:$16 sps:$4 sm:$0xff]  }
  0xca   :  { %1573 = vmatpush1.bf16.msra.mxu1 %v3729_v22  ;;  %v4133_v22 = vld [vmem:[%s5460_s4 + $0x148] ss:$16 sps:$4 sm:$0xff]  }
  0xcb   :  { %1574 = vmatprep.subr.bf16.mxu1 %v3738_v25  ;;  %v4142_v25 = vld [vmem:[%s5460_s4 + $0x180] ss:$16 sps:$4 sm:$0xff]  }
  0xcc   :  { %1493 = vmatpush1.bf16.msra.mxu0 %v3735_v18  ;;  %v4135_v18 = vld [vmem:[%s5460_s4 + $0x14c] ss:$16 sps:$4 sm:$0xff]  }
  0xcd   :  { %1494 = vmatprep.subr.bf16.mxu0 %v3744_v19  ;;  %v4136_v19 = vld [vmem:[%s5460_s4 + $0x160] ss:$16 sps:$4 sm:$0xff]  }
  0xce   :  { %1575 = vmatpush1.bf16.msra.mxu1 %v3737_v45  ;;  %v4145_v45 = vld [vmem:[%s5460_s4 + $0x188] ss:$16 sps:$4 sm:$0xff]  }
  0xcf   :  { %1576 = vmatprep.subr.bf16.mxu1 %v3746_v32  ;;  %v4156_v32 = vld [vmem:[%s5460_s4 + $0x1c4] ss:$16 sps:$4 sm:$0xff]  }
  0xd0   :  { %1495 = vmatpush1.bf16.msra.mxu0 %v3743_v29  ;;  %v4147_v29 = vld [vmem:[%s5460_s4 + $0x18c] ss:$16 sps:$4 sm:$0xff]  }
  0xd1   :  { %1496 = vmatprep.subr.bf16.mxu0 %v3752_v30  ;;  %v4148_v30 = vld [vmem:[%s5460_s4 + $0x1a0] ss:$16 sps:$4 sm:$0xff]  }
  0xd2   :  { %1577 = vmatpush1.bf16.msra.mxu1 %v3745_v37  ;;  %v4162_v37 = vld [vmem:[%s5460_s4 + $0x1e4] ss:$16 sps:$4 sm:$0xff]  }
  0xd3   :  { %1578 = vmatprep.subr.bf16.mxu1 %v3754_v39  ;;  %v4160_v39 = vld [vmem:[%s5460_s4 + $0x1e0] ss:$16 sps:$4 sm:$0xff]  }
  0xd4   :  { %1497 = vmatpush1.bf16.msra.mxu0 %v3751_v36  ;;  %v4151_v36 = vld [vmem:[%s5460_s4 + $0x1a8] ss:$16 sps:$4 sm:$0xff]  }
  0xd5   :  { %3179 = vmatprep.subr.bf16.mxu0 %v4072_v38  ;;  %v4159_v38 = vld [vmem:[%s5460_s4 + $0x1cc] ss:$16 sps:$4 sm:$0xff]  }
  0xd6   :  { %1579 = vmatpush1.bf16.msra.mxu1 %v3753_v41  ;;  %v4168_v41 = vld [vmem:[%s5460_s4 + $0x204] ss:$16 sps:$4 sm:$0xff]  }
  0xd7   :  { %1515 = vmatmul.mubr.bf16.vlgmr.msra.gmra.mrb[4].mxu0 %v4608_v28  ;;  %3343 = vmatprep.subr.bf16.mxu1 %v4075_v44  ;;  %v4163_v44 = vld [vmem:[%s5460_s4 + $0x1e8] ss:$16 sps:$4 sm:$0xff]  }
  0xd8   :  { %3180 = vmatpush1.bf16.msra.mxu0 %v4070_v40  ;;  %v4157_v40 = vld [vmem:[%s5460_s4 + $0x1c8] ss:$16 sps:$4 sm:$0xff]  }
  0xd9   :  { %3181 = vmatprep.subr.bf16.mxu0 %v4078_v42  ;;  %1597 = vmatmul.mubr.bf16.vlgmr.msra.gmra.mrb[4].mxu1 %v4608_v28  ;;  %v4087_v28 = vld [vmem:[%s5460_s4 + $0x4c] ss:$16 sps:$4 sm:$0xff]  }
  0xda   :  { %3344 = vmatpush1.bf16.msra.mxu1 %v4073_v47  ;;  %v4165_v42 = vld [vmem:[%s5460_s4 + $0x1ec] ss:$16 sps:$4 sm:$0xff]   ;;  %v1239_v47 = vsub.s32 0, %v4581_v34 }
  0xdb   :  { %3345 = vmatprep.subr.bf16.mxu1 %v4081_v49  ;;  %v1243_v49 = vsub.s32 1, %v4581_v34 }
  0xdc   :  { %3182 = vmatpush1.bf16.msra.mxu0 %v4076_v46  ;;  %v4171_v46 = vld [vmem:[%s5460_s4 + $0x20c] ss:$16 sps:$4 sm:$0xff]  }
  0xdd   :  { %3183 = vmatprep.subr.bf16.mxu0 %v4084_v48  ;;  %v4822_v48 = vld [vmem:[%s5459_s3] sm:$0xff] }
  0xde   :  { %3346 = vmatpush1.bf16.msra.mxu1 %v4079_v51  ;;  %v1244_v51 = vrot.slane %v4822_v48, %v1243_v49 }
  0xdf   :  { %3347 = vmatprep.subr.bf16.mxu1 %v4087_v28 }
  0xe0   :  { %3184 = vmatpush1.bf16.msra.mxu0 %v4082_v50  ;;  %v1240_v50 = vrot.slane %v4822_v48, %v1239_v47 }
  0xe1   :  { %3185 = vmatprep.subr.bf16.mxu0 %v4090_v52  ;;  %v1251_v52 = vsub.s32 3, %v4581_v34 }
  0xe2   :  { %3348 = vmatpush1.bf16.msra.mxu1 %v4085_v55 }
  0xe3   :  { %3349 = vmatprep.subr.bf16.mxu1 %v4093_v57 }
  0xe4   :  { %3186 = vmatpush1.bf16.msra.mxu0 %v4088_v53 }
  0xe5   :  { %3187 = vmatprep.subr.bf16.mxu0 %v4096_v56 }
  0xe6   :  { %3350 = vmatpush1.bf16.msra.mxu1 %v4091_v59  ;;  %v1252_v59 = vrot.slane %v4822_v48, %v1251_v52 }
  0xe7   :  { %3351 = vmatprep.subr.bf16.mxu1 %v4099_v61 }
  0xe8   :  { %3188 = vmatpush1.bf16.msra.mxu0 %v4094_v58 }
  0xe9   :  { %3189 = vmatprep.subr.bf16.mxu0 %v4102_v60 }
  0xea   :  { %3352 = vmatpush1.bf16.msra.mxu1 %v4097_v63 }
  0xeb   :  { %3353 = vmatprep.subr.bf16.mxu1 %v4105_v1 }
  0xec   :  { %3190 = vmatpush1.bf16.msra.mxu0 %v4100_v62 }
  0xed   :  { %3191 = vmatprep.subr.bf16.mxu0 %v4108_v0 }
  0xee   :  { %3354 = vmatpush1.bf16.msra.mxu1 %v4103_v3 }
  0xef   :  { %3355 = vmatprep.subr.bf16.mxu1 %v4111_v54  ;;  %v4169_v54 = vld [vmem:[%s5460_s4 + $0x208] ss:$16 sps:$4 sm:$0xff]  }
  0xf0   :  { %3192 = vmatpush1.bf16.msra.mxu0 %v4106_v2 }
  0xf1   :  { %3193 = vmatprep.subr.bf16.mxu0 %v4114_v4  ;;  %v4166_v4 = vld [vmem:[%s5460_s4 + $0x200] ss:$16 sps:$4 sm:$0xff]  }
  0xf2   :  { %3356 = vmatpush1.bf16.msra.mxu1 %v4109_v6  ;;  %v4174_v6 = vld [vmem:[%s5460_s4 + $0x224] ss:$16 sps:$4 sm:$0xff]  }
  0xf3   :  { %3357 = vmatprep.subr.bf16.mxu1 %v4117_v20 }
  0xf4   :  { %3194 = vmatpush1.bf16.msra.mxu0 %v4112_v5 }
  0xf5   :  { %3195 = vmatprep.subr.bf16.mxu0 %v4120_v7  ;;  %v4177_v7 = vld [vmem:[%s5460_s4 + $0x22c] ss:$16 sps:$4 sm:$0xff]  }
  0xf6   :  { %3358 = vmatpush1.bf16.msra.mxu1 %v4115_v9  ;;  %v4175_v9 = vld [vmem:[%s5460_s4 + $0x228] ss:$16 sps:$4 sm:$0xff]  }
  0xf7   :  { %3359 = vmatprep.subr.bf16.mxu1 %v4123_v11  ;;  %v4183_v11 = vld [vmem:[%s5460_s4 + $0x24c] ss:$16 sps:$4 sm:$0xff]  }
  0xf8   :  { %3196 = vmatpush1.bf16.msra.mxu0 %v4118_v8  ;;  %v4172_v8 = vld [vmem:[%s5460_s4 + $0x220] ss:$16 sps:$4 sm:$0xff]  }
  0xf9   :  { %3197 = vmatprep.subr.bf16.mxu0 %v4126_v10  ;;  %v4180_v10 = vld [vmem:[%s5460_s4 + $0x244] ss:$16 sps:$4 sm:$0xff]  }
  0xfa   :  { %3360 = vmatpush1.bf16.msra.mxu1 %v4121_v31  ;;  %v4178_v31 = vld [vmem:[%s5460_s4 + $0x240] ss:$16 sps:$4 sm:$0xff]  }
  0xfb   :  { %3361 = vmatprep.subr.bf16.mxu1 %v4129_v14  ;;  %v4186_v14 = vld [vmem:[%s5460_s4 + $0x264] ss:$16 sps:$4 sm:$0xff]  }
  0xfc   :  { %3198 = vmatpush1.bf16.msra.mxu0 %v4124_v12 }
  0xfd   :  { %3199 = vmatprep.subr.bf16.mxu0 %v4132_v13  ;;  %v4181_v13 = vld [vmem:[%s5460_s4 + $0x248] ss:$16 sps:$4 sm:$0xff]  }
  0xfe   :  { %3362 = vmatpush1.bf16.msra.mxu1 %v4127_v16  ;;  %v4184_v16 = vld [vmem:[%s5460_s4 + $0x260] ss:$16 sps:$4 sm:$0xff]  }
  0xff   :  { %3363 = vmatprep.subr.bf16.mxu1 %v4135_v18  ;;  %v4192_v18 = vld [vmem:[%s5460_s4 + $0x284] ss:$16 sps:$4 sm:$0xff]  }
 0x100   :  { %3200 = vmatpush1.bf16.msra.mxu0 %v4130_v15  ;;  %v4189_v15 = vld [vmem:[%s5460_s4 + $0x26c] ss:$16 sps:$4 sm:$0xff]  }
 0x101   :  { %3201 = vmatprep.subr.bf16.mxu0 %v4138_v17  ;;  %v4187_v17 = vld [vmem:[%s5460_s4 + $0x268] ss:$16 sps:$4 sm:$0xff]  }
 0x102   :  { %3364 = vmatpush1.bf16.msra.mxu1 %v4133_v22  ;;  %v4190_v22 = vld [vmem:[%s5460_s4 + $0x280] ss:$16 sps:$4 sm:$0xff]  }
 0x103   :  { %3365 = vmatprep.subr.bf16.mxu1 %v4141_v24  ;;  %v4198_v24 = vld [vmem:[%s5460_s4 + $0x2a4] ss:$16 sps:$4 sm:$0xff]  }
 0x104   :  { %3202 = vmatpush1.bf16.msra.mxu0 %v4136_v19  ;;  %v4195_v19 = vld [vmem:[%s5460_s4 + $0x28c] ss:$16 sps:$4 sm:$0xff]  }
 0x105   :  { %3203 = vmatprep.subr.bf16.mxu0 %v4144_v23  ;;  %v4193_v23 = vld [vmem:[%s5460_s4 + $0x288] ss:$16 sps:$4 sm:$0xff]  }
 0x106   :  { %3366 = vmatpush1.bf16.msra.mxu1 %v4139_v26  ;;  %v4196_v26 = vld [vmem:[%s5460_s4 + $0x2a0] ss:$16 sps:$4 sm:$0xff]  }
 0x107   :  { %3367 = vmatprep.subr.bf16.mxu1 %v4147_v29  ;;  %v4204_v29 = vld [vmem:[%s5460_s4 + $0x2c4] ss:$16 sps:$4 sm:$0xff]  }
 0x108   :  { %3204 = vmatpush1.bf16.msra.mxu0 %v4142_v25  ;;  %v4201_v25 = vld [vmem:[%s5460_s4 + $0x2ac] ss:$16 sps:$4 sm:$0xff]  }
 0x109   :  { %3205 = vmatprep.subr.bf16.mxu0 %v4150_v27  ;;  %v4199_v27 = vld [vmem:[%s5460_s4 + $0x2a8] ss:$16 sps:$4 sm:$0xff]  }
 0x10a   :  { %3368 = vmatpush1.bf16.msra.mxu1 %v4145_v45  ;;  %v4202_v45 = vld [vmem:[%s5460_s4 + $0x2c0] ss:$16 sps:$4 sm:$0xff]  }
 0x10b   :  { %3369 = vmatprep.subr.bf16.mxu1 %v4153_v33  ;;  %v4210_v33 = vld [vmem:[%s5460_s4 + $0x2e4] ss:$16 sps:$4 sm:$0xff]  }
 0x10c   :  { %3206 = vmatpush1.bf16.msra.mxu0 %v4148_v30  ;;  %v4207_v30 = vld [vmem:[%s5460_s4 + $0x2cc] ss:$16 sps:$4 sm:$0xff]  }
 0x10d   :  { %3207 = vmatprep.subr.bf16.mxu0 %v4156_v32  ;;  %v4205_v32 = vld [vmem:[%s5460_s4 + $0x2c8] ss:$16 sps:$4 sm:$0xff]  }
 0x10e   :  { %3370 = vmatpush1.bf16.msra.mxu1 %v4151_v36  ;;  %v4208_v36 = vld [vmem:[%s5460_s4 + $0x2e0] ss:$16 sps:$4 sm:$0xff]  }
 0x10f   :  { %3371 = vmatprep.subr.bf16.mxu1 %v4159_v38  ;;  %v4216_v38 = vld [vmem:[%s5460_s4 + $0x304] ss:$16 sps:$4 sm:$0xff]  }
 0x110   :  { %3208 = vmatpush1.bf16.msra.mxu0 %v4154_v35  ;;  %v4213_v35 = vld [vmem:[%s5460_s4 + $0x2ec] ss:$16 sps:$4 sm:$0xff]  }
 0x111   :  { %3209 = vmatprep.subr.bf16.mxu0 %v4162_v37  ;;  %v4211_v37 = vld [vmem:[%s5460_s4 + $0x2e8] ss:$16 sps:$4 sm:$0xff]  }
 0x112   :  { %3372 = vmatpush1.bf16.msra.mxu1 %v4157_v40  ;;  %v4214_v40 = vld [vmem:[%s5460_s4 + $0x300] ss:$16 sps:$4 sm:$0xff]  }
 0x113   :  { %3373 = vmatprep.subr.bf16.mxu1 %v4165_v42  ;;  %v4222_v42 = vld [vmem:[%s5460_s4 + $0x324] ss:$16 sps:$4 sm:$0xff]  }
 0x114   :  { %3210 = vmatpush1.bf16.msra.mxu0 %v4160_v39  ;;  %v4219_v39 = vld [vmem:[%s5460_s4 + $0x30c] ss:$16 sps:$4 sm:$0xff]  }
 0x115   :  { %3220 = vmatprep.subr.bf16.mxu0 %v4168_v41  ;;  %v4217_v41 = vld [vmem:[%s5460_s4 + $0x308] ss:$16 sps:$4 sm:$0xff]  }
 0x116   :  { %3374 = vmatpush1.bf16.msra.mxu1 %v4163_v44  ;;  %v4225_v44 = vld [vmem:[%s5460_s4 + $0x32c] ss:$16 sps:$4 sm:$0xff]  }
 0x117   :  { %3384 = vmatprep.subr.bf16.mxu1 %v4171_v46  ;;  %v4220_v46 = vld [vmem:[%s5460_s4 + $0x320] ss:$16 sps:$4 sm:$0xff]  }
 0x14a   :  { %v1352_v28 = vpop.f32.mrb[0].mxu0 }
 0x14b   :  { %v4011_v53 = vadd.f32 %v1352_v28, %v1240_v50  ;;  %v1354_v55 = vpop.f32.mrb[1].mxu0  ;;  %v4223_v50 = vld [vmem:[%s5460_s4 + $0x328] ss:$16 sps:$4 sm:$0xff]   ;;  %v4231_v28 = vld [vmem:[%s5460_s4 + $0x34c] ss:$16 sps:$4 sm:$0xff]  }
 0x14c   :  { %v4012_v56 = vadd.f32 %v1354_v55, %v1244_v51  ;;  %v1356_v57 = vpop.f32.mrb[2].mxu0  ;;  %v4835_v60 = vpop.f32.mrb[0].mxu1  ;;  %v4228_v51 = vld [vmem:[%s5460_s4 + $0x344] ss:$16 sps:$4 sm:$0xff]   ;;  %v4226_v55 = vld [vmem:[%s5460_s4 + $0x340] ss:$16 sps:$4 sm:$0xff]  }
 0x14d   :  { %4454 = vtanh.f32 %v4011_v53  ;;  %v1357_v58 = vpop.f32.mrb[3].mxu0  ;;  %v1436_v61 = vpop.f32.mrb[1].mxu1  ;;  %v1247_v53 = vsub.s32 2, %v4581_v34  ;;  %v4234_v57 = vld [vmem:[%s5460_s4 + $0x364] ss:$16 sps:$4 sm:$0xff]  }
 0x14e   :  { %4456 = vtanh.f32 %v4012_v56  ;;  %v4014_v62 = vadd.f32 %v1436_v61, %v1252_v59  ;;  %v1438_v63 = vpop.f32.mrb[2].mxu1  ;;  %v4229_v56 = vld [vmem:[%s5460_s4 + $0x348] ss:$16 sps:$4 sm:$0xff]   ;;  %v4237_v58 = vld [vmem:[%s5460_s4 + $0x36c] ss:$16 sps:$4 sm:$0xff]  }
 0x14f   :  { %v1439_v0 = vpop.f32.mrb[3].mxu1  ;;  %v1248_v59 = vrot.slane %v4822_v48, %v1247_v53  ;;  %v4232_v61 = vld [vmem:[%s5460_s4 + $0x360] ss:$16 sps:$4 sm:$0xff]   ;;  %v4240_v63 = vld [vmem:[%s5460_s4 + $0x384] ss:$16 sps:$4 sm:$0xff]  }
 0x150   :  { %4458 = vtanh.f32 %v4014_v62  ;;  %v4235_v62 = vld [vmem:[%s5460_s4 + $0x368] ss:$16 sps:$4 sm:$0xff]   ;;  %v4243_v0 = vld [vmem:[%s5460_s4 + $0x38c] ss:$16 sps:$4 sm:$0xff]  }
 0x157   :  { %v4455_v1 = vpop.eup %4454 }
 0x158   :  { %v4457_v2 = vpop.eup %4456  ;;  %v1613_v5 = vpack.c.bf16 %v4455_v1, %v4455_v1  ;;  %v4013_v1 = vadd.f32 %v4835_v60, %v1248_v59  ;;  %v4249_v60 = vld [vmem:[%s5460_s4 + $0x3ac] ss:$16 sps:$4 sm:$0xff]  }
 0x159   :  { %v1614_v3 = vpack.c.bf16 %v4457_v2, %v4457_v2  ;;  %v4238_v2 = vld [vmem:[%s5460_s4 + $0x380] ss:$16 sps:$4 sm:$0xff]  }
 0x15a   :  { %v4459_v20 = vpop.eup %4458  ;;  %4460 = vtanh.f32 %v4013_v1  ;;  %v4309_v1 = vld [vmem:[%s5460_s4 + $0x4ec] ss:$16 sps:$4 sm:$0xff]  }
 0x15b   :  { %3211 = vmatprep.mubr.bf16.mxu0 %v1614_v3  ;;  %3375 = vmatprep.mubr.bf16.mxu1 %v1614_v3  ;;  %v1616_v12 = vpack.c.bf16 %v4459_v20, %v4459_v20  ;;  %v4241_v3 = vld [vmem:[%s5460_s4 + $0x388] ss:$16 sps:$4 sm:$0xff]   ;;  %v4250_v20 = vld [vmem:[%s5460_s4 + $0x3c0] ss:$16 sps:$4 sm:$0xff]  }
 0x15c   :  { %3212 = vmatmul.mubr.bf16.vlgmr.msra.gmra.mrb[8].mxu0 %v1613_v5  ;;  %3376 = vmatmul.mubr.bf16.vlgmr.msra.gmra.mrb[8].mxu1 %v1613_v5  ;;  %v4247_v5 = vld [vmem:[%s5460_s4 + $0x3a8] ss:$16 sps:$4 sm:$0xff]  }
 0x15d   :  { %3221 = vmatpush1.bf16.msra.mxu0 %v4166_v4  ;;  %3385 = vmatpush1.bf16.msra.mxu1 %v4169_v54  ;;  %v4246_v4 = vld [vmem:[%s5460_s4 + $0x3a4] ss:$16 sps:$4 sm:$0xff]   ;;  %v4244_v54 = vld [vmem:[%s5460_s4 + $0x3a0] ss:$16 sps:$4 sm:$0xff]  }
 0x15e   :  { %3222 = vmatprep.subr.bf16.mxu0 %v4174_v6  ;;  %3386 = vmatprep.subr.bf16.mxu1 %v4177_v7  ;;  %v4252_v6 = vld [vmem:[%s5460_s4 + $0x3c4] ss:$16 sps:$4 sm:$0xff]   ;;  %v4255_v7 = vld [vmem:[%s5460_s4 + $0x3cc] ss:$16 sps:$4 sm:$0xff]  }
 0x15f   :  { %3252 = vmatprep.mubr.bf16.mxu0 %v1616_v12  ;;  %3416 = vmatprep.mubr.bf16.mxu1 %v1616_v12  ;;  %v4259_v12 = vld [vmem:[%s5460_s4 + $0x3e8] ss:$16 sps:$4 sm:$0xff]  }
 0x161   :  { %3223 = vmatpush1.bf16.msra.mxu0 %v4172_v8  ;;  %3387 = vmatpush1.bf16.msra.mxu1 %v4175_v9  ;;  %v4253_v8 = vld [vmem:[%s5460_s4 + $0x3c8] ss:$16 sps:$4 sm:$0xff]   ;;  %v4258_v9 = vld [vmem:[%s5460_s4 + $0x3e4] ss:$16 sps:$4 sm:$0xff]  }
 0x162   :  { %3224 = vmatprep.subr.bf16.mxu0 %v4180_v10  ;;  %3388 = vmatprep.subr.bf16.mxu1 %v4183_v11  ;;  %v4261_v10 = vld [vmem:[%s5460_s4 + $0x3ec] ss:$16 sps:$4 sm:$0xff]   ;;  %v4256_v11 = vld [vmem:[%s5460_s4 + $0x3e0] ss:$16 sps:$4 sm:$0xff]  }
 0x165   :  { %3225 = vmatpush1.bf16.msra.mxu0 %v4178_v31  ;;  %3389 = vmatpush1.bf16.msra.mxu1 %v4181_v13  ;;  %v4264_v31 = vld [vmem:[%s5460_s4 + $0x404] ss:$16 sps:$4 sm:$0xff]   ;;  %v4267_v13 = vld [vmem:[%s5460_s4 + $0x40c] ss:$16 sps:$4 sm:$0xff]  }
 0x166   :  { %3226 = vmatprep.subr.bf16.mxu0 %v4186_v14  ;;  %3390 = vmatprep.subr.bf16.mxu1 %v4189_v15  ;;  %v4461_v14 = vpop.eup %4460  ;;  %v4262_v15 = vld [vmem:[%s5460_s4 + $0x400] ss:$16 sps:$4 sm:$0xff]  }
 0x169   :  { %3227 = vmatpush1.bf16.msra.mxu0 %v4184_v16  ;;  %3391 = vmatpush1.bf16.msra.mxu1 %v4187_v17  ;;  %v4265_v16 = vld [vmem:[%s5460_s4 + $0x408] ss:$16 sps:$4 sm:$0xff]   ;;  %v1615_v17 = vpack.c.bf16 %v4461_v14, %v4461_v14  ;;  %v4322_v14 = vld [vmem:[%s5460_s4 + $0x540] ss:$16 sps:$4 sm:$0xff]  }
 0x16a   :  { %3228 = vmatprep.subr.bf16.mxu0 %v4192_v18  ;;  %3392 = vmatprep.subr.bf16.mxu1 %v4195_v19  ;;  %v4270_v18 = vld [vmem:[%s5460_s4 + $0x424] ss:$16 sps:$4 sm:$0xff]   ;;  %v4273_v19 = vld [vmem:[%s5460_s4 + $0x42c] ss:$16 sps:$4 sm:$0xff]  }
 0x16d   :  { %3229 = vmatpush1.bf16.msra.mxu0 %v4190_v22  ;;  %3393 = vmatpush1.bf16.msra.mxu1 %v4193_v23  ;;  %v4268_v22 = vld [vmem:[%s5460_s4 + $0x420] ss:$16 sps:$4 sm:$0xff]   ;;  %v4271_v23 = vld [vmem:[%s5460_s4 + $0x428] ss:$16 sps:$4 sm:$0xff]  }
 0x16e   :  { %3230 = vmatprep.subr.bf16.mxu0 %v4198_v24  ;;  %3394 = vmatprep.subr.bf16.mxu1 %v4201_v25  ;;  %v4276_v24 = vld [vmem:[%s5460_s4 + $0x444] ss:$16 sps:$4 sm:$0xff]   ;;  %v4279_v25 = vld [vmem:[%s5460_s4 + $0x44c] ss:$16 sps:$4 sm:$0xff]  }
 0x171   :  { %3231 = vmatpush1.bf16.msra.mxu0 %v4196_v26  ;;  %3395 = vmatpush1.bf16.msra.mxu1 %v4199_v27  ;;  %v4274_v26 = vld [vmem:[%s5460_s4 + $0x440] ss:$16 sps:$4 sm:$0xff]   ;;  %v4277_v27 = vld [vmem:[%s5460_s4 + $0x448] ss:$16 sps:$4 sm:$0xff]  }
 0x172   :  { %3232 = vmatprep.subr.bf16.mxu0 %v4204_v29  ;;  %3396 = vmatprep.subr.bf16.mxu1 %v4207_v30  ;;  %v4282_v29 = vld [vmem:[%s5460_s4 + $0x464] ss:$16 sps:$4 sm:$0xff]   ;;  %v4285_v30 = vld [vmem:[%s5460_s4 + $0x46c] ss:$16 sps:$4 sm:$0xff]  }
 0x175   :  { %3233 = vmatpush1.bf16.msra.mxu0 %v4202_v45  ;;  %3397 = vmatpush1.bf16.msra.mxu1 %v4205_v32  ;;  %v1259_v45 = vsub.s32 5, %v4581_v34  ;;  %v4280_v32 = vld [vmem:[%s5460_s4 + $0x460] ss:$16 sps:$4 sm:$0xff]  }
 0x176   :  { %3234 = vmatprep.subr.bf16.mxu0 %v4210_v33  ;;  %3398 = vmatprep.subr.bf16.mxu1 %v4213_v35  ;;  %v4283_v33 = vld [vmem:[%s5460_s4 + $0x468] ss:$16 sps:$4 sm:$0xff]   ;;  %v4288_v35 = vld [vmem:[%s5460_s4 + $0x484] ss:$16 sps:$4 sm:$0xff]  }
 0x179   :  { %3235 = vmatpush1.bf16.msra.mxu0 %v4208_v36  ;;  %3399 = vmatpush1.bf16.msra.mxu1 %v4211_v37  ;;  %v4291_v36 = vld [vmem:[%s5460_s4 + $0x48c] ss:$16 sps:$4 sm:$0xff]   ;;  %v1260_v37 = vrot.slane %v4822_v48, %v1259_v45 }
 0x17a   :  { %3236 = vmatprep.subr.bf16.mxu0 %v4216_v38  ;;  %3400 = vmatprep.subr.bf16.mxu1 %v4219_v39  ;;  %v4286_v38 = vld [vmem:[%s5460_s4 + $0x480] ss:$16 sps:$4 sm:$0xff]   ;;  %v4289_v39 = vld [vmem:[%s5460_s4 + $0x488] ss:$16 sps:$4 sm:$0xff]  }
 0x17d   :  { %3237 = vmatpush1.bf16.msra.mxu0 %v4214_v40  ;;  %3401 = vmatpush1.bf16.msra.mxu1 %v4217_v41  ;;  %v4294_v41 = vld [vmem:[%s5460_s4 + $0x4a4] ss:$16 sps:$4 sm:$0xff]  }
 0x17e   :  { %3238 = vmatprep.subr.bf16.mxu0 %v4222_v42  ;;  %3402 = vmatprep.subr.bf16.mxu1 %v4225_v44  ;;  %v4297_v42 = vld [vmem:[%s5460_s4 + $0x4ac] ss:$16 sps:$4 sm:$0xff]  }
 0x181   :  { %3239 = vmatpush1.bf16.msra.mxu0 %v4220_v46  ;;  %3403 = vmatpush1.bf16.msra.mxu1 %v4223_v50 }
 0x182   :  { %3240 = vmatprep.subr.bf16.mxu0 %v4228_v51  ;;  %3404 = vmatprep.subr.bf16.mxu1 %v4231_v28  ;;  %v4292_v28 = vld [vmem:[%s5460_s4 + $0x4a0] ss:$16 sps:$4 sm:$0xff]  }
 0x185   :  { %3241 = vmatpush1.bf16.msra.mxu0 %v4226_v55  ;;  %3405 = vmatpush1.bf16.msra.mxu1 %v4229_v56  ;;  %v4295_v55 = vld [vmem:[%s5460_s4 + $0x4a8] ss:$16 sps:$4 sm:$0xff]   ;;  %v4300_v56 = vld [vmem:[%s5460_s4 + $0x4c4] ss:$16 sps:$4 sm:$0xff]  }
 0x186   :  { %3242 = vmatprep.subr.bf16.mxu0 %v4234_v57  ;;  %3406 = vmatprep.subr.bf16.mxu1 %v4237_v58  ;;  %v4303_v57 = vld [vmem:[%s5460_s4 + $0x4cc] ss:$16 sps:$4 sm:$0xff]  }
 0x189   :  { %3243 = vmatpush1.bf16.msra.mxu0 %v4232_v61  ;;  %3407 = vmatpush1.bf16.msra.mxu1 %v4235_v62  ;;  %v4298_v61 = vld [vmem:[%s5460_s4 + $0x4c0] ss:$16 sps:$4 sm:$0xff]   ;;  %v4301_v62 = vld [vmem:[%s5460_s4 + $0x4c8] ss:$16 sps:$4 sm:$0xff]  }
 0x18a   :  { %3244 = vmatprep.subr.bf16.mxu0 %v4240_v63  ;;  %3408 = vmatprep.subr.bf16.mxu1 %v4243_v0  ;;  %v4306_v0 = vld [vmem:[%s5460_s4 + $0x4e4] ss:$16 sps:$4 sm:$0xff]  }
 0x18d   :  { %3245 = vmatpush1.bf16.msra.mxu0 %v4238_v2  ;;  %3409 = vmatpush1.bf16.msra.mxu1 %v4241_v3  ;;  %v4304_v3 = vld [vmem:[%s5460_s4 + $0x4e0] ss:$16 sps:$4 sm:$0xff]  }
 0x18e   :  { %3246 = vmatprep.subr.bf16.mxu0 %v4246_v4  ;;  %3410 = vmatprep.subr.bf16.mxu1 %v4249_v60  ;;  %v4307_v4 = vld [vmem:[%s5460_s4 + $0x4e8] ss:$16 sps:$4 sm:$0xff]   ;;  %v4312_v60 = vld [vmem:[%s5460_s4 + $0x504] ss:$16 sps:$4 sm:$0xff]  }
 0x191   :  { %3247 = vmatpush1.bf16.msra.mxu0 %v4244_v54  ;;  %3411 = vmatpush1.bf16.msra.mxu1 %v4247_v5  ;;  %v4315_v54 = vld [vmem:[%s5460_s4 + $0x50c] ss:$16 sps:$4 sm:$0xff]  }
 0x192   :  { %3248 = vmatprep.subr.bf16.mxu0 %v4252_v6  ;;  %3412 = vmatprep.subr.bf16.mxu1 %v4255_v7  ;;  %v4310_v7 = vld [vmem:[%s5460_s4 + $0x500] ss:$16 sps:$4 sm:$0xff]  }
 0x195   :  { %3249 = vmatpush1.bf16.msra.mxu0 %v4250_v20  ;;  %3413 = vmatpush1.bf16.msra.mxu1 %v4253_v8  ;;  %v4313_v20 = vld [vmem:[%s5460_s4 + $0x508] ss:$16 sps:$4 sm:$0xff]   ;;  %v4318_v8 = vld [vmem:[%s5460_s4 + $0x524] ss:$16 sps:$4 sm:$0xff]  }
 0x196   :  { %3250 = vmatprep.subr.bf16.mxu0 %v4258_v9  ;;  %3414 = vmatprep.subr.bf16.mxu1 %v4261_v10  ;;  %v4321_v9 = vld [vmem:[%s5460_s4 + $0x52c] ss:$16 sps:$4 sm:$0xff]   ;;  %v4316_v10 = vld [vmem:[%s5460_s4 + $0x520] ss:$16 sps:$4 sm:$0xff]  }
 0x199   :  { %3251 = vmatpush1.bf16.msra.mxu0 %v4256_v11  ;;  %3415 = vmatpush1.bf16.msra.mxu1 %v4259_v12  ;;  %v4319_v11 = vld [vmem:[%s5460_s4 + $0x528] ss:$16 sps:$4 sm:$0xff]   ;;  %v4324_v12 = vld [vmem:[%s5460_s4 + $0x544] ss:$16 sps:$4 sm:$0xff]  }
 0x19a   :  { %3261 = vmatprep.subr.bf16.mxu0 %v4264_v31  ;;  %3425 = vmatprep.subr.bf16.mxu1 %v4267_v13  ;;  %v4327_v31 = vld [vmem:[%s5460_s4 + $0x54c] ss:$16 sps:$4 sm:$0xff]   ;;  %v1255_v13 = vsub.s32 4, %v4581_v34 }
 0x19c   :  { %3253 = vmatmul.mubr.bf16.vlgmr.msra.gmra.mrb[8].mxu0 %v1615_v17  ;;  %3417 = vmatmul.mubr.bf16.vlgmr.msra.gmra.mrb[8].mxu1 %v1615_v17  ;;  %v4330_v17 = vld [vmem:[%s5460_s4 + $0x564] ss:$16 sps:$4 sm:$0xff]  }
 0x19d   :  { %3262 = vmatpush1.bf16.msra.mxu0 %v4262_v15  ;;  %3426 = vmatpush1.bf16.msra.mxu1 %v4265_v16  ;;  %v4325_v15 = vld [vmem:[%s5460_s4 + $0x548] ss:$16 sps:$4 sm:$0xff]   ;;  %v1267_v16 = vsub.s32 7, %v4581_v34 }
 0x19e   :  { %3263 = vmatprep.subr.bf16.mxu0 %v4270_v18  ;;  %3427 = vmatprep.subr.bf16.mxu1 %v4273_v19  ;;  %v4333_v18 = vld [vmem:[%s5460_s4 + $0x56c] ss:$16 sps:$4 sm:$0xff]   ;;  %v1256_v19 = vrot.slane %v4822_v48, %v1255_v13  ;;  %v4391_v13 = vld [vmem:[%s5460_s4 + $0x6a8] ss:$16 sps:$4 sm:$0xff]  }
 0x1a1   :  { %3264 = vmatpush1.bf16.msra.mxu0 %v4268_v22  ;;  %3428 = vmatpush1.bf16.msra.mxu1 %v4271_v23  ;;  %v4328_v22 = vld [vmem:[%s5460_s4 + $0x560] ss:$16 sps:$4 sm:$0xff]   ;;  %v4331_v23 = vld [vmem:[%s5460_s4 + $0x568] ss:$16 sps:$4 sm:$0xff]  }
 0x1a2   :  { %3265 = vmatprep.subr.bf16.mxu0 %v4276_v24  ;;  %3429 = vmatprep.subr.bf16.mxu1 %v4279_v25  ;;  %v1268_v24 = vrot.slane %v4822_v48, %v1267_v16  ;;  %v4336_v25 = vld [vmem:[%s5460_s4 + $0x584] ss:$16 sps:$4 sm:$0xff]   ;;  %v4394_v16 = vld [vmem:[%s5460_s4 + $0x6c0] ss:$16 sps:$4 sm:$0xff]  }
 0x1a5   :  { %3266 = vmatpush1.bf16.msra.mxu0 %v4274_v26  ;;  %3430 = vmatpush1.bf16.msra.mxu1 %v4277_v27  ;;  %v4339_v26 = vld [vmem:[%s5460_s4 + $0x58c] ss:$16 sps:$4 sm:$0xff]  }
 0x1a6   :  { %3267 = vmatprep.subr.bf16.mxu0 %v4282_v29  ;;  %3431 = vmatprep.subr.bf16.mxu1 %v4285_v30  ;;  %v4334_v29 = vld [vmem:[%s5460_s4 + $0x580] ss:$16 sps:$4 sm:$0xff]   ;;  %v4337_v30 = vld [vmem:[%s5460_s4 + $0x588] ss:$16 sps:$4 sm:$0xff]  }
 0x1a9   :  { %3268 = vmatpush1.bf16.msra.mxu0 %v4280_v32  ;;  %3432 = vmatpush1.bf16.msra.mxu1 %v4283_v33  ;;  %v4342_v32 = vld [vmem:[%s5460_s4 + $0x5a4] ss:$16 sps:$4 sm:$0xff]   ;;  %v4345_v33 = vld [vmem:[%s5460_s4 + $0x5ac] ss:$16 sps:$4 sm:$0xff]  }
 0x1aa   :  { %v5090_v40 = vpop.f32.mrb[4].mxu0  ;;  %3269 = vmatprep.subr.bf16.mxu0 %v4288_v35  ;;  %3433 = vmatprep.subr.bf16.mxu1 %v4291_v36  ;;  %v4340_v35 = vld [vmem:[%s5460_s4 + $0x5a0] ss:$16 sps:$4 sm:$0xff]   ;;  %v4343_v36 = vld [vmem:[%s5460_s4 + $0x5a8] ss:$16 sps:$4 sm:$0xff]  }
 0x1ab   :  { %v1518_v44 = vpop.f32.mrb[5].mxu0  ;;  %v4015_v27 = vadd.f32 %v5090_v40, %v1256_v19  ;;  %v4349_v40 = vld [vmem:[%s5460_s4 + $0x5c8] ss:$16 sps:$4 sm:$0xff]   ;;  %v4405_v19 = vld [vmem:[%s5460_s4 + $0x6ec] ss:$16 sps:$4 sm:$0xff]  }
 0x1ac   :  { %v4016_v46 = vadd.f32 %v1518_v44, %v1260_v37  ;;  %v1520_v50 = vpop.f32.mrb[6].mxu0  ;;  %v5110_v58 = vpop.f32.mrb[4].mxu1  ;;  %v4348_v37 = vld [vmem:[%s5460_s4 + $0x5c4] ss:$16 sps:$4 sm:$0xff]   ;;  %v4352_v44 = vld [vmem:[%s5460_s4 + $0x5e0] ss:$16 sps:$4 sm:$0xff]  }
 0x1ad   :  { %3270 = vmatpush1.bf16.msra.mxu0 %v4286_v38  ;;  %3434 = vmatpush1.bf16.msra.mxu1 %v4289_v39  ;;  %v1521_v51 = vpop.f32.mrb[7].mxu0  ;;  %v5112_v59 = vpop.f32.mrb[5].mxu1  ;;  %v4351_v38 = vld [vmem:[%s5460_s4 + $0x5cc] ss:$16 sps:$4 sm:$0xff]   ;;  %v4346_v39 = vld [vmem:[%s5460_s4 + $0x5c0] ss:$16 sps:$4 sm:$0xff]  }
 0x1ae   :  { %4462 = vtanh.f32 %v4016_v46  ;;  %3271 = vmatprep.subr.bf16.mxu0 %v4294_v41  ;;  %3435 = vmatprep.subr.bf16.mxu1 %v4297_v42  ;;  %v1602_v63 = vpop.f32.mrb[6].mxu1  ;;  %v4018_v45 = vadd.f32 %v5112_v59, %v1268_v24  ;;  %v4354_v41 = vld [vmem:[%s5460_s4 + $0x5e4] ss:$16 sps:$4 sm:$0xff]   ;;  %v4357_v42 = vld [vmem:[%s5460_s4 + $0x5ec] ss:$16 sps:$4 sm:$0xff]  }
 0x1af   :  { %v1603_v2 = vpop.f32.mrb[7].mxu1  ;;  %4464 = vtanh.f32 %v4015_v27  ;;  %v4355_v46 = vld [vmem:[%s5460_s4 + $0x5e8] ss:$16 sps:$4 sm:$0xff]   ;;  %v4360_v51 = vld [vmem:[%s5460_s4 + $0x604] ss:$16 sps:$4 sm:$0xff]  }
 0x1b0   :  { %4466 = vtanh.f32 %v4018_v45  ;;  %v4369_v63 = vld [vmem:[%s5460_s4 + $0x62c] ss:$16 sps:$4 sm:$0xff]   ;;  %v4372_v2 = vld [vmem:[%s5460_s4 + $0x644] ss:$16 sps:$4 sm:$0xff]   ;;  %v4409_v27 = vld [vmem:[%s5460_s4 + $0x708] ss:$16 sps:$4 sm:$0xff]  }
 0x1b1   :  { %3272 = vmatpush1.bf16.msra.mxu0 %v4292_v28  ;;  %3436 = vmatpush1.bf16.msra.mxu1 %v4295_v55  ;;  %v4363_v28 = vld [vmem:[%s5460_s4 + $0x60c] ss:$16 sps:$4 sm:$0xff]   ;;  %v4408_v24 = vld [vmem:[%s5460_s4 + $0x704] ss:$16 sps:$4 sm:$0xff]   ;;  %v4412_v45 = vld [vmem:[%s5460_s4 + $0x720] ss:$16 sps:$4 sm:$0xff]  }
 0x1b2   :  { %3273 = vmatprep.subr.bf16.mxu0 %v4300_v56  ;;  %3437 = vmatprep.subr.bf16.mxu1 %v4303_v57  ;;  %v4358_v56 = vld [vmem:[%s5460_s4 + $0x600] ss:$16 sps:$4 sm:$0xff]   ;;  %v4361_v57 = vld [vmem:[%s5460_s4 + $0x608] ss:$16 sps:$4 sm:$0xff]  }
 0x1b5   :  { %3274 = vmatpush1.bf16.msra.mxu0 %v4298_v61  ;;  %3438 = vmatpush1.bf16.msra.mxu1 %v4301_v62  ;;  %v4366_v62 = vld [vmem:[%s5460_s4 + $0x624] ss:$16 sps:$4 sm:$0xff]  }
 0x1b6   :  { %3275 = vmatprep.subr.bf16.mxu0 %v4306_v0  ;;  %3439 = vmatprep.subr.bf16.mxu1 %v4309_v1  ;;  %v4364_v0 = vld [vmem:[%s5460_s4 + $0x620] ss:$16 sps:$4 sm:$0xff]   ;;  %v4367_v1 = vld [vmem:[%s5460_s4 + $0x628] ss:$16 sps:$4 sm:$0xff]  }
 0x1b8   :  { %v4463_v5 = vpop.eup %4462 }
 0x1b9   :  { %v1618_v6 = vpack.c.bf16 %v4463_v5, %v4463_v5  ;;  %3276 = vmatpush1.bf16.msra.mxu0 %v4304_v3  ;;  %3440 = vmatpush1.bf16.msra.mxu1 %v4307_v4  ;;  %v4465_v50 = vpop.eup %4464  ;;  %v4375_v3 = vld [vmem:[%s5460_s4 + $0x64c] ss:$16 sps:$4 sm:$0xff]   ;;  %v4370_v4 = vld [vmem:[%s5460_s4 + $0x640] ss:$16 sps:$4 sm:$0xff]  }
 0x1ba   :  { %3277 = vmatprep.subr.bf16.mxu0 %v4312_v60  ;;  %3441 = vmatprep.subr.bf16.mxu1 %v4315_v54  ;;  %v4467_v55 = vpop.eup %4466  ;;  %v1617_v59 = vpack.c.bf16 %v4465_v50, %v4465_v50  ;;  %v4373_v60 = vld [vmem:[%s5460_s4 + $0x648] ss:$16 sps:$4 sm:$0xff]   ;;  %v4378_v54 = vld [vmem:[%s5460_s4 + $0x664] ss:$16 sps:$4 sm:$0xff]   ;;  %v4381_v5 = vld [vmem:[%s5460_s4 + $0x66c] ss:$16 sps:$4 sm:$0xff]  }
 0x1bb   :  { %3293 = vmatprep.mubr.bf16.mxu0 %v1618_v6  ;;  %3457 = vmatprep.mubr.bf16.mxu1 %v1618_v6  ;;  %v1620_v61 = vpack.c.bf16 %v4467_v55, %v4467_v55  ;;  %v4376_v6 = vld [vmem:[%s5460_s4 + $0x660] ss:$16 sps:$4 sm:$0xff]   ;;  %v4438_v55 = vld [vmem:[%s5460_s4 + $0x7a4] ss:$16 sps:$4 sm:$0xff]  }
 0x1bd   :  { %3278 = vmatpush1.bf16.msra.mxu0 %v4310_v7  ;;  %3442 = vmatpush1.bf16.msra.mxu1 %v4313_v20  ;;  %v4379_v7 = vld [vmem:[%s5460_s4 + $0x668] ss:$16 sps:$4 sm:$0xff]   ;;  %v4384_v20 = vld [vmem:[%s5460_s4 + $0x684] ss:$16 sps:$4 sm:$0xff]  }
 0x1be   :  { %3279 = vmatprep.subr.bf16.mxu0 %v4318_v8  ;;  %3443 = vmatprep.subr.bf16.mxu1 %v4321_v9  ;;  %v4387_v8 = vld [vmem:[%s5460_s4 + $0x68c] ss:$16 sps:$4 sm:$0xff]   ;;  %v4382_v9 = vld [vmem:[%s5460_s4 + $0x680] ss:$16 sps:$4 sm:$0xff]  }
 0x1c1   :  { %3280 = vmatpush1.bf16.msra.mxu0 %v4316_v10  ;;  %3444 = vmatpush1.bf16.msra.mxu1 %v4319_v11  ;;  %v4385_v10 = vld [vmem:[%s5460_s4 + $0x688] ss:$16 sps:$4 sm:$0xff]   ;;  %v4390_v11 = vld [vmem:[%s5460_s4 + $0x6a4] ss:$16 sps:$4 sm:$0xff]  }
 0x1c2   :  { %3281 = vmatprep.subr.bf16.mxu0 %v4324_v12  ;;  %3445 = vmatprep.subr.bf16.mxu1 %v4327_v31  ;;  %v4393_v12 = vld [vmem:[%s5460_s4 + $0x6ac] ss:$16 sps:$4 sm:$0xff]   ;;  %v4388_v31 = vld [vmem:[%s5460_s4 + $0x6a0] ss:$16 sps:$4 sm:$0xff]  }
 0x1c5   :  { %3282 = vmatpush1.bf16.msra.mxu0 %v4322_v14  ;;  %3446 = vmatpush1.bf16.msra.mxu1 %v4325_v15  ;;  %v4396_v14 = vld [vmem:[%s5460_s4 + $0x6c4] ss:$16 sps:$4 sm:$0xff]   ;;  %v4399_v15 = vld [vmem:[%s5460_s4 + $0x6cc] ss:$16 sps:$4 sm:$0xff]  }
 0x1c6   :  { %3283 = vmatprep.subr.bf16.mxu0 %v4330_v17  ;;  %3447 = vmatprep.subr.bf16.mxu1 %v4333_v18  ;;  %v4397_v17 = vld [vmem:[%s5460_s4 + $0x6c8] ss:$16 sps:$4 sm:$0xff]   ;;  %v4402_v18 = vld [vmem:[%s5460_s4 + $0x6e4] ss:$16 sps:$4 sm:$0xff]  }
 0x1c9   :  { %3284 = vmatpush1.bf16.msra.mxu0 %v4328_v22  ;;  %3448 = vmatpush1.bf16.msra.mxu1 %v4331_v23  ;;  %v4400_v22 = vld [vmem:[%s5460_s4 + $0x6e0] ss:$16 sps:$4 sm:$0xff]   ;;  %v4403_v23 = vld [vmem:[%s5460_s4 + $0x6e8] ss:$16 sps:$4 sm:$0xff]  }
 0x1ca   :  { %3285 = vmatprep.subr.bf16.mxu0 %v4336_v25  ;;  %3449 = vmatprep.subr.bf16.mxu1 %v4339_v26  ;;  %v4411_v25 = vld [vmem:[%s5460_s4 + $0x70c] ss:$16 sps:$4 sm:$0xff]   ;;  %v4406_v26 = vld [vmem:[%s5460_s4 + $0x700] ss:$16 sps:$4 sm:$0xff]  }
 0x1cd   :  { %3286 = vmatpush1.bf16.msra.mxu0 %v4334_v29  ;;  %3450 = vmatpush1.bf16.msra.mxu1 %v4337_v30  ;;  %v4414_v29 = vld [vmem:[%s5460_s4 + $0x724] ss:$16 sps:$4 sm:$0xff]   ;;  %v4417_v30 = vld [vmem:[%s5460_s4 + $0x72c] ss:$16 sps:$4 sm:$0xff]  }
 0x1ce   :  { %3287 = vmatprep.subr.bf16.mxu0 %v4342_v32  ;;  %3451 = vmatprep.subr.bf16.mxu1 %v4345_v33  ;;  %v4415_v32 = vld [vmem:[%s5460_s4 + $0x728] ss:$16 sps:$4 sm:$0xff]   ;;  %v4420_v33 = vld [vmem:[%s5460_s4 + $0x744] ss:$16 sps:$4 sm:$0xff]  }
 0x1d1   :  { %3288 = vmatpush1.bf16.msra.mxu0 %v4340_v35  ;;  %3452 = vmatpush1.bf16.msra.mxu1 %v4343_v36  ;;  %v4423_v35 = vld [vmem:[%s5460_s4 + $0x74c] ss:$16 sps:$4 sm:$0xff]   ;;  %v1263_v36 = vsub.s32 6, %v4581_v34 }
 0x1d2   :  { %3289 = vmatprep.subr.bf16.mxu0 %v4348_v37  ;;  %3453 = vmatprep.subr.bf16.mxu1 %v4351_v38  ;;  %v4418_v37 = vld [vmem:[%s5460_s4 + $0x740] ss:$16 sps:$4 sm:$0xff]   ;;  %v4421_v38 = vld [vmem:[%s5460_s4 + $0x748] ss:$16 sps:$4 sm:$0xff]  }
 0x1d5   :  { %3290 = vmatpush1.bf16.msra.mxu0 %v4346_v39  ;;  %3454 = vmatpush1.bf16.msra.mxu1 %v4349_v40  ;;  %v4426_v39 = vld [vmem:[%s5460_s4 + $0x764] ss:$16 sps:$4 sm:$0xff]   ;;  %v4429_v40 = vld [vmem:[%s5460_s4 + $0x76c] ss:$16 sps:$4 sm:$0xff]  }
 0x1d6   :  { %3291 = vmatprep.subr.bf16.mxu0 %v4354_v41  ;;  %3455 = vmatprep.subr.bf16.mxu1 %v4357_v42  ;;  %v1264_v41 = vrot.slane %v4822_v48, %v1263_v36  ;;  %v4424_v42 = vld [vmem:[%s5460_s4 + $0x760] ss:$16 sps:$4 sm:$0xff]   ;;  %v4435_v48 = vld [vmem:[%s5460_s4 + $0x78c] ss:$16 sps:$4 sm:$0xff]  }
 0x1d8   :  { %v4017_v50 = vadd.f32 %v5110_v58, %v1264_v41  ;;  %v4441_v58 = vld [vmem:[%s5460_s4 + $0x7ac] ss:$16 sps:$4 sm:$0xff]  }
 0x1d9   :  { %3292 = vmatpush1.bf16.msra.mxu0 %v4352_v44  ;;  %3456 = vmatpush1.bf16.msra.mxu1 %v4355_v46  ;;  %v4427_v44 = vld [vmem:[%s5460_s4 + $0x768] ss:$16 sps:$4 sm:$0xff]   ;;  %v4432_v46 = vld [vmem:[%s5460_s4 + $0x784] ss:$16 sps:$4 sm:$0xff]  }
 0x1da   :  { %3302 = vmatprep.subr.bf16.mxu0 %v4360_v51  ;;  %3466 = vmatprep.subr.bf16.mxu1 %v4363_v28  ;;  %v4430_v51 = vld [vmem:[%s5460_s4 + $0x780] ss:$16 sps:$4 sm:$0xff]   ;;  %v4433_v28 = vld [vmem:[%s5460_s4 + $0x788] ss:$16 sps:$4 sm:$0xff]   ;;  %4468 = vtanh.f32 %v4017_v50 }
 0x1dc   :  { %3294 = vmatmul.mubr.bf16.vlgmr.msra.gmra.mrb[8].mxu0 %v1617_v59  ;;  %3458 = vmatmul.mubr.bf16.vlgmr.msra.gmra.mrb[8].mxu1 %v1617_v59  ;;  %v4444_v59 = vld [vmem:[%s5460_s4 + $0x7c4] ss:$16 sps:$4 sm:$0xff]  }
 0x1dd   :  { %3303 = vmatpush1.bf16.msra.mxu0 %v4358_v56  ;;  %3467 = vmatpush1.bf16.msra.mxu1 %v4361_v57  ;;  %v4436_v56 = vld [vmem:[%s5460_s4 + $0x7a0] ss:$16 sps:$4 sm:$0xff]   ;;  %v4439_v57 = vld [vmem:[%s5460_s4 + $0x7a8] ss:$16 sps:$4 sm:$0xff]  }
 0x1de   :  { %3304 = vmatprep.subr.bf16.mxu0 %v4366_v62  ;;  %3334 = vmatprep.mubr.bf16.mxu0 %v1620_v61  ;;  %v4442_v62 = vld [vmem:[%s5460_s4 + $0x7c0] ss:$16 sps:$4 sm:$0xff]  }
 0x1df   :  { %3468 = vmatprep.subr.bf16.mxu1 %v4369_v63  ;;  %3498 = vmatprep.mubr.bf16.mxu1 %v1620_v61  ;;  %v4447_v61 = vld [vmem:[%s5460_s4 + $0x7cc] ss:$16 sps:$4 sm:$0xff]   ;;  %v4445_v63 = vld [vmem:[%s5460_s4 + $0x7c8] ss:$16 sps:$4 sm:$0xff]  }
 0x1e1   :  { %3305 = vmatpush1.bf16.msra.mxu0 %v4364_v0  ;;  %3469 = vmatpush1.bf16.msra.mxu1 %v4367_v1  ;;  %v4450_v0 = vld [vmem:[%s5460_s4 + $0x7e4] ss:$16 sps:$4 sm:$0xff]   ;;  %v4453_v1 = vld [vmem:[%s5460_s4 + $0x7ec] ss:$16 sps:$4 sm:$0xff]  }
 0x1e2   :  { %3306 = vmatprep.subr.bf16.mxu0 %v4372_v2  ;;  %3470 = vmatprep.subr.bf16.mxu1 %v4375_v3  ;;  %v4448_v2 = vld [vmem:[%s5460_s4 + $0x7e0] ss:$16 sps:$4 sm:$0xff]   ;;  %v4451_v3 = vld [vmem:[%s5460_s4 + $0x7e8] ss:$16 sps:$4 sm:$0xff]   ;;  %s4523_s4 = smov [#allocation7]  }
 0x1e5   :  { %3307 = vmatpush1.bf16.msra.mxu0 %v4370_v4  ;;  %3471 = vmatpush1.bf16.msra.mxu1 %v4373_v60  ;;  %v4469_v4 = vpop.eup %4468 }
 0x1e6   :  { %3308 = vmatprep.subr.bf16.mxu0 %v4378_v54  ;;  %3472 = vmatprep.subr.bf16.mxu1 %v4381_v5  ;;  %v1619_v60 = vpack.c.bf16 %v4469_v4, %v4469_v4  ;;  %v1877_v54 = vld [vmem:[%s5461_s5] sm:$0xf]  ;;  %s3547_s5 = sshll.u32 %s4523_s4, 4  ;;  %s3548_s5 = int_to_ptr.vmem [resolvable:$true] %s3547_s5 }
 0x1e7   :  { %v3162_v5 = vrot.slane %v1877_v54, %v1239_v47  ;;  %s4492_s8 = scalar_lea.vmem %s3548_s5, 64  ;;  %p4497_p10 = scmp.lt.s32.totalorder %s3548_s5, %s3548_s5 }
 0x1e8   :  { %p4493_p9 = scmp.ne.s32.totalorder %s3548_s5, %s4492_s8  ;;  %p4498_p11 = scmp.lt.s32.totalorder %s4492_s8, %s4492_s8 }
 0x1e9   :  { %3309 = vmatpush1.bf16.msra.mxu0 %v4376_v6  ;;  %3473 = vmatpush1.bf16.msra.mxu1 %v4379_v7  ;;  %v3170_v6 = vrot.slane %v1877_v54, %v1247_v53  ;;  %v3166_v7 = vrot.slane %v1877_v54, %v1243_v49 }
 0x1ea   :  { %3310 = vmatprep.subr.bf16.mxu0 %v4384_v20  ;;  %3474 = vmatprep.subr.bf16.mxu1 %v4387_v8  ;;  %v3174_v20 = vrot.slane %v1877_v54, %v1251_v52  ;;  %p4499_p12 = por %p4498_p11, %p4497_p10 }
 0x1ec   :  { %p4500_p13 = pnand %p4499_p12, %p4493_p9 }
 0x1ed   :  { %3311 = vmatpush1.bf16.msra.mxu0 %v4382_v9  ;;  %3475 = vmatpush1.bf16.msra.mxu1 %v4385_v10 }
 0x1ee   :  { %3312 = vmatprep.subr.bf16.mxu0 %v4390_v11  ;;  %3476 = vmatprep.subr.bf16.mxu1 %v4393_v12 }
 0x1f1   :  { %3313 = vmatpush1.bf16.msra.mxu0 %v4388_v31  ;;  %3477 = vmatpush1.bf16.msra.mxu1 %v4391_v13 }
 0x1f2   :  { %3314 = vmatprep.subr.bf16.mxu0 %v4396_v14  ;;  %3478 = vmatprep.subr.bf16.mxu1 %v4399_v15 }
 0x1f5   :  { %3315 = vmatpush1.bf16.msra.mxu0 %v4394_v16  ;;  %3479 = vmatpush1.bf16.msra.mxu1 %v4397_v17 }
 0x1f6   :  { %3316 = vmatprep.subr.bf16.mxu0 %v4402_v18  ;;  %3480 = vmatprep.subr.bf16.mxu1 %v4405_v19 }
 0x1f9   :  { %3317 = vmatpush1.bf16.msra.mxu0 %v4400_v22  ;;  %3481 = vmatpush1.bf16.msra.mxu1 %v4403_v23 }
 0x1fa   :  { %3318 = vmatprep.subr.bf16.mxu0 %v4408_v24  ;;  %3482 = vmatprep.subr.bf16.mxu1 %v4411_v25 }
 0x1fd   :  { %3319 = vmatpush1.bf16.msra.mxu0 %v4406_v26  ;;  %3483 = vmatpush1.bf16.msra.mxu1 %v4409_v27 }
 0x1fe   :  { %3320 = vmatprep.subr.bf16.mxu0 %v4414_v29  ;;  %3484 = vmatprep.subr.bf16.mxu1 %v4417_v30 }
 0x201   :  { %3321 = vmatpush1.bf16.msra.mxu0 %v4412_v45  ;;  %3485 = vmatpush1.bf16.msra.mxu1 %v4415_v32 }
 0x202   :  { %3322 = vmatprep.subr.bf16.mxu0 %v4420_v33  ;;  %3486 = vmatprep.subr.bf16.mxu1 %v4423_v35 }
 0x205   :  { %3323 = vmatpush1.bf16.msra.mxu0 %v4418_v37  ;;  %3487 = vmatpush1.bf16.msra.mxu1 %v4421_v38 }
 0x206   :  { %3324 = vmatprep.subr.bf16.mxu0 %v4426_v39  ;;  %3488 = vmatprep.subr.bf16.mxu1 %v4429_v40 }
 0x209   :  { %3325 = vmatpush1.bf16.msra.mxu0 %v4424_v42  ;;  %3489 = vmatpush1.bf16.msra.mxu1 %v4427_v44 }
 0x20a   :  { %3326 = vmatprep.subr.bf16.mxu0 %v4432_v46  ;;  %3490 = vmatprep.subr.bf16.mxu1 %v4435_v48 }
 0x20d   :  { %3327 = vmatpush1.bf16.msra.mxu0 %v4430_v51  ;;  %3491 = vmatpush1.bf16.msra.mxu1 %v4433_v28 }
 0x20e   :  { %3328 = vmatprep.subr.bf16.mxu0 %v4438_v55  ;;  %3492 = vmatprep.subr.bf16.mxu1 %v4441_v58 }
 0x211   :  { %3329 = vmatpush1.bf16.msra.mxu0 %v4436_v56  ;;  %3493 = vmatpush1.bf16.msra.mxu1 %v4439_v57 }
 0x212   :  { %3330 = vmatprep.subr.bf16.mxu0 %v4444_v59  ;;  %3494 = vmatprep.subr.bf16.mxu1 %v4447_v61 }
 0x215   :  { %3331 = vmatpush1.bf16.msra.mxu0 %v4442_v62  ;;  %3495 = vmatpush1.bf16.msra.mxu1 %v4445_v63 }
 0x216   :  { %3332 = vmatprep.subr.bf16.mxu0 %v4450_v0  ;;  %3496 = vmatprep.subr.bf16.mxu1 %v4453_v1 }
 0x219   :  { %3333 = vmatpush1.bf16.msra.mxu0 %v4448_v2  ;;  %3497 = vmatpush1.bf16.msra.mxu1 %v4451_v3 }
 0x21c   :  { %3335 = vmatmul.mubr.bf16.vlgmr.msra.gmra.mrb[8].mxu0 %v1619_v60  ;;  %3499 = vmatmul.mubr.bf16.vlgmr.msra.gmra.mrb[8].mxu1 %v1619_v60 }
 0x2ef   :  { %v3336_v8 = vpop.f32.mrb[8].mxu0  ;;  %v3500_v9 = vpop.f32.mrb[8].mxu1 }
 0x2f0   :  { %v4019_v10 = vadd.f32 %v3336_v8, %v3162_v5  ;;  %v4021_v11 = vadd.f32 %v3500_v9, %v3170_v6  ;;  %v3338_v12 = vpop.f32.mrb[9].mxu0  ;;  %v3502_v31 = vpop.f32.mrb[9].mxu1 }
 0x2f1   :  { %v4020_v13 = vadd.f32 %v3338_v12, %v3166_v7  ;;  %v4022_v14 = vadd.f32 %v3502_v31, %v3174_v20  ;;  %v3340_v15 = vpop.f32.mrb[10].mxu0  ;;  %v3504_v16 = vpop.f32.mrb[10].mxu1 }
 0x2f2   :  { %v3341_v47 = vpop.f32.mrb[11].mxu0  ;;  %v3505_v17 = vpop.f32.mrb[11].mxu1 }
 0x2f3   :  { %v3511_v18 = vcombine.low %v4019_v10, %v4020_v13  ;;  %v3512_v53 = vcombine.low %v4021_v11, %v4022_v14 }
 0x2f5   :  { %v3519_v19 = vrot.slane %v3511_v18, %v4587_v43  ;;  %v3526_v49 = vrot.slane %v3512_v53, %v4587_v43 }
 0x2f7   :  { %v3527_v34 = vcombine.low %v3519_v19, %v3526_v49 }
 0x2f9   :  { %v3534_v52 = vrot.slane %v3527_v34, %v4587_v43 }
 0x2fb   :  { %3540 = vst.msk [vmem:[#allocation7] sm:$0xf] %vm3538_vm0, %v3534_v52 }
 0x2fc   :  { %4503 = shalt.err (!%p4500_p13)
}
 0x2fd   :  { %s4504_s11 = scalar_lea.hbm %s5462_s6, 64 }
 0x2fe   :  { %p4505_p0 = scmp.ne.s32.totalorder %s5462_s6, %s4504_s11  ;;  %p4508_p1 = scmp.lt.u32.totalorder %s4504_s11, %s5462_s6 }
 0x300   :  { %p4510_p2 = pnand %p4508_p1, %p4505_p0 }
 0x302   :  { %4513 = shalt.err (!%p4510_p2)
}
 0x303   :  { %3550 = dma.vmem_to_hbm [thread:$0]  %s3548_s5, 64, %s5462_s6, [#allocation6]  }
 0x304   :  { %4516 = dma.done.wait [#allocation6], 64  }
 0x305   :  { %4517 = vsyncadd [#allocation6], 4294967232 }
 0x306   :  { %3554 = vsyncpa [#allocation5], 1 }
 0x307   :  { %3555 = vsyncpa [#allocation6], 1 }

</bundles_post_ra>
